<compile_context>
chip_gen: v7x
topology: tpu7x:2x2x1
jax: 0.10.0
libtpu: 0.0.40
codegen_flags: <defaults>
</compile_context>

<pallas_src>
import jax
import jax.numpy as jnp
from jax.experimental import pallas as pl
from jax.experimental.pallas import tpu as pltpu

EPS = 1e-5          # BatchNorm2d default eps
LANE = 128          # TPU lane width; channel dims padded to this
SUB = 8             # sublane width; spatial W padded to a multiple of this
TAIL_TILE = 512     # fixed row tile for the elementwise tail (~roofline regime)


def _round_up(x, m):
    return ((x + m - 1) // m) * m


def _vmem_limit_bytes():
    """Generation-aware scoped-VMEM budget: ~half of physical VMEM.

    => ~64-100 MiB on v5e/v6e (128 MiB parts), ~32 MiB on v7x (64 MiB part).
    """
    try:
        cap = int(pltpu.get_tpu_info().vmem_capacity_bytes)
        return min(max(cap // 2, 32 * 1024 * 1024), 100 * 1024 * 1024)
    except Exception:
        return 32 * 1024 * 1024


# ----------------------------- Pallas kernels ------------------------------

def _make_conv1_kernel(ho, wo, stride, cinp, coutp, with_proj):
    """conv1 (3x3, pad=1, stride=s) [+ 1x1 projection shortcut] for one image.

    Packs the nine shifted windows into one bf16 im2col slab in VMEM and does
    a single K=9*cinp MXU dot (f32 acc).  Emits the raw (pre-BN) outputs in
    bf16 plus per-image f32 partial BN statistics; the tiny mean/var
    finalisation is done in XLA so the grid axis stays "parallel".
    """
    rows = ho * wo
    K = 9 * cinp

    def window(x_ref, kh, kw):
        if stride == 1:
            return x_ref[0, kh:kh + ho, kw:kw + wo, :]
        # TODO(synk): replace the strided gather with a wrapper-side even/odd
        # phase split (space-to-depth) so stride>1 taps stay contiguous.
        return x_ref[0, pl.ds(kh, ho, stride=stride),
                     pl.ds(kw, wo, stride=stride), :]

    def build_slab(x_ref, slab_ref):
        for k in range(9):                       # unrolled: 9 lane-aligned writes
            kh, kw = divmod(k, 3)
            slab_ref[:, :, k * cinp:(k + 1) * cinp] = window(x_ref, kh, kw)

    def write_stats(st_ref, y):
        st_ref[0, 0:1, :] = jnp.sum(y, axis=0, keepdims=True)
        st_ref[0, 1:2, :] = jnp.sum(y * y, axis=0, keepdims=True)

    if with_proj:
        def kernel(x_ref, w1_ref, wsc_ref, y1_ref, sc_ref, st1_ref, stsc_ref,
                   slab_ref):
            build_slab(x_ref, slab_ref)
            y1 = jnp.dot(slab_ref[...].reshape(rows, K), w1_ref[...],
                         preferred_element_type=jnp.float32)
            y1_ref[0] = y1.astype(jnp.bfloat16)
            write_stats(st1_ref, y1)
            # 1x1 projection shortcut == the centre tap (k=4) of the slab.
            sc = jnp.dot(slab_ref[:, :, 4 * cinp:5 * cinp].reshape(rows, cinp),
                         wsc_ref[...], preferred_element_type=jnp.float32)
            sc_ref[0] = sc.astype(jnp.bfloat16)
            write_stats(stsc_ref, sc)
        return kernel

    def kernel(x_ref, w1_ref, y1_ref, st1_ref, slab_ref):
        build_slab(x_ref, slab_ref)
        y1 = jnp.dot(slab_ref[...].reshape(rows, K), w1_ref[...],
                     preferred_element_type=jnp.float32)
        y1_ref[0] = y1.astype(jnp.bfloat16)
        write_stats(st1_ref, y1)
    return kernel


def _make_conv2_kernel(ho, wo, wop, coutp):
    """Fused BN1(folded affine) + ReLU + conv2 (3x3, stride=1, pad=1), one image.

    y1 is read back from HBM exactly once (bf16); BN1+ReLU is applied in f32
    and the result is written (bf16) into the interior of a persistent halo
    scratch.  Only the four 1-px border strips are re-zeroed each step (no
    full-buffer re-zero).  The nine taps are packed into a bf16 im2col slab
    and consumed by a single K=9*coutp MXU dot with f32 accumulation.
    """
    rows = ho * wo
    K = 9 * coutp

    def kernel(y1_ref, aff1_ref, w2_ref, y2_ref, st2_ref, pad_ref, slab_ref):
        a1 = aff1_ref[0:1, :]
        c1 = aff1_ref[1:2, :]
        # BN1 (batch stats folded into a1/c1) + ReLU, f32.
        y1n = jnp.maximum(y1_ref[0].astype(jnp.float32) * a1 + c1, 0.0)
        # Refresh only the 1-px zero border (tiny strip stores; megacore-safe
        # because each core re-establishes its own scratch border per step).
        pad_ref[0:1, :, :] = jnp.zeros((1, wop, coutp), jnp.bfloat16)
        pad_ref[ho + 1:ho + 2, :, :] = jnp.zeros((1, wop, coutp), jnp.bfloat16)
        pad_ref[:, 0:1, :] = jnp.zeros((ho + 2, 1, coutp), jnp.bfloat16)
        pad_ref[:, wo + 1:wo + 2, :] = jnp.zeros((ho + 2, 1, coutp), jnp.bfloat16)
        # Interior: normalised activations (padding must be post-BN zeros).
        pad_ref[1:ho + 1, 1:wo + 1, :] = (
            y1n.astype(jnp.bfloat16).reshape(ho, wo, coutp))
        for k in range(9):
            kh, kw = divmod(k, 3)
            slab_ref[:, :, k * coutp:(k + 1) * coutp] = (
                pad_ref[kh:kh + ho, kw:kw + wo, :])
        y2 = jnp.dot(slab_ref[...].reshape(rows, K), w2_ref[...],
                     preferred_element_type=jnp.float32)
        y2_ref[0] = y2.astype(jnp.bfloat16)
        st2_ref[0, 0:1, :] = jnp.sum(y2, axis=0, keepdims=True)
        st2_ref[0, 1:2, :] = jnp.sum(y2 * y2, axis=0, keepdims=True)
    return kernel


def _tail_kernel(y2_ref, sc_ref, aff_ref, o_ref):
    """relu(BN2(conv2_raw) + shortcut_affine) — elementwise, fixed row tiles."""
    a2, c2 = aff_ref[0:1, :], aff_ref[1:2, :]
    asc, csc = aff_ref[2:3, :], aff_ref[3:4, :]
    o_ref[...] = jnp.maximum(
        y2_ref[...].astype(jnp.float32) * a2 + c2
        + sc_ref[...].astype(jnp.float32) * asc + csc, 0.0)


# ------------------------------- JAX glue -----------------------------------

def _pad_w3x3(w, cinp, coutp):
    """(3,3,cin,cout) f32 -> (9*cinp, coutp) bf16 im2col weight, padded chans."""
    cin, cout = w.shape[2], w.shape[3]
    wp = jnp.zeros((3, 3, cinp, coutp), jnp.float32).at[:, :, :cin, :cout].set(w)
    return wp.reshape(9 * cinp, coutp).astype(jnp.bfloat16)


def _pad_vec(v, cp):
    v = v.reshape(-1).astype(jnp.float32)
    return jnp.zeros((cp,), jnp.float32).at[:v.shape[0]].set(v)


def _bn_scale_shift(partial_stats, count, gamma_p, beta_p):
    """Fold train-mode batch statistics into per-channel scale/shift.

    partial_stats: (num_blocks, 2, Cp) per-grid-block [sum, sumsq].  The
    finalisation is a few-KiB XLA reduction, which keeps the heavy conv
    kernels' grid axes "parallel" (megacore) instead of an accumulator.
    """
    s = jnp.sum(partial_stats, axis=0)          # (2, Cp)
    mean = s[0] / count
    var = s[1] / count - mean * mean            # biased variance, BN train mode
    # TODO(synk): switch to a centered/Welford cross-block reduction if
    # activation magnitudes ever make E[x^2]-E[x]^2 cancellation-prone.
    a = gamma_p * jax.lax.rsqrt(var + EPS)
    return a, beta_p - mean * a


def init_params(key, cin, cout, stride):
    """Deterministic synthetic parameters (shapes per nn.Module __init__)."""
    ks = jax.random.split(key, 8)
    p = {
        "w1": jax.random.normal(ks[0], (3, 3, cin, cout), jnp.float32) * 0.1,
        "g1": 1.0 + 0.1 * jax.random.normal(ks[1], (1, cout), jnp.float32),
        "b1": 0.1 * jax.random.normal(ks[2], (1, cout), jnp.float32),
        "w2": jax.random.normal(ks[3], (3, 3, cout, cout), jnp.float32) * 0.1,
        "g2": 1.0 + 0.1 * jax.random.normal(ks[4], (1, cout), jnp.float32),
        "b2": 0.1 * jax.random.normal(ks[5], (1, cout), jnp.float32),
    }
    if stride != 1 or cin != cout:
        p["wsc"] = jax.random.normal(ks[6], (1, 1, cin, cout), jnp.float32) * 0.1
        p["gsc"] = 1.0 + 0.1 * jax.random.normal(ks[7], (1, cout), jnp.float32)
        p["bsc"] = jnp.zeros((1, cout), jnp.float32)
    return p


def residual_block_forward(x_nchw, params, stride=1):
    """Forward pass of ResidualBlock (train-mode BN).  NCHW in / NCHW out."""
    n, cin, h, w = x_nchw.shape
    cout = params["w1"].shape[-1]
    ho = (h - 1) // stride + 1
    wo = (w - 1) // stride + 1
    rows = ho * wo
    cinp = _round_up(cin, LANE)
    coutp = _round_up(cout, LANE)
    proj = "wsc" in params

    # NHWC, channels zero-padded to the 128-lane width.
    x_nhwc = jnp.transpose(x_nchw, (0, 2, 3, 1))
    x_cpad = jnp.pad(x_nhwc, ((0, 0), (0, 0), (0, 0), (0, cinp - cin)))
    # 1-px spatial halo, W right-padded to a multiple of 8 sublanes, and bf16
    # over HBM (the MXU consumes bf16 anyway) -> half the stage-1 input DMA.
    wp8 = _round_up(w + 2, SUB)
    x_sp = jnp.pad(x_cpad, ((0, 0), (1, 1), (1, wp8 - w - 1), (0, 0))
                   ).astype(jnp.bfloat16)

    w1 = _pad_w3x3(params["w1"], cinp, coutp)       # (9*cinp, coutp) bf16
    w2 = _pad_w3x3(params["w2"], coutp, coutp)      # (9*coutp, coutp) bf16
    g1, b1 = _pad_vec(params["g1"], coutp), _pad_vec(params["b1"], coutp)
    g2, b2 = _pad_vec(params["g2"], coutp), _pad_vec(params["b2"], coutp)

    cparams = pltpu.CompilerParams(dimension_semantics=("parallel",),
                                   vmem_limit_bytes=_vmem_limit_bytes())

    img_spec = pl.BlockSpec((1, h + 2, wp8, cinp), lambda i: (i, 0, 0, 0))
    raw_spec = pl.BlockSpec((1, rows, coutp), lambda i: (i, 0, 0))
    st_spec = pl.BlockSpec((1, 2, coutp), lambda i: (i, 0, 0))
    raw_shape = jax.ShapeDtypeStruct((n, rows, coutp), jnp.bfloat16)
    st_shape = jax.ShapeDtypeStruct((n, 2, coutp), jnp.float32)

    slab1 = pltpu.VMEM((ho, wo, 9 * cinp), jnp.bfloat16)

    # TODO(synk): at ResNet-scale H*W, tile stages 1-2 over (image x row-block)
    # with a 1-row halo so each block stays under the v7x VMEM budget and both
    # TensorCores keep pipelining even at small batch.

    # ---- stage 1: conv1 (+1x1 projection) raw outputs + partial BN stats ----
    if proj:
        wsc = jnp.zeros((cinp, coutp), jnp.float32).at[:cin, :cout].set(
            params["wsc"].reshape(cin, cout)).astype(jnp.bfloat16)
        y1raw, scraw, st1, stsc = pl.pallas_call(
            _make_conv1_kernel(ho, wo, stride, cinp, coutp, with_proj=True),
            grid=(n,),
            in_specs=[img_spec,
                      pl.BlockSpec((9 * cinp, coutp), lambda i: (0, 0)),
                      pl.BlockSpec((cinp, coutp), lambda i: (0, 0))],
            out_specs=[raw_spec, raw_spec, st_spec, st_spec],
            out_shape=[raw_shape, raw_shape, st_shape, st_shape],
            scratch_shapes=[slab1],
            compiler_params=cparams,
        )(x_sp, w1, wsc)
    else:
        y1raw, st1 = pl.pallas_call(
            _make_conv1_kernel(ho, wo, stride, cinp, coutp, with_proj=False),
            grid=(n,),
            in_specs=[img_spec,
                      pl.BlockSpec((9 * cinp, coutp), lambda i: (0, 0))],
            out_specs=[raw_spec, st_spec],
            out_shape=[raw_shape, st_shape],
            scratch_shapes=[slab1],
            compiler_params=cparams,
        )(x_sp, w1)

    count = float(n * rows)
    a1, c1 = _bn_scale_shift(st1, count, g1, b1)
    aff1 = jnp.stack([a1, c1], axis=0)                          # (2, coutp) f32

    # ---- stage 2: BN1 + ReLU + conv2 fused, raw output + partial BN stats ---
    wop = _round_up(wo + 2, SUB)
    y2raw, st2 = pl.pallas_call(
        _make_conv2_kernel(ho, wo, wop, coutp),
        grid=(n,),
        in_specs=[raw_spec,
                  pl.BlockSpec((2, coutp), lambda i: (0, 0)),
                  pl.BlockSpec((9 * coutp, coutp), lambda i: (0, 0))],
        out_specs=[raw_spec, st_spec],
        out_shape=[raw_shape, st_shape],
        scratch_shapes=[pltpu.VMEM((ho + 2, wop, coutp), jnp.bfloat16),
                        pltpu.VMEM((ho, wo, 9 * coutp), jnp.bfloat16)],
        compiler_params=cparams,
    )(y1raw, aff1, w2)

    a2, c2 = _bn_scale_shift(st2, count, g2, b2)
    if proj:
        gsc = _pad_vec(params["gsc"], coutp)
        bsc = _pad_vec(params["bsc"], coutp)
        asc, csc = _bn_scale_shift(stsc, count, gsc, bsc)
        sc_flat = scraw.reshape(n * rows, coutp)
    else:
        # identity shortcut adds the EXACT f32 input (no bf16 round-trip).
        asc = jnp.ones((coutp,), jnp.float32)
        csc = jnp.zeros((coutp,), jnp.float32)
        sc_flat = x_cpad.reshape(n * rows, coutp)
    aff2 = jnp.stack([a2, c2, asc, csc], axis=0)                # (4, coutp) f32

    # ---- stage 3: BN2 + shortcut + residual add + ReLU (fixed row tiles) ----
    total = n * rows
    total_p = _round_up(total, TAIL_TILE)
    y2_flat = y2raw.reshape(total, coutp)
    if total_p != total:                      # padded tail: never a giant block
        y2_flat = jnp.pad(y2_flat, ((0, total_p - total), (0, 0)))
        sc_flat = jnp.pad(sc_flat, ((0, total_p - total), (0, 0)))
    out_flat = pl.pallas_call(
        _tail_kernel,
        grid=(total_p // TAIL_TILE,),
        in_specs=[pl.BlockSpec((TAIL_TILE, coutp), lambda i: (i, 0)),
                  pl.BlockSpec((TAIL_TILE, coutp), lambda i: (i, 0)),
                  pl.BlockSpec((4, coutp), lambda i: (0, 0))],
        out_specs=pl.BlockSpec((TAIL_TILE, coutp), lambda i: (i, 0)),
        out_shape=jax.ShapeDtypeStruct((total_p, coutp), jnp.float32),
        compiler_params=cparams,
    )(y2_flat, sc_flat, aff2)

    out = out_flat[:total].reshape(n, ho, wo, coutp)[..., :cout]
    return jnp.transpose(out, (0, 3, 1, 2))                     # back to NCHW


# ----------------------------- pure-JAX reference ---------------------------

def _conv_ref(x, w, stride, pad, mxu_bf16):
    if mxu_bf16:
        # Mirror the kernel's bf16 MXU inputs (f32 accumulation).
        x = x.astype(jnp.bfloat16).astype(jnp.float32)
        w = w.astype(jnp.bfloat16).astype(jnp.float32)
    return jax.lax.conv_general_dilated(
        x, w, window_strides=(stride, stride),
        padding=((pad, pad), (pad, pad)),
        dimension_numbers=("NHWC", "HWIO", "NHWC"),
        precision=jax.lax.Precision.HIGHEST)


def _bn_ref(y, g, b):
    mean = jnp.mean(y, axis=(0, 1, 2), keepdims=True)
    var = jnp.mean(jnp.square(y - mean), axis=(0, 1, 2), keepdims=True)
    return (y - mean) * jax.lax.rsqrt(var + EPS) * g.reshape(1, 1, 1, -1) \
        + b.reshape(1, 1, 1, -1)


def residual_block_ref(x_nchw, params, stride=1, mxu_bf16=False):
    x = jnp.transpose(x_nchw, (0, 2, 3, 1))
    y = _conv_ref(x, params["w1"], stride, 1, mxu_bf16)
    y = jax.nn.relu(_bn_ref(y, params["g1"], params["b1"]))
    y = _conv_ref(y, params["w2"], 1, 1, mxu_bf16)
    y = _bn_ref(y, params["g2"], params["b2"])
    if "wsc" in params:
        sc = _conv_ref(x, params["wsc"], stride, 0, mxu_bf16)
        sc = _bn_ref(sc, params["gsc"], params["bsc"])
    else:
        sc = x
    return jnp.transpose(jax.nn.relu(y + sc), (0, 3, 1, 2))


# ---------------------------------- main ------------------------------------

def _check(out, x, params, stride):
    # Check against a reference that mirrors the kernel's bf16 MXU inputs.
    # Tolerance is widened slightly vs an all-f32 pipeline because the
    # inter-stage intermediates are now stored in bf16 (perf review item);
    # algorithmic errors (wrong im2col ordering, BN stats, padding) are O(1).
    ref_bf16 = residual_block_ref(x, params, stride=stride, mxu_bf16=True)
    assert bool(jnp.allclose(out, ref_bf16, atol=4e-2, rtol=2e-2)), \
        float(jnp.max(jnp.abs(out - ref_bf16)))
    # Loose sanity bound against the exact f32 module semantics.
    ref_f32 = residual_block_ref(x, params, stride=stride, mxu_bf16=False)
    assert bool(jnp.allclose(out, ref_f32, atol=1.5e-1, rtol=1.5e-1)), \
        float(jnp.max(jnp.abs(out - ref_f32)))


if __name__ == "__main__":
    key = jax.random.PRNGKey(0)
    kx, kp1, kp2 = jax.random.split(key, 3)

    x = jax.random.normal(kx, (2, 4, 16, 16), jnp.float32)    # NCHW, as PyTorch

    # Case 1: projection shortcut (inchannel=4 != outchannel=8), stride=1.
    params = init_params(kp1, 4, 8, stride=1)
    out = residual_block_forward(x, params, stride=1)
    jax.block_until_ready(out)
    assert out.shape == (2, 8, 16, 16), out.shape
    _check(out, x, params, stride=1)

    # Case 2: identity shortcut (inchannel == outchannel == 4, stride=1).
    params2 = init_params(kp2, 4, 4, stride=1)
    out2 = residual_block_forward(x, params2, stride=1)
    jax.block_until_ready(out2)
    assert out2.shape == (2, 4, 16, 16), out2.shape
    _check(out2, x, params2, stride=1)

    print("KERNEL_OK")
</pallas_src>

<mosaic_0001>
module attributes {stable_mosaic.version = 11 : i64} {
  func.func @kernel(%arg0: i32, %arg1: memref<1x18x24x128xbf16, #tpu.memory_space<vmem>>, %arg2: memref<1152x128xbf16, #tpu.memory_space<vmem>>, %arg3: memref<128x128xbf16, #tpu.memory_space<vmem>>, %arg4: memref<1x256x128xbf16, #tpu.memory_space<vmem>>, %arg5: memref<1x256x128xbf16, #tpu.memory_space<vmem>>, %arg6: memref<1x2x128xf32, #tpu.memory_space<vmem>>, %arg7: memref<1x2x128xf32, #tpu.memory_space<vmem>>, %arg8: memref<16x16x1152xbf16, #tpu.memory_space<vmem>>) attributes {dimension_semantics = [#tpu.dimension_semantics<parallel>], iteration_bounds = array<i64: 2>, scalar_prefetch = 0 : i64, scratch_operands = 1 : i64, tpu.core_type = #tpu.core_type<tc>, window_params = [{transform_indices = @transform_0, window_bounds = array<i64: 1, 18, 24, 128>}, {pipeline_mode = #tpu.pipeline_mode<synchronous>, transform_indices = @transform_1, window_bounds = array<i64: 1152, 128>}, {pipeline_mode = #tpu.pipeline_mode<synchronous>, transform_indices = @transform_2, window_bounds = array<i64: 128, 128>}, {transform_indices = @transform_3, window_bounds = array<i64: 1, 256, 128>}, {transform_indices = @transform_4, window_bounds = array<i64: 1, 256, 128>}, {transform_indices = @transform_5, window_bounds = array<i64: 1, 2, 128>}, {transform_indices = @transform_6, window_bounds = array<i64: 1, 2, 128>}]} {
    %c0 = arith.constant 0 : index
    %c0_0 = arith.constant 0 : index
    %c0_1 = arith.constant 0 : index
    %c0_2 = arith.constant 0 : index
    %0 = vector.load %arg1[%c0, %c0_0, %c0_1, %c0_2] : memref<1x18x24x128xbf16, #tpu.memory_space<vmem>>, vector<1x16x16x128xbf16>
    %1 = vector.shape_cast %0 : vector<1x16x16x128xbf16> to vector<16x16x128xbf16>
    %c0_3 = arith.constant 0 : index
    %c0_4 = arith.constant 0 : index
    %c0_5 = arith.constant 0 : index
    %2 = vector.load %arg8[%c0_3, %c0_4, %c0_5] : memref<16x16x1152xbf16, #tpu.memory_space<vmem>>, vector<16x16x128xbf16>
    tpu.vector_store %arg8[%c0_3, %c0_4, %c0_5], %1 {strides = array<i32>} : memref<16x16x1152xbf16, #tpu.memory_space<vmem>>, vector<16x16x128xbf16>,
    %c0_6 = arith.constant 0 : index
    %c0_7 = arith.constant 0 : index
    %c1 = arith.constant 1 : index
    %c0_8 = arith.constant 0 : index
    %3 = vector.load %arg1[%c0_6, %c0_7, %c1, %c0_8] : memref<1x18x24x128xbf16, #tpu.memory_space<vmem>>, vector<1x16x16x128xbf16>
    %4 = vector.shape_cast %3 : vector<1x16x16x128xbf16> to vector<16x16x128xbf16>
    %c0_9 = arith.constant 0 : index
    %c0_10 = arith.constant 0 : index
    %c128 = arith.constant 128 : index
    %5 = vector.load %arg8[%c0_9, %c0_10, %c128] : memref<16x16x1152xbf16, #tpu.memory_space<vmem>>, vector<16x16x128xbf16>
    tpu.vector_store %arg8[%c0_9, %c0_10, %c128], %4 {strides = array<i32>} : memref<16x16x1152xbf16, #tpu.memory_space<vmem>>, vector<16x16x128xbf16>,
    %c0_11 = arith.constant 0 : index
    %c0_12 = arith.constant 0 : index
    %c2 = arith.constant 2 : index
    %c0_13 = arith.constant 0 : index
    %6 = vector.load %arg1[%c0_11, %c0_12, %c2, %c0_13] : memref<1x18x24x128xbf16, #tpu.memory_space<vmem>>, vector<1x16x16x128xbf16>
    %7 = vector.shape_cast %6 : vector<1x16x16x128xbf16> to vector<16x16x128xbf16>
    %c0_14 = arith.constant 0 : index
    %c0_15 = arith.constant 0 : index
    %c256 = arith.constant 256 : index
    %8 = vector.load %arg8[%c0_14, %c0_15, %c256] : memref<16x16x1152xbf16, #tpu.memory_space<vmem>>, vector<16x16x128xbf16>
    tpu.vector_store %arg8[%c0_14, %c0_15, %c256], %7 {strides = array<i32>} : memref<16x16x1152xbf16, #tpu.memory_space<vmem>>, vector<16x16x128xbf16>,
    %c0_16 = arith.constant 0 : index
    %c1_17 = arith.constant 1 : index
    %c0_18 = arith.constant 0 : index
    %c0_19 = arith.constant 0 : index
    %9 = vector.load %arg1[%c0_16, %c1_17, %c0_18, %c0_19] : memref<1x18x24x128xbf16, #tpu.memory_space<vmem>>, vector<1x16x16x128xbf16>
    %10 = vector.shape_cast %9 : vector<1x16x16x128xbf16> to vector<16x16x128xbf16>
    %c0_20 = arith.constant 0 : index
    %c0_21 = arith.constant 0 : index
    %c384 = arith.constant 384 : index
    %11 = vector.load %arg8[%c0_20, %c0_21, %c384] : memref<16x16x1152xbf16, #tpu.memory_space<vmem>>, vector<16x16x128xbf16>
    tpu.vector_store %arg8[%c0_20, %c0_21, %c384], %10 {strides = array<i32>} : memref<16x16x1152xbf16, #tpu.memory_space<vmem>>, vector<16x16x128xbf16>,
    %c0_22 = arith.constant 0 : index
    %c1_23 = arith.constant 1 : index
    %c1_24 = arith.constant 1 : index
    %c0_25 = arith.constant 0 : index
    %12 = vector.load %arg1[%c0_22, %c1_23, %c1_24, %c0_25] : memref<1x18x24x128xbf16, #tpu.memory_space<vmem>>, vector<1x16x16x128xbf16>
    %13 = vector.shape_cast %12 : vector<1x16x16x128xbf16> to vector<16x16x128xbf16>
    %c0_26 = arith.constant 0 : index
    %c0_27 = arith.constant 0 : index
    %c512 = arith.constant 512 : index
    %14 = vector.load %arg8[%c0_26, %c0_27, %c512] : memref<16x16x1152xbf16, #tpu.memory_space<vmem>>, vector<16x16x128xbf16>
    tpu.vector_store %arg8[%c0_26, %c0_27, %c512], %13 {strides = array<i32>} : memref<16x16x1152xbf16, #tpu.memory_space<vmem>>, vector<16x16x128xbf16>,
    %c0_28 = arith.constant 0 : index
    %c1_29 = arith.constant 1 : index
    %c2_30 = arith.constant 2 : index
    %c0_31 = arith.constant 0 : index
    %15 = vector.load %arg1[%c0_28, %c1_29, %c2_30, %c0_31] : memref<1x18x24x128xbf16, #tpu.memory_space<vmem>>, vector<1x16x16x128xbf16>
    %16 = vector.shape_cast %15 : vector<1x16x16x128xbf16> to vector<16x16x128xbf16>
    %c0_32 = arith.constant 0 : index
    %c0_33 = arith.constant 0 : index
    %c640 = arith.constant 640 : index
    %17 = vector.load %arg8[%c0_32, %c0_33, %c640] : memref<16x16x1152xbf16, #tpu.memory_space<vmem>>, vector<16x16x128xbf16>
    tpu.vector_store %arg8[%c0_32, %c0_33, %c640], %16 {strides = array<i32>} : memref<16x16x1152xbf16, #tpu.memory_space<vmem>>, vector<16x16x128xbf16>,
    %c0_34 = arith.constant 0 : index
    %c2_35 = arith.constant 2 : index
    %c0_36 = arith.constant 0 : index
    %c0_37 = arith.constant 0 : index
    %18 = vector.load %arg1[%c0_34, %c2_35, %c0_36, %c0_37] : memref<1x18x24x128xbf16, #tpu.memory_space<vmem>>, vector<1x16x16x128xbf16>
    %19 = vector.shape_cast %18 : vector<1x16x16x128xbf16> to vector<16x16x128xbf16>
    %c0_38 = arith.constant 0 : index
    %c0_39 = arith.constant 0 : index
    %c768 = arith.constant 768 : index
    %20 = vector.load %arg8[%c0_38, %c0_39, %c768] : memref<16x16x1152xbf16, #tpu.memory_space<vmem>>, vector<16x16x128xbf16>
    tpu.vector_store %arg8[%c0_38, %c0_39, %c768], %19 {strides = array<i32>} : memref<16x16x1152xbf16, #tpu.memory_space<vmem>>, vector<16x16x128xbf16>,
    %c0_40 = arith.constant 0 : index
    %c2_41 = arith.constant 2 : index
    %c1_42 = arith.constant 1 : index
    %c0_43 = arith.constant 0 : index
    %21 = vector.load %arg1[%c0_40, %c2_41, %c1_42, %c0_43] : memref<1x18x24x128xbf16, #tpu.memory_space<vmem>>, vector<1x16x16x128xbf16>
    %22 = vector.shape_cast %21 : vector<1x16x16x128xbf16> to vector<16x16x128xbf16>
    %c0_44 = arith.constant 0 : index
    %c0_45 = arith.constant 0 : index
    %c896 = arith.constant 896 : index
    %23 = vector.load %arg8[%c0_44, %c0_45, %c896] : memref<16x16x1152xbf16, #tpu.memory_space<vmem>>, vector<16x16x128xbf16>
    tpu.vector_store %arg8[%c0_44, %c0_45, %c896], %22 {strides = array<i32>} : memref<16x16x1152xbf16, #tpu.memory_space<vmem>>, vector<16x16x128xbf16>,
    %c0_46 = arith.constant 0 : index
    %c2_47 = arith.constant 2 : index
    %c2_48 = arith.constant 2 : index
    %c0_49 = arith.constant 0 : index
    %24 = vector.load %arg1[%c0_46, %c2_47, %c2_48, %c0_49] : memref<1x18x24x128xbf16, #tpu.memory_space<vmem>>, vector<1x16x16x128xbf16>
    %25 = vector.shape_cast %24 : vector<1x16x16x128xbf16> to vector<16x16x128xbf16>
    %c0_50 = arith.constant 0 : index
    %c0_51 = arith.constant 0 : index
    %c1024 = arith.constant 1024 : index
    %26 = vector.load %arg8[%c0_50, %c0_51, %c1024] : memref<16x16x1152xbf16, #tpu.memory_space<vmem>>, vector<16x16x128xbf16>
    tpu.vector_store %arg8[%c0_50, %c0_51, %c1024], %25 {strides = array<i32>} : memref<16x16x1152xbf16, #tpu.memory_space<vmem>>, vector<16x16x128xbf16>,
    %c0_52 = arith.constant 0 : index
    %c0_53 = arith.constant 0 : index
    %c0_54 = arith.constant 0 : index
    %27 = vector.load %arg8[%c0_52, %c0_53, %c0_54] : memref<16x16x1152xbf16, #tpu.memory_space<vmem>>, vector<16x16x1152xbf16>
    %28 = vector.shape_cast %27 : vector<16x16x1152xbf16> to vector<256x1152xbf16>
    %c0_55 = arith.constant 0 : index
    %c0_56 = arith.constant 0 : index
    %29 = vector.load %arg2[%c0_55, %c0_56] : memref<1152x128xbf16, #tpu.memory_space<vmem>>, vector<1152x128xbf16>
    %cst = arith.constant dense<0.000000e+00> : vector<256x128xf32>
    %30 = tpu.matmul %28, %29, %cst {dimension_numbers = #tpu.dot_dimension_numbers<[1], [0], [0], [1], [0, 0, 1, 1], [], []>} : vector<256x1152xbf16>, vector<1152x128xbf16>, vector<256x128xf32> -> vector<256x128xf32>
    %31 = arith.truncf %30 : vector<256x128xf32> to vector<256x128xbf16>
    %c0_57 = arith.constant 0 : index
    %c0_58 = arith.constant 0 : index
    %c0_59 = arith.constant 0 : index
    %32 = vector.load %arg4[%c0_57, %c0_58, %c0_59] : memref<1x256x128xbf16, #tpu.memory_space<vmem>>, vector<1x256x128xbf16>
    %33 = vector.shape_cast %32 : vector<1x256x128xbf16> to vector<256x128xbf16>
    %34 = vector.shape_cast %31 : vector<256x128xbf16> to vector<1x256x128xbf16>
    tpu.vector_store %arg4[%c0_57, %c0_58, %c0_59], %34 {strides = array<i32>} : memref<1x256x128xbf16, #tpu.memory_space<vmem>>, vector<1x256x128xbf16>,
    %cst_60 = arith.constant dense<0.000000e+00> : vector<128xf32>
    %35 = vector.multi_reduction <add>, %30, %cst_60 [0] : vector<256x128xf32> to vector<128xf32>
    %36 = vector.shape_cast %35 : vector<128xf32> to vector<1x128xf32>
    %c0_61 = arith.constant 0 : index
    %c0_62 = arith.constant 0 : index
    %c0_63 = arith.constant 0 : index
    %37 = vector.load %arg6[%c0_61, %c0_62, %c0_63] : memref<1x2x128xf32, #tpu.memory_space<vmem>>, vector<1x1x128xf32>
    %38 = vector.shape_cast %37 : vector<1x1x128xf32> to vector<1x128xf32>
    %39 = vector.shape_cast %36 : vector<1x128xf32> to vector<1x1x128xf32>
    tpu.vector_store %arg6[%c0_61, %c0_62, %c0_63], %39 {strides = array<i32>} : memref<1x2x128xf32, #tpu.memory_space<vmem>>, vector<1x1x128xf32>,
    %40 = arith.mulf %30, %30 : vector<256x128xf32>
    %cst_64 = arith.constant dense<0.000000e+00> : vector<128xf32>
    %41 = vector.multi_reduction <add>, %40, %cst_64 [0] : vector<256x128xf32> to vector<128xf32>
    %42 = vector.shape_cast %41 : vector<128xf32> to vector<1x128xf32>
    %c0_65 = arith.constant 0 : index
    %c1_66 = arith.constant 1 : index
    %c0_67 = arith.constant 0 : index
    %43 = vector.load %arg6[%c0_65, %c1_66, %c0_67] : memref<1x2x128xf32, #tpu.memory_space<vmem>>, vector<1x1x128xf32>
    %44 = vector.shape_cast %43 : vector<1x1x128xf32> to vector<1x128xf32>
    %45 = vector.shape_cast %42 : vector<1x128xf32> to vector<1x1x128xf32>
    tpu.vector_store %arg6[%c0_65, %c1_66, %c0_67], %45 {strides = array<i32>} : memref<1x2x128xf32, #tpu.memory_space<vmem>>, vector<1x1x128xf32>,
    %c0_68 = arith.constant 0 : index
    %c0_69 = arith.constant 0 : index
    %c512_70 = arith.constant 512 : index
    %46 = vector.load %arg8[%c0_68, %c0_69, %c512_70] : memref<16x16x1152xbf16, #tpu.memory_space<vmem>>, vector<16x16x128xbf16>
    %47 = vector.shape_cast %46 : vector<16x16x128xbf16> to vector<256x128xbf16>
    %c0_71 = arith.constant 0 : index
    %c0_72 = arith.constant 0 : index
    %48 = vector.load %arg3[%c0_71, %c0_72] : memref<128x128xbf16, #tpu.memory_space<vmem>>, vector<128x128xbf16>
    %cst_73 = arith.constant dense<0.000000e+00> : vector<256x128xf32>
    %49 = tpu.matmul %47, %48, %cst_73 {dimension_numbers = #tpu.dot_dimension_numbers<[1], [0], [0], [1], [0, 0, 1, 1], [], []>} : vector<256x128xbf16>, vector<128x128xbf16>, vector<256x128xf32> -> vector<256x128xf32>
    %50 = arith.truncf %49 : vector<256x128xf32> to vector<256x128xbf16>
    %c0_74 = arith.constant 0 : index
    %c0_75 = arith.constant 0 : index
    %c0_76 = arith.constant 0 : index
    %51 = vector.load %arg5[%c0_74, %c0_75, %c0_76] : memref<1x256x128xbf16, #tpu.memory_space<vmem>>, vector<1x256x128xbf16>
    %52 = vector.shape_cast %51 : vector<1x256x128xbf16> to vector<256x128xbf16>
    %53 = vector.shape_cast %50 : vector<256x128xbf16> to vector<1x256x128xbf16>
    tpu.vector_store %arg5[%c0_74, %c0_75, %c0_76], %53 {strides = array<i32>} : memref<1x256x128xbf16, #tpu.memory_space<vmem>>, vector<1x256x128xbf16>,
    %cst_77 = arith.constant dense<0.000000e+00> : vector<128xf32>
    %54 = vector.multi_reduction <add>, %49, %cst_77 [0] : vector<256x128xf32> to vector<128xf32>
    %55 = vector.shape_cast %54 : vector<128xf32> to vector<1x128xf32>
    %c0_78 = arith.constant 0 : index
    %c0_79 = arith.constant 0 : index
    %c0_80 = arith.constant 0 : index
    %56 = vector.load %arg7[%c0_78, %c0_79, %c0_80] : memref<1x2x128xf32, #tpu.memory_space<vmem>>, vector<1x1x128xf32>
    %57 = vector.shape_cast %56 : vector<1x1x128xf32> to vector<1x128xf32>
    %58 = vector.shape_cast %55 : vector<1x128xf32> to vector<1x1x128xf32>
    tpu.vector_store %arg7[%c0_78, %c0_79, %c0_80], %58 {strides = array<i32>} : memref<1x2x128xf32, #tpu.memory_space<vmem>>, vector<1x1x128xf32>,
    %59 = arith.mulf %49, %49 : vector<256x128xf32>
    %cst_81 = arith.constant dense<0.000000e+00> : vector<128xf32>
    %60 = vector.multi_reduction <add>, %59, %cst_81 [0] : vector<256x128xf32> to vector<128xf32>
    %61 = vector.shape_cast %60 : vector<128xf32> to vector<1x128xf32>
    %c0_82 = arith.constant 0 : index
    %c1_83 = arith.constant 1 : index
    %c0_84 = arith.constant 0 : index
    %62 = vector.load %arg7[%c0_82, %c1_83, %c0_84] : memref<1x2x128xf32, #tpu.memory_space<vmem>>, vector<1x1x128xf32>
    %63 = vector.shape_cast %62 : vector<1x1x128xf32> to vector<1x128xf32>
    %64 = vector.shape_cast %61 : vector<1x128xf32> to vector<1x1x128xf32>
    tpu.vector_store %arg7[%c0_82, %c1_83, %c0_84], %64 {strides = array<i32>} : memref<1x2x128xf32, #tpu.memory_space<vmem>>, vector<1x1x128xf32>,
    return
  }
  func.func @transform_0(%arg0: i32) -> (i32, i32, i32, i32) {
    %c0_i32 = arith.constant 0 : i32
    %c0_i32_0 = arith.constant 0 : i32
    %c0_i32_1 = arith.constant 0 : i32
    %c0_i32_2 = arith.constant 0 : i32
    return %arg0, %c0_i32, %c0_i32_0, %c0_i32_1 : i32, i32, i32, i32
  }
  func.func @transform_1(%arg0: i32) -> (i32, i32) {
    %c0_i32 = arith.constant 0 : i32
    %c0_i32_0 = arith.constant 0 : i32
    %c0_i32_1 = arith.constant 0 : i32
    return %c0_i32, %c0_i32_0 : i32, i32
  }
  func.func @transform_2(%arg0: i32) -> (i32, i32) {
    %c0_i32 = arith.constant 0 : i32
    %c0_i32_0 = arith.constant 0 : i32
    %c0_i32_1 = arith.constant 0 : i32
    return %c0_i32, %c0_i32_0 : i32, i32
  }
  func.func @transform_3(%arg0: i32) -> (i32, i32, i32) {
    %c0_i32 = arith.constant 0 : i32
    %c0_i32_0 = arith.constant 0 : i32
    %c0_i32_1 = arith.constant 0 : i32
    return %arg0, %c0_i32, %c0_i32_0 : i32, i32, i32
  }
  func.func @transform_4(%arg0: i32) -> (i32, i32, i32) {
    %c0_i32 = arith.constant 0 : i32
    %c0_i32_0 = arith.constant 0 : i32
    %c0_i32_1 = arith.constant 0 : i32
    return %arg0, %c0_i32, %c0_i32_0 : i32, i32, i32
  }
  func.func @transform_5(%arg0: i32) -> (i32, i32, i32) {
    %c0_i32 = arith.constant 0 : i32
    %c0_i32_0 = arith.constant 0 : i32
    %c0_i32_1 = arith.constant 0 : i32
    return %arg0, %c0_i32, %c0_i32_0 : i32, i32, i32
  }
  func.func @transform_6(%arg0: i32) -> (i32, i32, i32) {
    %c0_i32 = arith.constant 0 : i32
    %c0_i32_0 = arith.constant 0 : i32
    %c0_i32_1 = arith.constant 0 : i32
    return %arg0, %c0_i32, %c0_i32_0 : i32, i32, i32
  }
}

</mosaic_0001>

<bundles_post_ra>
// kernel: tpu_custom_call.1
= control target key start
LH: loop header
LB: loop body
LE: loop exit
PB: predicated region body
PF: predicated region fallthrough
CT: control target
= control target key end

     0   :  { %12 = vsyncpa [#allocation4], 0  ;;  %s8512_s0 = inlined_call_operand.hbm [shape: bf16[2,18,24,128], index: 0, kind: input, shape index: {}]   ;;  %s8513_s1 = inlined_call_operand.hbm [shape: bf16[1152,128], index: 1, kind: input, shape index: {}]   ;;  %s8514_s2 = inlined_call_operand.hbm [shape: bf16[128,128], index: 2, kind: input, shape index: {}]   ;;  %s8515_s3 = inlined_call_operand.hbm [shape: bf16[2,256,128], index: 3, kind: output, shape index: {0}]   ;;  %s8516_s4 = inlined_call_operand.hbm [shape: bf16[2,256,128], index: 4, kind: output, shape index: {1}]   ;;  %s8517_s5 = inlined_call_operand.hbm [shape: f32[2,2,128], index: 5, kind: output, shape index: {2}]   ;;  %s8518_s6 = inlined_call_operand.hbm [shape: f32[2,2,128], index: 6, kind: output, shape index: {3}]  }
   0x1   :  { %14 = vsyncpa [#allocation4 + $0x1], 0 }
   0x2   :  { %15 = vsyncpa [#allocation7], 0 }
   0x3   :  { %16 = vsyncpa [#allocation5], 0 }
   0x4   :  { %18 = vsyncpa [#allocation5 + $0x1], 0 }
   0x5   :  { %19 = vsyncpa [#allocation11], 0 }
   0x6   :  { %21 = vsyncpa [#allocation11 + $0x1], 0 }
   0x7   :  { %22 = vsyncpa [#allocation14], 0 }
   0x8   :  { %24 = vsyncpa [#allocation14 + $0x1], 0  ;;  %s7508_s21 = smov 0   ;;  %s7510_s22 = smov 0  }
   0x9   :  { %s7512_s23 = smov 0   ;;  %s7514_s24 = smov 0  }
   0xa LB: > { %s7529_s25 = sadd.s32 4294967295, %s7460_s24   ;;  %s8520_s26 = sadd.s32 4294967294, %s7460_s24   ;;  %s7460_s24 = sphi %s7514_s24, %s8544_s24   ;;  %s7456_s23 = sphi %s7512_s23, %s8543_s23   ;;  %s7452_s22 = sphi %s7510_s22, %s8542_s22   ;;  %s7448_s21 = sphi %s7508_s21, %s8541_s21  }
   0xb   : > { %p50_p0 = scmp.ne.s32.totalorder %s7452_s22, %s7448_s21  ;;  %p8519_p1 = scmp.eq.s32.totalorder %s7529_s25, 0 }
   0xc   : > { %p122_p3 = scmp.eq.s32.totalorder %s8520_s26, 1  ;;  %p5291_p5 = scmp.ge.s32.totalorder %s7460_s24, 1 }
   0xd   : > { %p7540_p4 = por %p8519_p1, %p50_p0  ;;  %p207_p7 = scmp.lt.s32.totalorder %s7460_s24, 3 }
   0xe   : > { %p7545_p6 = por %p122_p3, %p50_p0  ;;  %s7462_s30 = smov [#allocation6]  }
   0xf   : > { %s8525_s27 = scalar_select %p7540_p4, 1, 0 }
  0x10   : > { %s8526_s28 = scalar_select %p7545_p6, 1, 0 }
  0x11   : > { %p7550_p8 = pnand %p5291_p5, %p207_p7  ;;  %s219_s7 = sshll.u32 %s7462_s30, 4  ;;  %s7554_s7 = int_to_ptr.vmem [resolvable:$true] %s219_s7 }
  0x12   : > { %s7463_s9 = smov [#allocation8]   ;;  %s7212_s13 = scalar_lea.hbm %s8513_s1, 9216 }
  0x13   : > { %p6824_p9 = pneg %p7550_p8  ;;  %s232_s10 = sshll.u32 %s7463_s9, 4  ;;  %s7565_s10 = int_to_ptr.vmem [resolvable:$true] %s232_s10 }
  0x14   : > { %p7213_p12 = scmp.ne.s32.totalorder %s8513_s1, %s7212_s13  ;;  %p7219_p5 = scmp.lt.u32.totalorder %s7212_s13, %s8513_s1 }
  0x15   : > { %p7561_p11 = pnand %p6824_p9, %p8519_p1 }
  0x17   : > { %p7214_p13 = pneg %p7561_p11 }
  0x19   : > { %p7215_p0 = pnand %p7214_p13, %p7213_p12 }
  0x1b   : > { %p7216_p3 = pneg %p7215_p0 }
  0x1d   : > { %p7221_p7 = pnand %p7219_p5, %p7216_p3 }
  0x1f   : > { %7224 = shalt.err (!%p7221_p7)
}
  0x20   : > { %s7225_s18 = scalar_lea.vmem %s7554_s7, 9216  ;;  %p7233_p2 = scmp.lt.s32.totalorder %s7554_s7, %s7554_s7 }
  0x21   : > { %p7226_p9 = scmp.ne.s32.totalorder %s7554_s7, %s7225_s18  ;;  %p7234_p12 = scmp.lt.s32.totalorder %s7225_s18, %s7225_s18 }
  0x23   : > { %p7228_p10 = pnand %p7226_p9, %p7214_p13  ;;  %p7235_p0 = por %p7234_p12, %p7233_p2 }
  0x25   : > { %p7229_p1 = pneg %p7228_p10 }
  0x27   : > { %p7236_p6 = pnand %p7235_p0, %p7229_p1 }
  0x29   : > { %7239 = shalt.err (!%p7236_p6)
}
  0x2a   : > { %s8521_s19 = smov 64   ;;  %s8522_s20 = smov 4  }
  0x2b   : > { %6827 = dma.hbm_to_vmem [thread:$0]  (!%p7561_p11), %s8513_s1, 9216, %s7554_s7, [#allocation7], %s8521_s19, %s8521_s19, %s8522_s20  }
  0x2c   : > { %s7240_s13 = scalar_lea.hbm %s8514_s2, 1024 }
  0x2d   : > { %p7241_p1 = scmp.ne.s32.totalorder %s8514_s2, %s7240_s13  ;;  %p7247_p10 = scmp.lt.u32.totalorder %s7240_s13, %s8514_s2 }
  0x2f   : > { %p7243_p2 = pnand %p7241_p1, %p7214_p13 }
  0x31   : > { %p7244_p6 = pneg %p7243_p2 }
  0x33   : > { %p7249_p3 = pnand %p7247_p10, %p7244_p6 }
  0x35   : > { %7252 = shalt.err (!%p7249_p3)
}
  0x36   : > { %s7253_s7 = scalar_lea.vmem %s7565_s10, 1024  ;;  %p7261_p12 = scmp.lt.s32.totalorder %s7565_s10, %s7565_s10 }
  0x37   : > { %p7254_p5 = scmp.ne.s32.totalorder %s7565_s10, %s7253_s7  ;;  %p7262_p0 = scmp.lt.s32.totalorder %s7253_s7, %s7253_s7 }
  0x39   : > { %p7256_p7 = pnand %p7254_p5, %p7214_p13  ;;  %p7263_p1 = por %p7262_p0, %p7261_p12 }
  0x3b   : > { %p7257_p9 = pneg %p7256_p7 }
  0x3d   : > { %p7264_p2 = pnand %p7263_p1, %p7257_p9 }
  0x3f   : > { %7267 = shalt.err (!%p7264_p2)
}
  0x40   : > { %6830 = dma.hbm_to_vmem [thread:$0]  (!%p7561_p11), %s8514_s2, 1024, %s7565_s10, [#allocation7], %s8521_s19, %s8521_s19, %s8522_s20  }
  0x41   : > { %s7626_s8 = sadd.s32 1, %s7460_s24   ;;  %s37_s9 = sadd.s32 1, %s7456_s23 }
  0x42   : > { %s34_s11 = ssub.s32 %s7460_s24, %s7626_s8  ;;  %p44_p13 = scmp.ne.s32.totalorder %s7456_s23, %s7452_s22 }
  0x43   : > { %p35_p6 = scmp.eq.s32.totalorder %s34_s11, 0  ;;  %p45_p10 = scmp.eq.s32.totalorder %s7460_s24, 0 }
  0x44   : > { %p8529_p3 = scmp.eq.s32.totalorder %s7529_s25, 1  ;;  %p6850_p7 = scmp.lt.s32.totalorder %s7460_s24, 2 }
  0x45   : > { %s7642_s13 = scalar_select %p35_p6, %s7456_s23, %s37_s9  }
  0x46   : > { %p7636_p5 = por %p8529_p3, %p44_p13  ;;  %p46_p9 = por %p45_p10, %p44_p13 }
  0x47   : > { %s246_s14 = sand.u32 1, %s7456_s23   ;;  %s6804_s10 = smul.u32 3456, %s7460_s24 }
  0x48   : > { %s8530_s12 = scalar_select %p7636_p5, 1, 0 }
  0x49   : > { %s6803_s15 = smul.u32 216, %s246_s14  ;;  %p7646_p11 = pnand %p6850_p7, %p46_p9 }
  0x4a   : > { %s7653_s18 = scalar_lea.hbm %s8512_s0, %s6804_s10  ;;  %s7657_s11 = scalar_lea.sflag [#allocation4], %s246_s14 }
  0x4b   : > { %s250_s30 = scalar_lea.vmem [#allocation3], %s6803_s15  ;;  %s7268_s26 = scalar_lea.hbm %s7653_s18, 3456 }
  0x4c   : > { %s257_s9 = sshll.u32 %s250_s30, 4  ;;  %p7269_p12 = scmp.ne.s32.totalorder %s7653_s18, %s7268_s26  ;;  %s7655_s9 = int_to_ptr.vmem [resolvable:$true] %s257_s9 }
  0x4d   : > { %p7270_p0 = pneg %p7646_p11  ;;  %s7273_s7 = scalar_lea.hbm %s8512_s0, 6912 }
  0x4e   : > { %p7274_p13 = scmp.lt.u32.totalorder %s7653_s18, %s8512_s0  ;;  %p7275_p6 = scmp.lt.u32.totalorder %s7273_s7, %s7268_s26 }
  0x4f   : > { %p7271_p1 = pnand %p7270_p0, %p7269_p12  ;;  %p7277_p3 = scmp.lt.u32.totalorder %s7268_s26, %s7653_s18 }
  0x50   : > { %p7276_p10 = por %p7275_p6, %p7274_p13 }
  0x51   : > { %p7272_p2 = pneg %p7271_p1 }
  0x52   : > { %p7278_p7 = por %p7277_p3, %p7276_p10 }
  0x54   : > { %p7279_p9 = pnand %p7278_p7, %p7272_p2 }
  0x56   : > { %7282 = shalt.err (!%p7279_p9)
}
  0x57   : > { %s7283_s14 = scalar_lea.vmem %s7655_s9, 3456  ;;  %s7466_s15 = smov [#allocation3]  }
  0x58   : > { %p7284_p12 = scmp.ne.s32.totalorder %s7655_s9, %s7283_s14  ;;  %s7288_s30 = sshll.u32 %s7466_s15, 4  ;;  %s7289_s30 = int_to_ptr.vmem [resolvable:$false] %s7288_s30 }
  0x59   : > { %s7290_s19 = scalar_lea.vmem %s7289_s30, 6912  ;;  %p7291_p4 = scmp.lt.s32.totalorder %s7655_s9, %s7289_s30 }
  0x5a   : > { %p7286_p1 = pnand %p7284_p12, %p7270_p0  ;;  %p7292_p13 = scmp.lt.s32.totalorder %s7290_s19, %s7283_s14 }
  0x5c   : > { %p7287_p5 = pneg %p7286_p1  ;;  %p7293_p6 = por %p7292_p13, %p7291_p4 }
  0x5e   : > { %p7294_p10 = pnand %p7293_p6, %p7287_p5 }
  0x60   : > { %7297 = shalt.err (!%p7294_p10)
}
  0x61   : > { %s8532_s26 = smov 4   ;;  %s8533_s20 = smov 64  }
  0x62   : > { %6834 = dma.hbm_to_vmem [thread:$0]  (!%p7646_p11), %s7653_s18, 3456, %s7655_s9, %s7657_s11, %s8533_s20, %s8533_s20, %s8532_s26  }
  0x63   : > { %269 = sbr.rel (%p7550_p8) target bundleno = 773 (0x305), region = 32  ;;  %s7691_s10 = sand.u32 (!%p7550_p8), 1, %s7452_s22  }
  0x64   : > { %s6805_s17 = smul.u32 (!%p7550_p8), 216, %s7691_s10  ;;  %s272_s7 = scalar_lea.sflag (!%p7550_p8), [#allocation4], %s7691_s10 }
  0x65   : > { %p8534_p4 = scmp.ne.s32.totalorder (!%p7550_p8), %s8525_s27, 0 }
  0x66   : > { %s7695_s14 = scalar_lea.vmem (!%p7550_p8), [#allocation3], %s6805_s17 }
  0x6a   : > { %7427 = dma.done.wait (%p8534_p4), %s272_s7, 3456  }
  0x6b   : > { %7429 = vsyncadd (%p8534_p4), %s272_s7, 4294963840  ;;  %p8535_p5 = scmp.eq.s32.totalorder %s7529_s25, 0 }
  0x6d   : > { %7431 = dma.done.wait (%p8535_p5), [#allocation7], 10240   ;;  %p8536_p8 = pmov %p8535_p5 }
  0x6e   : > { %v6892_v0 = vld [vmem:[#allocation6 + $0x40] sm:$0xff]   ;;  %v6896_v4 = vld [vmem:[#allocation6 + $0x48] sm:$0xff]   ;;  %v6900_v8 = vld [vmem:[#allocation6 + $0x50] sm:$0xff]   ;;  %vm648_vm0 = vsmask.f32 7424  ;;  %vm1049_vm1 = vcmask 1046528  }
  0x6f   : > { %7433 = vsyncadd (%p8536_p8), [#allocation7], 4294957056  ;;  %v6893_v1 = vld [vmem:[#allocation6 + $0xc0] sm:$0xff]   ;;  %6211 = vmatprep.subr.bf16.mxu0 %v6892_v0  ;;  %v6897_v5 = vld [vmem:[#allocation6 + $0xc8] sm:$0xff]   ;;  %s5299_s27 = sshll.u32 %s7691_s10, 7  ;;  %s5039_s18 = sand.u32 1, %s7529_s25  }
  0x70   : > { %v6894_v2 = vld [vmem:[#allocation6] sm:$0xff]   ;;  %6323 = vmatprep.subr.bf16.mxu1 %v6893_v1  ;;  %v6898_v6 = vld [vmem:[#allocation6 + $0x8] sm:$0xff]   ;;  %v6901_v9 = vld [vmem:[#allocation6 + $0xd0] sm:$0xff]   ;;  %s8271_s29 = scalar_lea.vmem [#allocation10], %s5299_s27  ;;  %s8278_s16 = scalar_lea.vmem [#allocation9], %s5299_s27 }
  0x71   : > { %v6895_v3 = vld [vmem:[#allocation6 + $0x80] sm:$0xff]   ;;  %6212 = vmatpush3.bf16.msra.mxu0 %v6894_v2  ;;  %v6899_v7 = vld [vmem:[#allocation6 + $0x88] sm:$0xff]   ;;  %v6902_v10 = vld [vmem:[#allocation6 + $0x10] sm:$0xff]   ;;  %s6019_s9 = sshll.u32 %s7529_s25, 11  ;;  %s5063_s11 = sshll.u32 %s8278_s16, 4  ;;  %s8350_s11 = int_to_ptr.vmem [resolvable:$true] %s5063_s11 }
  0x72   : > { %6324 = vmatpush3.bf16.msra.mxu1 %v6895_v3  ;;  %6213 = vmatprep.subr.bf16.mxu0 %v6896_v4  ;;  %v6903_v11 = vld [vmem:[#allocation6 + $0x90] sm:$0xff]   ;;  %v6904_v12 = vld [vmem:[#allocation6 + $0x58] sm:$0xff]   ;;  %v6908_v16 = vld [vmem:[#allocation6 + $0x60] sm:$0xff]   ;;  %s5079_s15 = sshll.u32 %s8271_s29, 4  ;;  %s8348_s26 = scalar_lea.hbm %s8515_s3, %s6019_s9  ;;  %s8358_s15 = int_to_ptr.vmem [resolvable:$true] %s5079_s15 }
  0x73   : > { %6325 = vmatprep.subr.bf16.mxu1 %v6897_v5  ;;  %v6905_v13 = vld [vmem:[#allocation6 + $0xd8] sm:$0xff]   ;;  %v6909_v17 = vld [vmem:[#allocation6 + $0xe0] sm:$0xff]   ;;  %v6912_v20 = vld [vmem:[#allocation6 + $0x68] sm:$0xff]   ;;  %s8356_s7 = scalar_lea.hbm %s8516_s4, %s6019_s9  ;;  %s7298_s27 = scalar_lea.vmem %s8350_s11, 2048 }
  0x74   : > { %v6906_v14 = vld [vmem:[#allocation6 + $0x18] sm:$0xff]   ;;  %v6910_v18 = vld [vmem:[#allocation6 + $0x20] sm:$0xff]   ;;  %v6913_v21 = vld [vmem:[#allocation6 + $0xe8] sm:$0xff]   ;;  %p7299_p11 = scmp.ne.s32.totalorder %s8350_s11, %s7298_s27  ;;  %p8537_p0 = scmp.ne.s32.totalorder %s8530_s12, 0 }
  0x75   : > { %6214 = vmatpush3.bf16.msra.mxu0 %v6898_v6  ;;  %v6907_v15 = vld [vmem:[#allocation6 + $0x98] sm:$0xff]   ;;  %v6911_v19 = vld [vmem:[#allocation6 + $0xa0] sm:$0xff]   ;;  %v6914_v22 = vld [vmem:[#allocation6 + $0x28] sm:$0xff]   ;;  %s7467_s9 = smov [#allocation9]  }
  0x76   : > { %6326 = vmatpush3.bf16.msra.mxu1 %v6899_v7  ;;  %6215 = vmatprep.subr.bf16.mxu0 %v6900_v8  ;;  %v6915_v23 = vld [vmem:[#allocation6 + $0xa8] sm:$0xff]   ;;  %v6916_v24 = vld [vmem:[#allocation6 + $0x70] sm:$0xff]   ;;  %v6920_v28 = vld [vmem:[#allocation6 + $0x78] sm:$0xff]   ;;  %p7300_p2 = pnand %p7299_p11, %p8537_p0  ;;  %s7302_s30 = sshll.u32 %s7467_s9, 4  ;;  %s7303_s30 = int_to_ptr.vmem [resolvable:$false] %s7302_s30 }
  0x77   : > { %6327 = vmatprep.subr.bf16.mxu1 %v6901_v9  ;;  %v6917_v25 = vld [vmem:[#allocation6 + $0xf0] sm:$0xff]   ;;  %v6921_v29 = vld [vmem:[#allocation6 + $0xf8] sm:$0xff]   ;;  %v6930_v43 = vld [vmem:[#allocation6 + $0x140] sm:$0xff]   ;;  %s7304_s19 = scalar_lea.vmem %s7303_s30, 4096  ;;  %p7305_p7 = scmp.lt.s32.totalorder %s8350_s11, %s7303_s30 }
  0x78   : > { %v6918_v26 = vld [vmem:[#allocation6 + $0x30] sm:$0xff]   ;;  %v6922_v30 = vld [vmem:[#allocation6 + $0x38] sm:$0xff]   ;;  %v6931_v46 = vld [vmem:[#allocation6 + $0x100] sm:$0xff]   ;;  %p7301_p3 = pneg %p7300_p2  ;;  %p7306_p9 = scmp.lt.s32.totalorder %s7304_s19, %s7298_s27 }
  0x79   : > { %6216 = vmatpush3.bf16.msra.mxu0 %v6902_v10  ;;  %v6919_v27 = vld [vmem:[#allocation6 + $0xb0] sm:$0xff]   ;;  %v6923_v31 = vld [vmem:[#allocation6 + $0xb8] sm:$0xff]   ;;  %v6932_v48 = vld [vmem:[#allocation6 + $0x1c0] sm:$0xff]  }
  0x7a   : > { %6328 = vmatpush3.bf16.msra.mxu1 %v6903_v11  ;;  %6217 = vmatprep.subr.bf16.mxu0 %v6904_v12  ;;  %v6924_v32 = vld [vmem:[%s7695_s14] sm:$0xff]   ;;  %v6925_v33 = vld [vmem:[%s7695_s14 + $0x8] ss:$0 sps:$4 sm:$0x11]   ;;  %v6926_v34 = vld [vmem:[%s7695_s14 + $0xc] sm:$0xff]   ;;  %p7307_p12 = por %p7306_p9, %p7305_p7 }
  0x7b   : > { %6329 = vmatprep.subr.bf16.mxu1 %v6905_v13  ;;  %v650_v35 = vshrl.u32 %v6924_v32, 16  ;;  %v652_v36 = vshll.u32 %v6924_v32, 16  ;;  %v657_v37 = vshll.u32 %v6925_v33, 16  ;;  %3645 = vmatprep.mubr.bf16.mxu1 %v6926_v34  ;;  %v6927_v40 = vld [vmem:[%s7695_s14] sm:$0xff]   ;;  %v6933_v50 = vld [vmem:[#allocation6 + $0x180] sm:$0xff]  }
  0x7c   : > { %v6928_v41 = vld [vmem:[%s7695_s14] sm:$0xfe]   ;;  %v6929_v42 = vld [vmem:[%s7695_s14 + $0x8] ss:$0 sps:$4 sm:$0x11]   ;;  %v6934_v52 = vld [vmem:[%s7695_s14 + $0xc] sm:$0xff]   ;;  %p7308_p1 = pnand %p7307_p12, %p7301_p3 }
  0x7d   : > { %6218 = vmatpush3.bf16.msra.mxu0 %v6906_v14  ;;  %v654_v38 = vrot.slane %v652_v36, 1  ;;  %v659_v39 = vrot.slane %v657_v37, 1  ;;  %v1050_v45 = vrot.slane %v6928_v41, 1  ;;  %v1051_v47 = vrot.slane %v6929_v42, 1  ;;  %v6936_v54 = vld [vmem:[%s7695_s14 + $0x18] sm:$0xff]   ;;  %v6937_v60 = vld [vmem:[%s7695_s14 + $0xc] sm:$0xff]  }
  0x7e   : > { %6330 = vmatpush3.bf16.msra.mxu1 %v6907_v15  ;;  %6219 = vmatprep.subr.bf16.mxu0 %v6908_v16  ;;  %v6935_v53 = vld [vmem:[%s7695_s14 + $0x14] ss:$0 sps:$4 sm:$0x11]   ;;  %v662_v55 = vshrl.u32 %v6934_v52, 16  ;;  %v664_v56 = vshll.u32 %v6934_v52, 16  ;;  %v6940_v63 = vld [vmem:[%s7695_s14 + $0x18] sm:$0xff]  }
  0x7f   : > { %6331 = vmatprep.subr.bf16.mxu1 %v6909_v17  ;;  %v655_v44 = vor.u32 %v654_v38, %v650_v35  ;;  %v1052_v51 = vsel %vm1049_vm1, %v1050_v45, %v1051_v47  ;;  %v669_v57 = vshll.u32 %v6935_v53, 16  ;;  %v6938_v61 = vld [vmem:[%s7695_s14 + $0xc] sm:$0xfe]   ;;  %v6939_v62 = vld [vmem:[%s7695_s14 + $0x14] ss:$0 sps:$4 sm:$0x11]  }
  0x80   : > { %v666_v58 = vrot.slane %v664_v56, 1  ;;  %v1053_v1 = vrot.slane %v6938_v61, 1  ;;  %v6941_v2 = vld [vmem:[%s7695_s14 + $0x20] ss:$0 sps:$4 sm:$0x11]   ;;  %v1054_v3 = vrot.slane %v6939_v62, 1 }
  0x81   : > { %6220 = vmatpush3.bf16.msra.mxu0 %v6910_v18  ;;  %v660_v49 = vsel %vm648_vm0, %v655_v44, %v659_v39  ;;  %v671_v59 = vrot.slane %v669_v57, 1  ;;  %v674_v4 = vshrl.u32 %v6940_v63, 16  ;;  %v676_v5 = vshll.u32 %v6940_v63, 16  ;;  %v6942_v6 = vld [vmem:[%s7695_s14 + $0x24] sm:$0xff]   ;;  %v6944_v15 = vld [vmem:[%s7695_s14 + $0x18] sm:$0xfe]  }
  0x82   : > { %6332 = vmatpush3.bf16.msra.mxu1 %v6911_v19  ;;  %6221 = vmatprep.subr.bf16.mxu0 %v6912_v20  ;;  %v667_v0 = vor.u32 %v666_v58, %v662_v55  ;;  %v681_v8 = vshll.u32 %v6941_v2, 16  ;;  %v1055_v9 = vsel %vm1049_vm1, %v1053_v1, %v1054_v3  ;;  %v6946_v11 = vld [vmem:[#allocation6 + $0x148] sm:$0xff]   ;;  %v1056_v20 = vrot.slane %v6944_v15, 1  ;;  %v6955_v34 = vld [vmem:[%s7695_s14 + $0x2c] ss:$0 sps:$4 sm:$0x11]  }
  0x83   : > { %6333 = vmatprep.subr.bf16.mxu1 %v6913_v21  ;;  %3484 = vmatprep.mubr.bf16.mxu0 %v660_v49  ;;  %v678_v10 = vrot.slane %v676_v5, 1  ;;  %v6947_v13 = vld [vmem:[#allocation6 + $0x108] sm:$0xff]   ;;  %v6956_v35 = vld [vmem:[%s7695_s14 + $0x30] sm:$0xff]   ;;  %v1060_v39 = vrot.slane %v6955_v34, 1  ;;  %v6962_v47 = vld [vmem:[#allocation6 + $0x150] sm:$0xff]  }
  0x84   : > { %v672_v7 = vsel %vm648_vm0, %v667_v0, %v671_v59  ;;  %v683_v12 = vrot.slane %v681_v8, 1  ;;  %v6945_v16 = vld [vmem:[%s7695_s14 + $0x20] ss:$0 sps:$4 sm:$0x11]   ;;  %v6943_v18 = vld [vmem:[%s7695_s14 + $0x18] sm:$0xff]   ;;  %v6953_v32 = vld [vmem:[%s7695_s14 + $0x24] sm:$0xff]  }
  0x85   : > { %6222 = vmatpush3.bf16.msra.mxu0 %v6914_v22  ;;  %v679_v14 = vor.u32 %v678_v10, %v674_v4  ;;  %v6948_v17 = vld [vmem:[#allocation6 + $0x1c8] sm:$0xff]   ;;  %v1057_v21 = vrot.slane %v6945_v16, 1  ;;  %v698_v41 = vshrl.u32 %v6956_v35, 16  ;;  %v700_v42 = vshll.u32 %v6956_v35, 16  ;;  %v6959_v52 = vld [vmem:[%s7695_s14 + $0x30] sm:$0xff]   ;;  %v6963_v56 = vld [vmem:[#allocation6 + $0x110] sm:$0xff]  }
  0x86   : > { %6334 = vmatpush3.bf16.msra.mxu1 %v6915_v23  ;;  %6223 = vmatprep.subr.bf16.mxu0 %v6916_v24  ;;  %v6949_v23 = vld [vmem:[#allocation6 + $0x188] sm:$0xff]   ;;  %v6964_v57 = vld [vmem:[#allocation6 + $0x1d0] sm:$0xff]  }
  0x87   : > { %6335 = vmatprep.subr.bf16.mxu1 %v6917_v25  ;;  %v684_v19 = vsel %vm648_vm0, %v679_v14, %v683_v12  ;;  %v1058_v22 = vsel %vm1049_vm1, %v1056_v20, %v1057_v21  ;;  %v6950_v24 = vld [vmem:[%s7695_s14 + $0x24] sm:$0xff]   ;;  %v6951_v25 = vld [vmem:[%s7695_s14 + $0x2c] ss:$0 sps:$4 sm:$0x11]   ;;  %v6958_v38 = vld [vmem:[%s7695_s14 + $0x3c] sm:$0xff]   ;;  %v702_v45 = vrot.slane %v700_v42, 1 }
  0x88   : > { %v6954_v33 = vld [vmem:[%s7695_s14 + $0x24] sm:$0xfe]   ;;  %v6967_v61 = vld [vmem:[%s7695_s14 + $0x44] ss:$0 sps:$4 sm:$0x11]   ;;  %v6969_v3 = vld [vmem:[%s7695_s14 + $0x3c] sm:$0xff]  }
  0x89   : > { %6224 = vmatpush3.bf16.msra.mxu0 %v6918_v26  ;;  %v6952_v26 = vld [vmem:[%s7695_s14 + $0x30] sm:$0xff]   ;;  %v1059_v37 = vrot.slane %v6954_v33, 1  ;;  %v6965_v59 = vld [vmem:[#allocation6 + $0x190] sm:$0xff]   ;;  %v717_v1 = vshll.u32 %v6967_v61, 16 }
  0x8a   : > { %6336 = vmatpush3.bf16.msra.mxu1 %v6919_v27  ;;  %6225 = vmatprep.subr.bf16.mxu0 %v6920_v28  ;;  %v686_v27 = vshrl.u32 %v6950_v24, 16  ;;  %v688_v28 = vshll.u32 %v6950_v24, 16  ;;  %v6968_v62 = vld [vmem:[%s7695_s14 + $0x48] sm:$0xff]   ;;  %v6974_v15 = vld [vmem:[%s7695_s14 + $0x54] sm:$0xff]  }
  0x8b   : > { %6337 = vmatprep.subr.bf16.mxu1 %v6921_v29  ;;  %v693_v29 = vshll.u32 %v6951_v25, 16  ;;  %v1061_v44 = vsel %vm1049_vm1, %v1059_v37, %v1060_v39  ;;  %v6972_v4 = vld [vmem:[%s7695_s14 + $0x48] sm:$0xff]   ;;  %v719_v5 = vrot.slane %v717_v1, 1  ;;  %v6977_v25 = vld [vmem:[%s7695_s14 + $0x50] ss:$0 sps:$4 sm:$0x11]  }
  0x8c   : > { %v722_v12 = vshrl.u32 %v6972_v4, 16  ;;  %v724_v14 = vshll.u32 %v6972_v4, 16  ;;  %v6976_v21 = vld [vmem:[%s7695_s14 + $0x48] sm:$0xfe]   ;;  %v6988_v39 = vld [vmem:[%s7695_s14 + $0x60] sm:$0xff]  }
  0x8d   : > { %6226 = vmatpush3.bf16.msra.mxu0 %v6922_v30  ;;  %v690_v30 = vrot.slane %v688_v28, 1  ;;  %v6975_v24 = vld [vmem:[%s7695_s14 + $0x48] sm:$0xff]   ;;  %v6983_v33 = vld [vmem:[%s7695_s14 + $0x5c] ss:$0 sps:$4 sm:$0x11]  }
  0x8e   : > { %6338 = vmatpush3.bf16.msra.mxu1 %v6923_v31  ;;  %6435 = vmatprep.subr.bf16.mxu0 %v6930_v43  ;;  %v695_v31 = vrot.slane %v693_v29, 1  ;;  %v6981_v28 = vld [vmem:[#allocation6 + $0x198] sm:$0xff]  }
  0x8f   : > { %6547 = vmatprep.subr.bf16.mxu1 %v6932_v48  ;;  %v691_v36 = vor.u32 %v690_v30, %v686_v27  ;;  %v703_v48 = vor.u32 %v702_v45, %v698_v41  ;;  %v1068_v27 = vrot.slane %v6976_v21, 1  ;;  %v1069_v30 = vrot.slane %v6977_v25, 1  ;;  %v6993_v61 = vld [vmem:[%s7695_s14 + $0x68] ss:$0 sps:$4 sm:$0x11]  }
  0x90   : > { %3485 = vmatmul.mubr.bf16.vlgmr.msra.gmra.mrb[0].mxu0 %v6927_v40  ;;  %v6957_v40 = vld [vmem:[%s7695_s14 + $0x38] ss:$0 sps:$4 sm:$0x11]  }
  0x91   : > { %3646 = vmatmul.mubr.bf16.vlgmr.msra.gmra.mrb[0].mxu1 %v1052_v51  ;;  %6436 = vmatpush3.bf16.msra.mxu0 %v6931_v46  ;;  %v696_v43 = vsel %vm648_vm0, %v691_v36, %v695_v31  ;;  %v705_v46 = vshll.u32 %v6957_v40, 16  ;;  %v6961_v51 = vld [vmem:[%s7695_s14 + $0x38] ss:$0 sps:$4 sm:$0x11]   ;;  %v6984_v36 = vld [vmem:[%s7695_s14 + $0x60] sm:$0xff]  }
  0x92   : > { %6548 = vmatpush3.bf16.msra.mxu1 %v6933_v50  ;;  %3653 = vmatprep.mubr.bf16.mxu1 %v6936_v54  ;;  %v6960_v50 = vld [vmem:[%s7695_s14 + $0x30] sm:$0xfe]   ;;  %v1063_v55 = vrot.slane %v6961_v51, 1 }
  0x93   : > { %3492 = vmatprep.mubr.bf16.mxu0 %v672_v7  ;;  %6437 = vmatprep.subr.bf16.mxu0 %v6946_v11  ;;  %v707_v49 = vrot.slane %v705_v46, 1  ;;  %v1062_v54 = vrot.slane %v6960_v50, 1  ;;  %v6971_v7 = vld [vmem:[%s7695_s14 + $0x44] ss:$0 sps:$4 sm:$0x11]   ;;  %v6982_v31 = vld [vmem:[%s7695_s14 + $0x54] sm:$0xff]  }
  0x94   : > { %6549 = vmatprep.subr.bf16.mxu1 %v6948_v17  ;;  %v1066_v10 = vrot.slane %v6971_v7, 1  ;;  %v6973_v11 = vld [vmem:[%s7695_s14 + $0x50] ss:$0 sps:$4 sm:$0x11]   ;;  %v734_v34 = vshrl.u32 %v6982_v31, 16  ;;  %v736_v35 = vshll.u32 %v6982_v31, 16 }
  0x95   : > { %6438 = vmatpush3.bf16.msra.mxu0 %v6947_v13  ;;  %v708_v53 = vsel %vm648_vm0, %v703_v48, %v707_v49  ;;  %v1064_v58 = vsel %vm1049_vm1, %v1062_v54, %v1063_v55  ;;  %v729_v17 = vshll.u32 %v6973_v11, 16  ;;  %v6985_v40 = vld [vmem:[%s7695_s14 + $0x54] sm:$0xff]   ;;  %v6989_v48 = vld [vmem:[%s7695_s14 + $0x68] ss:$0 sps:$4 sm:$0x11]   ;;  %v746_v49 = vshrl.u32 %v6988_v39, 16 }
  0x96   : > { %6550 = vmatpush3.bf16.msra.mxu1 %v6949_v23  ;;  %6439 = vmatprep.subr.bf16.mxu0 %v6962_v47  ;;  %v738_v37 = vrot.slane %v736_v35, 1  ;;  %v748_v50 = vshll.u32 %v6988_v39, 16  ;;  %v6990_v51 = vld [vmem:[%s7695_s14 + $0x6c] sm:$0xff]   ;;  %v7004_v11 = vld [vmem:[%s7695_s14 + $0x78] sm:$0xff]   ;;  %v7014_v39 = vld [vmem:[%s7695_s14 + $0x84] sm:$0xff]  }
  0x97   : > { %6551 = vmatprep.subr.bf16.mxu1 %v6964_v57  ;;  %v731_v20 = vrot.slane %v729_v17, 1  ;;  %v6994_v55 = vld [vmem:[#allocation6 + $0x160] sm:$0xff]   ;;  %v6992_v57 = vld [vmem:[%s7695_s14 + $0x60] sm:$0xfe]   ;;  %v770_v21 = vshrl.u32 %v7004_v11, 16 }
  0x98   : > { %3493 = vmatmul.mubr.bf16.gmra.mrb[4].mxu0 %v6937_v60  ;;  %v6966_v60 = vld [vmem:[%s7695_s14 + $0x3c] sm:$0xff]   ;;  %v739_v41 = vor.u32 %v738_v37, %v734_v34  ;;  %v750_v54 = vrot.slane %v748_v50, 1 }
  0x99   : > { %3654 = vmatmul.mubr.bf16.gmra.mrb[4].mxu1 %v1055_v9  ;;  %3500 = vmatprep.mubr.bf16.mxu0 %v684_v19  ;;  %v710_v63 = vshrl.u32 %v6966_v60, 16  ;;  %v712_v0 = vshll.u32 %v6966_v60, 16  ;;  %v6978_v19 = vld [vmem:[#allocation6 + $0x158] sm:$0xff]   ;;  %v6991_v60 = vld [vmem:[%s7695_s14 + $0x60] sm:$0xff]  }
  0x9a   : > { %3661 = vmatprep.mubr.bf16.mxu1 %v6942_v6  ;;  %6440 = vmatpush3.bf16.msra.mxu0 %v6963_v56  ;;  %v6970_v6 = vld [vmem:[%s7695_s14 + $0x3c] sm:$0xfe]  }
  0x9b   : > { %6552 = vmatpush3.bf16.msra.mxu1 %v6965_v59  ;;  %v714_v2 = vrot.slane %v712_v0, 1  ;;  %v1065_v9 = vrot.slane %v6970_v6, 1  ;;  %6441 = vmatprep.subr.bf16.mxu0 %v6978_v19  ;;  %v751_v59 = vor.u32 %v750_v54, %v746_v49  ;;  %v6997_v0 = vld [vmem:[#allocation6 + $0x1a0] sm:$0xff]   ;;  %v7012_v34 = vld [vmem:[#allocation6 + $0x1e8] sm:$0xff]  }
  0x9d   : > { %v715_v8 = vor.u32 %v714_v2, %v710_v63  ;;  %v1067_v16 = vsel %vm1049_vm1, %v1065_v9, %v1066_v10  ;;  %v1074_v63 = vrot.slane %v6992_v57, 1  ;;  %v1075_v2 = vrot.slane %v6993_v61, 1 }
  0x9f   : > { %v720_v13 = vsel %vm648_vm0, %v715_v8, %v719_v5  ;;  %v1076_v4 = vsel %vm1049_vm1, %v1074_v63, %v1075_v2  ;;  %v6999_v5 = vld [vmem:[%s7695_s14 + $0x74] ss:$0 sps:$4 sm:$0x11]   ;;  %v7000_v8 = vld [vmem:[%s7695_s14 + $0x78] sm:$0xff]   ;;  %v7026_v63 = vld [vmem:[#allocation6 + $0x170] sm:$0xff]  }
  0xa0   : > { %3501 = vmatmul.mubr.bf16.gmra.mrb[8].mxu0 %v6943_v18  ;;  %v726_v18 = vrot.slane %v724_v14, 1  ;;  %v765_v10 = vshll.u32 %v6999_v5, 16  ;;  %v7027_v2 = vld [vmem:[#allocation6 + $0x130] sm:$0xff]   ;;  %v7025_v5 = vld [vmem:[%s7695_s14 + $0x98] ss:$0 sps:$4 sm:$0x11]  }
  0xa1   : > { %3662 = vmatmul.mubr.bf16.gmra.mrb[8].mxu1 %v1058_v22  ;;  %3508 = vmatprep.mubr.bf16.mxu0 %v696_v43  ;;  %v6979_v22 = vld [vmem:[#allocation6 + $0x118] sm:$0xff]  }
  0xa2   : > { %3669 = vmatprep.mubr.bf16.mxu1 %v6952_v26  ;;  %v727_v23 = vor.u32 %v726_v18, %v722_v12  ;;  %v6980_v26 = vld [vmem:[#allocation6 + $0x1d8] sm:$0xff]   ;;  %6442 = vmatpush3.bf16.msra.mxu0 %v6979_v22  ;;  %v767_v14 = vrot.slane %v765_v10, 1  ;;  %v772_v22 = vshll.u32 %v7004_v11, 16  ;;  %v1087_v10 = vrot.slane %v7025_v5, 1  ;;  %v7030_v11 = vld [vmem:[%s7695_s14 + $0x9c] sm:$0xff]  }
  0xa3   : > { %6553 = vmatprep.subr.bf16.mxu1 %v6980_v26  ;;  %v6986_v43 = vld [vmem:[%s7695_s14 + $0x54] sm:$0xfe]   ;;  %6443 = vmatprep.subr.bf16.mxu0 %v6994_v55  ;;  %v7001_v12 = vld [vmem:[%s7695_s14 + $0x6c] sm:$0xff]   ;;  %v7055_v5 = vld [vmem:[%s7695_s14 + $0x20] ss:$0 sps:$4 sm:$0x11]  }
  0xa4   : > { %v732_v29 = vsel %vm648_vm0, %v727_v23, %v731_v20  ;;  %6554 = vmatpush3.bf16.msra.mxu1 %v6981_v28  ;;  %v1071_v46 = vrot.slane %v6986_v43, 1  ;;  %v7005_v20 = vld [vmem:[%s7695_s14 + $0x80] ss:$0 sps:$4 sm:$0x11]   ;;  %v7006_v23 = vld [vmem:[%s7695_s14 + $0x84] sm:$0xff]   ;;  %v774_v26 = vrot.slane %v772_v22, 1 }
  0xa5   : > { %v777_v25 = vshll.u32 %v7005_v20, 16  ;;  %v784_v43 = vshll.u32 %v7014_v39, 16  ;;  %v7033_v20 = vld [vmem:[%s7695_s14 + $0x9c] sm:$0xff]  }
  0xa6   : > { %v775_v31 = vor.u32 %v774_v26, %v770_v21 }
  0xa7   : > { %v779_v28 = vrot.slane %v777_v25, 1 }
  0xa8   : > { %3509 = vmatmul.mubr.bf16.gmra.mrb[12].mxu0 %v6953_v32  ;;  %v1070_v32 = vsel %vm1049_vm1, %v1068_v27, %v1069_v30  ;;  %v7010_v27 = vld [vmem:[#allocation6 + $0x168] sm:$0xff]  }
  0xa9   : > { %3670 = vmatmul.mubr.bf16.gmra.mrb[12].mxu1 %v1061_v44  ;;  %3516 = vmatprep.mubr.bf16.mxu0 %v708_v53  ;;  %v6987_v44 = vld [vmem:[%s7695_s14 + $0x5c] ss:$0 sps:$4 sm:$0x11]   ;;  %v753_v53 = vshll.u32 %v6989_v48, 16  ;;  %v780_v37 = vsel %vm648_vm0, %v775_v31, %v779_v28  ;;  %v7017_v48 = vld [vmem:[%s7695_s14 + $0x84] sm:$0xff]   ;;  %v7038_v31 = vld [vmem:[%s7695_s14 + $0xb4] sm:$0xff]  }
  0xaa   : > { %3677 = vmatprep.mubr.bf16.mxu1 %v6958_v38  ;;  %v741_v38 = vshll.u32 %v6983_v33, 16  ;;  %v1072_v47 = vrot.slane %v6987_v44, 1  ;;  %v7011_v30 = vld [vmem:[#allocation6 + $0x128] sm:$0xff]   ;;  %v7016_v44 = vld [vmem:[%s7695_s14 + $0x90] sm:$0xff]  }
  0xab   : > { %v755_v56 = vrot.slane %v753_v53, 1  ;;  %v7009_v33 = vld [vmem:[%s7695_s14 + $0x80] ss:$0 sps:$4 sm:$0x11]  }
  0xac   : > { %v743_v42 = vrot.slane %v741_v38, 1  ;;  %v1081_v38 = vrot.slane %v7009_v33, 1  ;;  %v7037_v28 = vld [vmem:[%s7695_s14 + $0xb0] ss:$0 sps:$4 sm:$0x11]  }
  0xad   : > { %v756_v1 = vsel %vm648_vm0, %v751_v59, %v755_v56  ;;  %v7021_v56 = vld [vmem:[%s7695_s14 + $0x98] ss:$0 sps:$4 sm:$0x11]   ;;  %v7022_v59 = vld [vmem:[%s7695_s14 + $0x9c] sm:$0xff]   ;;  %v825_v33 = vshll.u32 %v7037_v28, 16 }
  0xae   : > { %v744_v45 = vsel %vm648_vm0, %v739_v41, %v743_v42  ;;  %v7015_v41 = vld [vmem:[%s7695_s14 + $0x8c] ss:$0 sps:$4 sm:$0x11]   ;;  %v782_v42 = vshrl.u32 %v7014_v39, 16  ;;  %v801_v61 = vshll.u32 %v7021_v56, 16  ;;  %v7054_v56 = vld [vmem:[%s7695_s14 + $0x18] sm:$0xff]  }
  0xaf   : > { %v7065_v28 = vld [vmem:[%s7695_s14 + $0x18] sm:$0xff]  }
  0xb0   : > { %3517 = vmatmul.mubr.bf16.gmra.mrb[16].mxu0 %v6959_v52  ;;  %v1073_v52 = vsel %vm1049_vm1, %v1071_v46, %v1072_v47  ;;  %v789_v46 = vshll.u32 %v7015_v41, 16  ;;  %v7020_v47 = vld [vmem:[%s7695_s14 + $0x90] sm:$0xff]  }
  0xb1   : > { %3678 = vmatmul.mubr.bf16.gmra.mrb[16].mxu1 %v1064_v58  ;;  %3524 = vmatprep.mubr.bf16.mxu0 %v720_v13  ;;  %v6995_v58 = vld [vmem:[#allocation6 + $0x120] sm:$0xff]   ;;  %v794_v57 = vshrl.u32 %v7020_v47, 16 }
  0xb2   : > { %3685 = vmatprep.mubr.bf16.mxu1 %v6968_v62  ;;  %v6996_v62 = vld [vmem:[#allocation6 + $0x1e0] sm:$0xff]   ;;  %6444 = vmatpush3.bf16.msra.mxu0 %v6995_v58  ;;  %v791_v50 = vrot.slane %v789_v46, 1  ;;  %v796_v58 = vshll.u32 %v7020_v47, 16 }
  0xb3   : > { %6555 = vmatprep.subr.bf16.mxu1 %v6996_v62  ;;  %6445 = vmatprep.subr.bf16.mxu0 %v7010_v27  ;;  %v7041_v41 = vld [vmem:[%s7695_s14 + $0xb0] ss:$0 sps:$4 sm:$0x11]   ;;  %v7046_v47 = vld [vmem:[%s7695_s14 + $0xb4] sm:$0xff]  }
  0xb4   : > { %6556 = vmatpush3.bf16.msra.mxu1 %v6997_v0  ;;  %v798_v62 = vrot.slane %v796_v58, 1  ;;  %v803_v0 = vrot.slane %v801_v61, 1  ;;  %v1093_v46 = vrot.slane %v7041_v41, 1 }
  0xb5   : > { %6557 = vmatprep.subr.bf16.mxu1 %v7012_v34 }
  0xb6   : > { %6446 = vmatpush3.bf16.msra.mxu0 %v7011_v30 }
  0xb7   : > { %6447 = vmatprep.subr.bf16.mxu0 %v7026_v63 }
  0xb8   : > { %3525 = vmatmul.mubr.bf16.gmra.mrb[20].mxu0 %v6969_v3  ;;  %v6998_v3 = vld [vmem:[%s7695_s14 + $0x6c] sm:$0xff]  }
  0xb9   : > { %3686 = vmatmul.mubr.bf16.gmra.mrb[20].mxu1 %v1067_v16  ;;  %3532 = vmatprep.mubr.bf16.mxu0 %v732_v29  ;;  %v758_v6 = vshrl.u32 %v6998_v3, 16  ;;  %v760_v7 = vshll.u32 %v6998_v3, 16  ;;  %v7003_v16 = vld [vmem:[%s7695_s14 + $0x74] ss:$0 sps:$4 sm:$0x11]   ;;  %v799_v3 = vor.u32 %v798_v62, %v794_v57 }
  0xba   : > { %3693 = vmatprep.mubr.bf16.mxu1 %v6974_v15  ;;  %v7002_v15 = vld [vmem:[%s7695_s14 + $0x6c] sm:$0xfe]   ;;  %v1078_v19 = vrot.slane %v7003_v16, 1  ;;  %v7008_v29 = vld [vmem:[%s7695_s14 + $0x78] sm:$0xfe]   ;;  %6448 = vmatpush3.bf16.msra.mxu0 %v7027_v2  ;;  %v2253_v2 = vshrl.u32 %v7054_v56, 16 }
  0xbb   : > { %v762_v9 = vrot.slane %v760_v7, 1  ;;  %v1077_v18 = vrot.slane %v7002_v15, 1  ;;  %v1080_v35 = vrot.slane %v7008_v29, 1  ;;  %v808_v15 = vshll.u32 %v7030_v11, 16  ;;  %v7032_v16 = vld [vmem:[%s7695_s14 + $0xa8] sm:$0xff]  }
  0xbd   : > { %v763_v13 = vor.u32 %v762_v9, %v758_v6  ;;  %v7028_v6 = vld [vmem:[#allocation6 + $0x1f0] sm:$0xff]   ;;  %v804_v9 = vsel %vm648_vm0, %v799_v3, %v803_v0 }
  0xbe   : > { %v7052_v0 = vld [vmem:[%s7695_s14 + $0xc] sm:$0xfe]  }
  0xbf   : > { %v768_v17 = vsel %vm648_vm0, %v763_v13, %v767_v14  ;;  %v7031_v13 = vld [vmem:[%s7695_s14 + $0xa4] ss:$0 sps:$4 sm:$0x11]   ;;  %v806_v14 = vshrl.u32 %v7030_v11, 16 }
  0xc0   : > { %3533 = vmatmul.mubr.bf16.gmra.mrb[24].mxu0 %v6975_v24  ;;  %v1079_v24 = vsel %vm1049_vm1, %v1077_v18, %v1078_v19  ;;  %v813_v18 = vshll.u32 %v7031_v13, 16  ;;  %v7036_v19 = vld [vmem:[%s7695_s14 + $0xa8] sm:$0xff]  }
  0xc1   : > { %3694 = vmatmul.mubr.bf16.gmra.mrb[24].mxu1 %v1070_v32  ;;  %3540 = vmatprep.mubr.bf16.mxu0 %v744_v45  ;;  %v7007_v32 = vld [vmem:[%s7695_s14 + $0x78] sm:$0xff]   ;;  %v786_v45 = vrot.slane %v784_v43, 1  ;;  %v818_v29 = vshrl.u32 %v7036_v19, 16  ;;  %v820_v30 = vshll.u32 %v7036_v19, 16 }
  0xc2   : > { %3701 = vmatprep.mubr.bf16.mxu1 %v6984_v36  ;;  %v7013_v36 = vld [vmem:[#allocation6 + $0x1a8] sm:$0xff]   ;;  %v815_v22 = vrot.slane %v813_v18, 1  ;;  %v7059_v19 = vld [vmem:[#allocation6 + $0x200] sm:$0xff]  }
  0xc3   : > { %6558 = vmatpush3.bf16.msra.mxu1 %v7013_v36  ;;  %v787_v49 = vor.u32 %v786_v45, %v782_v42  ;;  %v822_v34 = vrot.slane %v820_v30, 1  ;;  %v827_v36 = vrot.slane %v825_v33, 1  ;;  %v7044_v42 = vld [vmem:[#allocation6 + $0x1f8] sm:$0xff]  }
  0xc4   : > { %6559 = vmatprep.subr.bf16.mxu1 %v7028_v6 }
  0xc5   : > { %v792_v53 = vsel %vm648_vm0, %v787_v49, %v791_v50  ;;  %v823_v39 = vor.u32 %v822_v34, %v818_v29  ;;  %v7047_v49 = vld [vmem:[%s7695_s14 + $0xbc] ss:$0 sps:$4 sm:$0x11]   ;;  %v830_v50 = vshrl.u32 %v7046_v47, 16 }
  0xc7   : > { %v828_v45 = vsel %vm648_vm0, %v823_v39, %v827_v36 }
  0xc8   : > { %3541 = vmatmul.mubr.bf16.gmra.mrb[28].mxu0 %v6985_v40  ;;  %v1082_v40 = vsel %vm1049_vm1, %v1080_v35, %v1081_v38  ;;  %v7042_v35 = vld [vmem:[#allocation6 + $0x178] sm:$0xff]  }
  0xc9   : > { %3702 = vmatmul.mubr.bf16.gmra.mrb[28].mxu1 %v1073_v52  ;;  %3548 = vmatprep.mubr.bf16.mxu0 %v756_v1  ;;  %v7019_v52 = vld [vmem:[%s7695_s14 + $0x8c] ss:$0 sps:$4 sm:$0x11]   ;;  %v7024_v1 = vld [vmem:[%s7695_s14 + $0x90] sm:$0xfe]  }
  0xca   : > { %3709 = vmatprep.mubr.bf16.mxu1 %v6990_v51  ;;  %v7018_v51 = vld [vmem:[%s7695_s14 + $0x84] sm:$0xfe]   ;;  %v1084_v55 = vrot.slane %v7019_v52, 1  ;;  %v1086_v7 = vrot.slane %v7024_v1, 1  ;;  %6449 = vmatprep.subr.bf16.mxu0 %v7042_v35  ;;  %v1464_v35 = vshrl.u32 %v7065_v28, 16 }
  0xcb   : > { %v1083_v54 = vrot.slane %v7018_v51, 1  ;;  %v7043_v38 = vld [vmem:[#allocation6 + $0x138] sm:$0xff]   ;;  %v832_v51 = vshll.u32 %v7046_v47, 16  ;;  %v7048_v52 = vld [vmem:[%s7695_s14 + $0xc0] sm:$0xff]  }
  0xcc   : > { %6450 = vmatpush3.bf16.msra.mxu0 %v7043_v38  ;;  %v7053_v1 = vld [vmem:[%s7695_s14 + $0x14] ss:$0 sps:$4 sm:$0x11]   ;;  %v7066_v38 = vld [vmem:[%s7695_s14 + $0x20] ss:$0 sps:$4 sm:$0x11]  }
  0xcd   : > { %v1852_v6 = vrot.slane %v7053_v1, 1  ;;  %6707 = vmatprep.subr.bf16.mxu0 %v7059_v19  ;;  %v7072_v47 = vld [vmem:[%s7695_s14 + $0x24] sm:$0xff]  }
  0xd0   : > { %3549 = vmatmul.mubr.bf16.gmra.mrb[32].mxu0 %v6991_v60  ;;  %v1085_v60 = vsel %vm1049_vm1, %v1083_v54, %v1084_v55  ;;  %v837_v54 = vshll.u32 %v7047_v49, 16  ;;  %v7049_v55 = vld [vmem:[%s7695_s14 + $0xb4] sm:$0xff]   ;;  %v7068_v49 = vld [vmem:[%s7695_s14 + $0x24] sm:$0xfe]  }
  0xd1   : > { %3710 = vmatmul.mubr.bf16.gmra.mrb[32].mxu1 %v1076_v4  ;;  %3556 = vmatprep.mubr.bf16.mxu0 %v768_v17  ;;  %v7023_v4 = vld [vmem:[%s7695_s14 + $0x90] sm:$0xff]   ;;  %v810_v17 = vrot.slane %v808_v15, 1 }
  0xd2   : > { %3717 = vmatprep.mubr.bf16.mxu1 %v7000_v8  ;;  %v7029_v8 = vld [vmem:[#allocation6 + $0x1b0] sm:$0xff]   ;;  %v839_v58 = vrot.slane %v837_v54, 1 }
  0xd3   : > { %6560 = vmatpush3.bf16.msra.mxu1 %v7029_v8  ;;  %v811_v21 = vor.u32 %v810_v17, %v806_v14  ;;  %v2260_v8 = vshll.u32 %v7055_v5, 16 }
  0xd4   : > { %6561 = vmatprep.subr.bf16.mxu1 %v7044_v42  ;;  %v1471_v42 = vshll.u32 %v7066_v38, 16  ;;  %v7085_v38 = vld [vmem:[%s7695_s14 + $0x44] ss:$0 sps:$4 sm:$0x11]  }
  0xd5   : > { %v816_v25 = vsel %vm648_vm0, %v811_v21, %v815_v22  ;;  %v2262_v13 = vrot.slane %v2260_v8, 1  ;;  %v7060_v21 = vld [vmem:[#allocation8] sm:$0xff]  }
  0xd8   : > { %3557 = vmatmul.mubr.bf16.gmra.mrb[36].mxu0 %v7001_v12  ;;  %v1088_v12 = vsel %vm1049_vm1, %v1086_v7, %v1087_v10  ;;  %v2255_v7 = vshll.u32 %v7054_v56, 16 }
  0xd9   : > { %3718 = vmatmul.mubr.bf16.gmra.mrb[36].mxu1 %v1079_v24  ;;  %3564 = vmatprep.mubr.bf16.mxu0 %v780_v37  ;;  %v7035_v24 = vld [vmem:[%s7695_s14 + $0xa4] ss:$0 sps:$4 sm:$0x11]   ;;  %v7040_v37 = vld [vmem:[%s7695_s14 + $0xa8] sm:$0xfe]  }
  0xda   : > { %3725 = vmatprep.mubr.bf16.mxu1 %v7006_v23  ;;  %v7034_v23 = vld [vmem:[%s7695_s14 + $0x9c] sm:$0xfe]   ;;  %v1090_v27 = vrot.slane %v7035_v24, 1  ;;  %v1092_v43 = vrot.slane %v7040_v37, 1  ;;  %v2257_v11 = vrot.slane %v2255_v7, 1  ;;  %v7063_v24 = vld [vmem:[%s7695_s14 + $0x24] sm:$0xff]  }
  0xdb   : > { %v1089_v26 = vrot.slane %v7034_v23, 1  ;;  %v2265_v33 = vshrl.u32 %v7063_v24, 16  ;;  %v2267_v34 = vshll.u32 %v7063_v24, 16  ;;  %v7076_v7 = vld [vmem:[#allocation8 + $0x8] sm:$0xff]  }
  0xdc   : > { %v2258_v17 = vor.u32 %v2257_v11, %v2253_v2  ;;  %v7082_v24 = vld [vmem:[%s7695_s14 + $0x38] ss:$0 sps:$4 sm:$0x11]  }
  0xdd   : > { %v2269_v39 = vrot.slane %v2267_v34, 1  ;;  %v7084_v34 = vld [vmem:[%s7695_s14 + $0x3c] sm:$0xfe]  }
  0xde   : > { %v2263_v22 = vsel %vm648_vm0, %v2258_v17, %v2262_v13  ;;  %v7078_v13 = vld [vmem:[%s7695_s14 + $0x38] ss:$0 sps:$4 sm:$0x11]  }
  0xe0   : > { %3565 = vmatmul.mubr.bf16.gmra.mrb[40].mxu0 %v7007_v32  ;;  %v1091_v32 = vsel %vm1049_vm1, %v1089_v26, %v1090_v27  ;;  %v7061_v26 = vld [vmem:[%s7695_s14 + $0x18] sm:$0xfe]   ;;  %v7062_v27 = vld [vmem:[%s7695_s14 + $0x20] ss:$0 sps:$4 sm:$0x11]  }
  0xe1   : > { %3726 = vmatmul.mubr.bf16.gmra.mrb[40].mxu1 %v1082_v40  ;;  %3572 = vmatprep.mubr.bf16.mxu0 %v792_v53  ;;  %v7039_v40 = vld [vmem:[%s7695_s14 + $0xa8] sm:$0xff]   ;;  %v834_v53 = vrot.slane %v832_v51, 1  ;;  %v1854_v30 = vrot.slane %v7061_v26, 1 }
  0xe2   : > { %3733 = vmatprep.mubr.bf16.mxu1 %v7016_v44  ;;  %v7045_v44 = vld [vmem:[#allocation6 + $0x1b8] sm:$0xff]  }
  0xe3   : > { %6562 = vmatpush3.bf16.msra.mxu1 %v7045_v44  ;;  %v835_v57 = vor.u32 %v834_v53, %v830_v50  ;;  %v7070_v44 = vld [vmem:[%s7695_s14 + $0x30] sm:$0xff]   ;;  %v7069_v50 = vld [vmem:[%s7695_s14 + $0x2c] ss:$0 sps:$4 sm:$0x11]   ;;  %v1857_v53 = vrot.slane %v7068_v49, 1 }
  0xe4   : > { %6755 = vmatprep.subr.bf16.mxu1 %v7060_v21  ;;  %v1858_v54 = vrot.slane %v7069_v50, 1  ;;  %v2277_v56 = vshrl.u32 %v7070_v44, 16  ;;  %v7089_v49 = vld [vmem:[%s7695_s14 + $0x44] ss:$0 sps:$4 sm:$0x11]  }
  0xe5   : > { %v840_v61 = vsel %vm648_vm0, %v835_v57, %v839_v58  ;;  %v2279_v58 = vshll.u32 %v7070_v44, 16 }
  0xe8   : > { %3573 = vmatmul.mubr.bf16.gmra.mrb[44].mxu0 %v7017_v48  ;;  %v1094_v48 = vsel %vm1049_vm1, %v1092_v43, %v1093_v46  ;;  %v7067_v43 = vld [vmem:[%s7695_s14 + $0x24] sm:$0xff]  }
  0xe9   : > { %3734 = vmatmul.mubr.bf16.gmra.mrb[44].mxu1 %v1085_v60  ;;  %3580 = vmatprep.mubr.bf16.mxu0 %v804_v9  ;;  %v7051_v60 = vld [vmem:[%s7695_s14 + $0xbc] ss:$0 sps:$4 sm:$0x11]   ;;  %v7056_v9 = vld [vmem:[%s7695_s14 + $0xc] sm:$0xff]  }
  0xea   : > { %3741 = vmatprep.mubr.bf16.mxu1 %v7022_v59  ;;  %v7050_v59 = vld [vmem:[%s7695_s14 + $0xb4] sm:$0xfe]   ;;  %v1096_v63 = vrot.slane %v7051_v60, 1  ;;  %v1452_v14 = vshrl.u32 %v7056_v9, 16  ;;  %v1454_v15 = vshll.u32 %v7056_v9, 16  ;;  %v1859_v60 = vsel %vm1049_vm1, %v1857_v53, %v1858_v54  ;;  %v7079_v9 = vld [vmem:[%s7695_s14 + $0x3c] sm:$0xff]  }
  0xeb   : > { %v1095_v62 = vrot.slane %v7050_v59, 1  ;;  %v1476_v59 = vshrl.u32 %v7072_v47, 16  ;;  %v2291_v17 = vshll.u32 %v7079_v9, 16  ;;  %v7090_v53 = vld [vmem:[%s7695_s14 + $0x48] sm:$0xff]  }
  0xec   : > { %v7091_v54 = vld [vmem:[#allocation6 + $0x210] sm:$0xff]  }
  0xed   : > { %v1097_v3 = vsel %vm1049_vm1, %v1095_v62, %v1096_v63  ;;  %v7073_v62 = vld [vmem:[%s7695_s14 + $0x2c] ss:$0 sps:$4 sm:$0x11]   ;;  %v2281_v63 = vrot.slane %v2279_v58, 1 }
  0xee   : > { %v1483_v2 = vshll.u32 %v7073_v62, 16  ;;  %v7095_v62 = vld [vmem:[%s7695_s14 + $0x54] sm:$0xff]  }
  0xef   : > { %v2282_v5 = vor.u32 %v2281_v63, %v2277_v56  ;;  %v1507_v56 = vshll.u32 %v7089_v49, 16 }
  0xf0   : > { %3581 = vmatmul.mubr.bf16.gmra.mrb[48].mxu0 %v7023_v4  ;;  %v1851_v4 = vrot.slane %v7052_v0, 1  ;;  %v1478_v0 = vshll.u32 %v7072_v47, 16  ;;  %v1485_v8 = vrot.slane %v1483_v2, 1  ;;  %v2313_v2 = vshrl.u32 %v7095_v62, 16 }
  0xf1   : > { %3742 = vmatmul.mubr.bf16.gmra.mrb[48].mxu1 %v1088_v12  ;;  %3588 = vmatprep.mubr.bf16.mxu0 %v816_v25  ;;  %v7057_v12 = vld [vmem:[%s7695_s14 + $0x14] ss:$0 sps:$4 sm:$0x11]  }
  0xf2   : > { %3749 = vmatprep.mubr.bf16.mxu1 %v7032_v16  ;;  %v1853_v10 = vsel %vm1049_vm1, %v1851_v4, %v1852_v6  ;;  %v7058_v16 = vld [vmem:[%s7695_s14 + $0x18] sm:$0xff]   ;;  %v1459_v18 = vshll.u32 %v7057_v12, 16  ;;  %v1480_v6 = vrot.slane %v1478_v0, 1  ;;  %v7077_v12 = vld [vmem:[%s7695_s14 + $0x30] sm:$0xfe]  }
  0xf3   : > { %v7075_v4 = vld [vmem:[#allocation6 + $0x208] sm:$0xff]   ;;  %v7093_v0 = vld [vmem:[%s7695_s14 + $0x48] sm:$0xfe]  }
  0xf4   : > { %v1461_v23 = vrot.slane %v1459_v18, 1  ;;  %v1481_v11 = vor.u32 %v1480_v6, %v1476_v59  ;;  %v1861_v18 = vrot.slane %v7078_v13, 1  ;;  %v7092_v59 = vld [vmem:[#allocation8 + $0x10] sm:$0xff]  }
  0xf8   : > { %3589 = vmatmul.mubr.bf16.gmra.mrb[52].mxu0 %v7033_v20  ;;  %v1456_v20 = vrot.slane %v1454_v15, 1  ;;  %v7872_v15 = vsel %vm648_vm0, %v1481_v11, %v1485_v8 }
  0xf9   : > { %3750 = vmatmul.mubr.bf16.gmra.mrb[52].mxu1 %v1091_v32  ;;  %3596 = vmatprep.mubr.bf16.mxu0 %v828_v45  ;;  %v7064_v32 = vld [vmem:[%s7695_s14 + $0x2c] ss:$0 sps:$4 sm:$0x11]   ;;  %v2270_v45 = vor.u32 %v2269_v39, %v2265_v33 }
  0xfa   : > { %3757 = vmatprep.mubr.bf16.mxu1 %v7038_v31  ;;  %v1457_v25 = vor.u32 %v1456_v20, %v1452_v14  ;;  %v1855_v31 = vrot.slane %v7062_v27, 1  ;;  %v2272_v37 = vshll.u32 %v7064_v32, 16  ;;  %v2289_v14 = vshrl.u32 %v7079_v9, 16  ;;  %v7097_v9 = vld [vmem:[%s7695_s14 + $0x48] sm:$0xff]  }
  0xfb   : > { %v2293_v20 = vrot.slane %v2291_v17, 1  ;;  %v1495_v32 = vshll.u32 %v7082_v24, 16  ;;  %v7099_v17 = vld [vmem:[%s7695_s14 + $0x54] sm:$0xff]  }
  0xfc   : > { %v7847_v29 = vsel %vm648_vm0, %v1457_v25, %v1461_v23  ;;  %v1856_v36 = vsel %vm1049_vm1, %v1854_v30, %v1855_v31  ;;  %v2274_v41 = vrot.slane %v2272_v37, 1  ;;  %v7086_v30 = vld [vmem:[%s7695_s14 + $0x48] sm:$0xff]  }
  0xfd   : > { %v2294_v25 = vor.u32 %v2293_v20, %v2289_v14  ;;  %v1497_v37 = vrot.slane %v1495_v32, 1  ;;  %v1512_v14 = vshrl.u32 %v7097_v9, 16  ;;  %v7102_v20 = vld [vmem:[%s7695_s14 + $0x60] sm:$0xff]   ;;  %v7104_v32 = vld [vmem:[%s7695_s14 + $0x54] sm:$0xff]  }
  0xfe   : > { %v2275_v51 = vsel %vm648_vm0, %v2270_v45, %v2274_v41  ;;  %v2303_v41 = vshll.u32 %v7086_v30, 16 }
 0x100   : > { %3597 = vmatmul.mubr.bf16.gmra.mrb[56].mxu0 %v7039_v40  ;;  %v1466_v40 = vshll.u32 %v7065_v28, 16  ;;  %v7083_v28 = vld [vmem:[%s7695_s14 + $0x3c] sm:$0xff]   ;;  %v2305_v45 = vrot.slane %v2303_v41, 1 }
 0x101   : > { %3758 = vmatmul.mubr.bf16.gmra.mrb[56].mxu1 %v1094_v48  ;;  %3604 = vmatprep.mubr.bf16.mxu0 %v840_v61  ;;  %v1473_v48 = vrot.slane %v1471_v42, 1  ;;  %v1864_v42 = vrot.slane %v7085_v38, 1  ;;  %v7106_v41 = vld [vmem:[%s7695_s14 + $0x60] sm:$0xff]  }
 0x102   : > { %3765 = vmatprep.mubr.bf16.mxu1 %v7048_v52  ;;  %v1468_v46 = vrot.slane %v1466_v40, 1  ;;  %v1863_v40 = vrot.slane %v7084_v34, 1 }
 0x104   : > { %v1469_v52 = vor.u32 %v1468_v46, %v1464_v35  ;;  %v2301_v35 = vshrl.u32 %v7086_v30, 16  ;;  %v7088_v46 = vld [vmem:[%s7695_s14 + $0x3c] sm:$0xff]   ;;  %v1865_v47 = vsel %vm1049_vm1, %v1863_v40, %v1864_v42  ;;  %v1526_v40 = vshll.u32 %v7104_v32, 16  ;;  %v7107_v42 = vld [vmem:[#allocation6 + $0x218] sm:$0xff]  }
 0x106   : > { %v7861_v57 = vsel %vm648_vm0, %v1469_v52, %v1473_v48  ;;  %v2306_v50 = vor.u32 %v2305_v45, %v2301_v35  ;;  %v1502_v52 = vshll.u32 %v7088_v46, 16 }
 0x108   : > { %3605 = vmatmul.mubr.bf16.gmra.mrb[60].mxu0 %v7049_v55  ;;  %v7071_v55 = vld [vmem:[%s7695_s14 + $0x38] ss:$0 sps:$4 sm:$0x11]   ;;  %v1504_v58 = vrot.slane %v1502_v52, 1  ;;  %v7111_v52 = vld [vmem:[%s7695_s14 + $0x6c] sm:$0xff]  }
 0x109   : > { %3766 = vmatmul.mubr.bf16.gmra.mrb[60].mxu1 %v1097_v3  ;;  %3806 = vmatprep.mubr.bf16.mxu0 %v1853_v10  ;;  %v2284_v61 = vshll.u32 %v7071_v55, 16  ;;  %v7074_v3 = vld [vmem:[%s7695_s14 + $0x30] sm:$0xff]  }
 0x10a   : > { %3967 = vmatprep.mubr.bf16.mxu1 %v2263_v22 }
 0x10b   : > { %v2286_v1 = vrot.slane %v2284_v61, 1  ;;  %v1509_v61 = vrot.slane %v1507_v56, 1 }
 0x10d   : > { %v2287_v10 = vsel %vm648_vm0, %v2282_v5, %v2286_v1  ;;  %v7094_v1 = vld [vmem:[%s7695_s14 + $0x50] ss:$0 sps:$4 sm:$0x11]   ;;  %v7096_v5 = vld [vmem:[%s7695_s14 + $0x5c] ss:$0 sps:$4 sm:$0x11]  }
 0x10e   : > { %v1867_v6 = vrot.slane %v7094_v1, 1  ;;  %v2320_v8 = vshll.u32 %v7096_v5, 16 }
 0x110   : > { %3807 = vmatmul.mubr.bf16.vlgmr.msra.gmra.mrb[64].mxu0 %v7847_v29  ;;  %v2322_v13 = vrot.slane %v2320_v8, 1  ;;  %v7115_v8 = vld [vmem:[%s7695_s14 + $0x6c] sm:$0xff]  }
 0x111   : > { %3968 = vmatmul.mubr.bf16.vlgmr.msra.gmra.mrb[64].mxu1 %v7058_v16  ;;  %6708 = vmatpush3.bf16.msra.mxu0 %v7059_v19  ;;  %v1860_v16 = vrot.slane %v7077_v12, 1  ;;  %v7080_v19 = vld [vmem:[%s7695_s14 + $0x44] ss:$0 sps:$4 sm:$0x11]  }
 0x112   : > { %6756 = vmatpush3.bf16.msra.mxu1 %v7060_v21  ;;  %3814 = vmatprep.mubr.bf16.mxu0 %v1856_v36  ;;  %v7081_v21 = vld [vmem:[%s7695_s14 + $0x30] sm:$0xff]   ;;  %v2296_v23 = vshll.u32 %v7080_v19, 16 }
 0x113   : > { %3975 = vmatprep.mubr.bf16.mxu1 %v2275_v51  ;;  %6709 = vmatprep.subr.bf16.mxu0 %v7075_v4  ;;  %v1862_v22 = vsel %vm1049_vm1, %v1860_v16, %v1861_v18  ;;  %v1488_v26 = vshrl.u32 %v7081_v21, 16  ;;  %v1490_v27 = vshll.u32 %v7081_v21, 16  ;;  %v1500_v51 = vshrl.u32 %v7088_v46, 16  ;;  %v7098_v12 = vld [vmem:[%s7695_s14 + $0x50] ss:$0 sps:$4 sm:$0x11]  }
 0x114   : > { %6757 = vmatprep.subr.bf16.mxu1 %v7076_v7  ;;  %v2298_v31 = vrot.slane %v2296_v23, 1  ;;  %v1514_v16 = vshll.u32 %v7097_v9, 16  ;;  %v1519_v19 = vshll.u32 %v7098_v12, 16  ;;  %v7101_v23 = vld [vmem:[%s7695_s14 + $0x5c] ss:$0 sps:$4 sm:$0x11]  }
 0x115   : > { %6710 = vmatpush3.bf16.msra.mxu0 %v7075_v4  ;;  %v1492_v33 = vrot.slane %v1490_v27, 1  ;;  %v1505_v63 = vor.u32 %v1504_v58, %v1500_v51  ;;  %v1866_v4 = vrot.slane %v7093_v0, 1  ;;  %v1870_v30 = vrot.slane %v7101_v23, 1  ;;  %v7118_v9 = vld [vmem:[%s7695_s14 + $0x78] sm:$0xff]   ;;  %v7120_v12 = vld [vmem:[%s7695_s14 + $0x6c] sm:$0xff]  }
 0x116   : > { %6758 = vmatpush3.bf16.msra.mxu1 %v7076_v7  ;;  %v2299_v36 = vsel %vm648_vm0, %v2294_v25, %v2298_v31  ;;  %6711 = vmatprep.subr.bf16.mxu0 %v7091_v54  ;;  %v2315_v7 = vshll.u32 %v7095_v62, 16  ;;  %v1516_v21 = vrot.slane %v1514_v16, 1  ;;  %v1521_v25 = vrot.slane %v1519_v19, 1  ;;  %v7117_v16 = vld [vmem:[%s7695_s14 + $0x74] ss:$0 sps:$4 sm:$0x11]  }
 0x117   : > { %v1493_v39 = vor.u32 %v1492_v33, %v1488_v26  ;;  %6759 = vmatprep.subr.bf16.mxu1 %v7092_v59  ;;  %v2325_v26 = vshrl.u32 %v7102_v20, 16  ;;  %v2327_v31 = vshll.u32 %v7102_v20, 16  ;;  %v7103_v33 = vld [vmem:[%s7695_s14 + $0x68] ss:$0 sps:$4 sm:$0x11]   ;;  %v1528_v46 = vrot.slane %v1526_v40, 1 }
 0x118   : > { %3815 = vmatmul.mubr.bf16.gmra.mrb[68].mxu0 %v7861_v57  ;;  %v2317_v11 = vrot.slane %v2315_v7, 1  ;;  %v1517_v27 = vor.u32 %v1516_v21, %v1512_v14  ;;  %v2332_v38 = vshll.u32 %v7103_v33, 16  ;;  %v2339_v62 = vshll.u32 %v7111_v52, 16  ;;  %v7116_v14 = vld [vmem:[%s7695_s14 + $0x6c] sm:$0xfe]  }
 0x119   : > { %3976 = vmatmul.mubr.bf16.gmra.mrb[68].mxu1 %v7067_v43  ;;  %3822 = vmatprep.mubr.bf16.mxu0 %v1859_v60  ;;  %v7087_v43 = vld [vmem:[%s7695_s14 + $0x50] ss:$0 sps:$4 sm:$0x11]   ;;  %v7886_v44 = vsel %vm648_vm0, %v1493_v39, %v1497_v37  ;;  %v1524_v37 = vshrl.u32 %v7104_v32, 16  ;;  %v1875_v19 = vrot.slane %v7116_v14, 1  ;;  %v1876_v20 = vrot.slane %v7117_v16, 1 }
 0x11a   : > { %3983 = vmatprep.mubr.bf16.mxu1 %v2287_v10  ;;  %v2308_v48 = vshll.u32 %v7087_v43, 16  ;;  %6712 = vmatpush3.bf16.msra.mxu0 %v7091_v54  ;;  %v1868_v10 = vsel %vm1049_vm1, %v1866_v4, %v1867_v6  ;;  %v2318_v18 = vor.u32 %v2317_v11, %v2313_v2  ;;  %v7913_v34 = vsel %vm648_vm0, %v1517_v27, %v1521_v25  ;;  %v7105_v39 = vld [vmem:[%s7695_s14 + $0x5c] ss:$0 sps:$4 sm:$0x11]  }
 0x11b   : > { %6760 = vmatpush3.bf16.msra.mxu1 %v7092_v59  ;;  %v2334_v45 = vrot.slane %v2332_v38, 1  ;;  %6713 = vmatprep.subr.bf16.mxu0 %v7107_v42  ;;  %v7110_v54 = vld [vmem:[%s7695_s14 + $0x68] ss:$0 sps:$4 sm:$0x11]   ;;  %v2341_v4 = vrot.slane %v2339_v62, 1  ;;  %v1548_v25 = vshrl.u32 %v7120_v12, 16 }
 0x11c   : > { %v2310_v55 = vrot.slane %v2308_v48, 1  ;;  %v2323_v24 = vsel %vm648_vm0, %v2318_v18, %v2322_v13  ;;  %v7108_v48 = vld [vmem:[#allocation8 + $0x18] sm:$0xff]   ;;  %v1873_v59 = vrot.slane %v7110_v54, 1  ;;  %v7119_v21 = vld [vmem:[%s7695_s14 + $0x80] ss:$0 sps:$4 sm:$0x11]  }
 0x11d   : > { %6761 = vmatprep.subr.bf16.mxu1 %v7108_v48  ;;  %v7114_v2 = vld [vmem:[%s7695_s14 + $0x68] ss:$0 sps:$4 sm:$0x11]   ;;  %v2356_v27 = vshll.u32 %v7119_v21, 16  ;;  %v7129_v54 = vld [vmem:[%s7695_s14 + $0x78] sm:$0xff]  }
 0x11e   : > { %v2311_v60 = vsel %vm648_vm0, %v2306_v50, %v2310_v55  ;;  %6714 = vmatpush3.bf16.msra.mxu0 %v7107_v42  ;;  %v1529_v50 = vor.u32 %v1528_v46, %v1524_v37  ;;  %v7113_v55 = vld [vmem:[%s7695_s14 + $0x60] sm:$0xff]   ;;  %v1543_v7 = vshll.u32 %v7114_v2, 16  ;;  %v1562_v62 = vshll.u32 %v7129_v54, 16  ;;  %v7135_v14 = vld [vmem:[%s7695_s14 + $0x98] ss:$0 sps:$4 sm:$0x11]  }
 0x11f   : > { %6762 = vmatpush3.bf16.msra.mxu1 %v7108_v48  ;;  %v1538_v5 = vshll.u32 %v7113_v55, 16  ;;  %v2358_v32 = vrot.slane %v2356_v27, 1  ;;  %v7126_v46 = vld [vmem:[%s7695_s14 + $0x80] ss:$0 sps:$4 sm:$0x11]  }
 0x120   : > { %3823 = vmatmul.mubr.bf16.gmra.mrb[72].mxu0 %v7872_v15  ;;  %v1545_v13 = vrot.slane %v1543_v7, 1  ;;  %v7137_v21 = vld [vmem:[%s7695_s14 + $0x8c] ss:$0 sps:$4 sm:$0x11]   ;;  %v7139_v27 = vld [vmem:[#allocation6 + $0x228] sm:$0xff]  }
 0x121   : > { %3984 = vmatmul.mubr.bf16.gmra.mrb[72].mxu1 %v7074_v3  ;;  %3830 = vmatprep.mubr.bf16.mxu0 %v1862_v22  ;;  %v7898_v3 = vsel %vm648_vm0, %v1505_v63, %v1509_v61  ;;  %v7100_v22 = vld [vmem:[%s7695_s14 + $0x54] sm:$0xfe]   ;;  %v2337_v61 = vshrl.u32 %v7111_v52, 16  ;;  %v1536_v63 = vshrl.u32 %v7113_v55, 16  ;;  %v1540_v11 = vrot.slane %v1538_v5, 1 }
 0x122   : > { %3991 = vmatprep.mubr.bf16.mxu1 %v2299_v36  ;;  %v2329_v36 = vrot.slane %v2327_v31, 1  ;;  %v1550_v31 = vshll.u32 %v7120_v12, 16  ;;  %v7128_v52 = vld [vmem:[%s7695_s14 + $0x8c] ss:$0 sps:$4 sm:$0x11]  }
 0x123   : > { %v1541_v18 = vor.u32 %v1540_v11, %v1536_v63  ;;  %v7131_v63 = vld [vmem:[%s7695_s14 + $0x84] sm:$0xff]  }
 0x124   : > { %v2330_v43 = vor.u32 %v2329_v36, %v2325_v26  ;;  %v1877_v26 = vsel %vm1049_vm1, %v1875_v19, %v1876_v20  ;;  %v7123_v36 = vld [vmem:[#allocation6 + $0x220] sm:$0xff]   ;;  %v1552_v38 = vrot.slane %v1550_v31, 1  ;;  %v7132_v5 = vld [vmem:[%s7695_s14 + $0x84] sm:$0xfe]   ;;  %v2380_v20 = vshll.u32 %v7135_v14, 16 }
 0x125   : > { %v7939_v23 = vsel %vm648_vm0, %v1541_v18, %v1545_v13  ;;  %6715 = vmatprep.subr.bf16.mxu0 %v7123_v36  ;;  %v1881_v11 = vrot.slane %v7132_v5, 1  ;;  %v7136_v18 = vld [vmem:[%s7695_s14 + $0x84] sm:$0xff]   ;;  %v7146_v5 = vld [vmem:[%s7695_s14 + $0x98] ss:$0 sps:$4 sm:$0x11]  }
 0x126   : > { %v2335_v49 = vsel %vm648_vm0, %v2330_v43, %v2334_v45  ;;  %v1553_v43 = vor.u32 %v1552_v38, %v1548_v25  ;;  %6716 = vmatpush3.bf16.msra.mxu0 %v7123_v36  ;;  %v7125_v45 = vld [vmem:[%s7695_s14 + $0x78] sm:$0xfe]   ;;  %v1574_v25 = vshll.u32 %v7136_v18, 16 }
 0x127   : > { %6717 = vmatprep.subr.bf16.mxu0 %v7139_v27  ;;  %v7143_v38 = vld [vmem:[%s7695_s14 + $0x9c] sm:$0xff]  }
 0x128   : > { %3831 = vmatmul.mubr.bf16.gmra.mrb[76].mxu0 %v7886_v44  ;;  %v1576_v31 = vrot.slane %v1574_v25, 1 }
 0x129   : > { %3992 = vmatmul.mubr.bf16.gmra.mrb[76].mxu1 %v7083_v28  ;;  %3838 = vmatprep.mubr.bf16.mxu0 %v1865_v47  ;;  %v1869_v28 = vrot.slane %v7100_v22, 1  ;;  %v1531_v47 = vshll.u32 %v7105_v39, 16  ;;  %v2349_v22 = vshrl.u32 %v7118_v9, 16  ;;  %v7124_v39 = vld [vmem:[#allocation8 + $0x20] sm:$0xff]  }
 0x12a   : > { %3999 = vmatprep.mubr.bf16.mxu1 %v2311_v60  ;;  %v7112_v60 = vld [vmem:[%s7695_s14 + $0x74] ss:$0 sps:$4 sm:$0x11]   ;;  %6763 = vmatprep.subr.bf16.mxu1 %v7124_v39 }
 0x12b   : > { %v1871_v35 = vsel %vm1049_vm1, %v1869_v28, %v1870_v30  ;;  %v1533_v51 = vrot.slane %v1531_v47, 1  ;;  %v2344_v1 = vshll.u32 %v7112_v60, 16  ;;  %v7121_v28 = vld [vmem:[%s7695_s14 + $0x74] ss:$0 sps:$4 sm:$0x11]   ;;  %6764 = vmatpush3.bf16.msra.mxu1 %v7124_v39  ;;  %6718 = vmatpush3.bf16.msra.mxu0 %v7139_v27 }
 0x12c   : > { %v1555_v33 = vshll.u32 %v7121_v28, 16  ;;  %v2382_v28 = vrot.slane %v2380_v20, 1 }
 0x12d   : > { %v7925_v56 = vsel %vm648_vm0, %v1529_v50, %v1533_v51  ;;  %v2346_v6 = vrot.slane %v2344_v1, 1  ;;  %v1879_v51 = vrot.slane %v7126_v46, 1 }
 0x12e   : > { %v1557_v40 = vrot.slane %v1555_v33, 1 }
 0x130   : > { %3839 = vmatmul.mubr.bf16.gmra.mrb[80].mxu0 %v7898_v3  ;;  %v7950_v48 = vsel %vm648_vm0, %v1553_v43, %v1557_v40 }
 0x131   : > { %4000 = vmatmul.mubr.bf16.gmra.mrb[80].mxu1 %v7090_v53  ;;  %3846 = vmatprep.mubr.bf16.mxu0 %v1868_v10  ;;  %v7109_v53 = vld [vmem:[%s7695_s14 + $0x60] sm:$0xfe]   ;;  %v2342_v10 = vor.u32 %v2341_v4, %v2337_v61  ;;  %v1560_v61 = vshrl.u32 %v7129_v54, 16  ;;  %v1564_v4 = vrot.slane %v1562_v62, 1  ;;  %v2385_v62 = vshrl.u32 %v7143_v38, 16 }
 0x132   : > { %4007 = vmatprep.mubr.bf16.mxu1 %v2323_v24  ;;  %v1872_v58 = vrot.slane %v7109_v53, 1  ;;  %v2351_v24 = vshll.u32 %v7118_v9, 16  ;;  %v7133_v9 = vld [vmem:[%s7695_s14 + $0x8c] ss:$0 sps:$4 sm:$0x11]  }
 0x133   : > { %v1882_v13 = vrot.slane %v7133_v9, 1 }
 0x134   : > { %v1874_v0 = vsel %vm1049_vm1, %v1872_v58, %v1873_v59  ;;  %v2353_v30 = vrot.slane %v2351_v24, 1  ;;  %v2368_v58 = vshll.u32 %v7128_v52, 16  ;;  %v7130_v59 = vld [vmem:[%s7695_s14 + $0x80] ss:$0 sps:$4 sm:$0x11]   ;;  %v1572_v24 = vshrl.u32 %v7136_v18, 16 }
 0x135   : > { %v1567_v2 = vshll.u32 %v7130_v59, 16  ;;  %v1883_v19 = vsel %vm1049_vm1, %v1881_v11, %v1882_v13  ;;  %v7142_v52 = vld [vmem:[%s7695_s14 + $0x98] ss:$0 sps:$4 sm:$0x11]   ;;  %v7145_v59 = vld [vmem:[%s7695_s14 + $0x90] sm:$0xff]  }
 0x136   : > { %v2354_v37 = vor.u32 %v2353_v30, %v2349_v22  ;;  %v2370_v1 = vrot.slane %v2368_v58, 1  ;;  %v1579_v30 = vshll.u32 %v7137_v21, 16  ;;  %v1577_v39 = vor.u32 %v1576_v31, %v1572_v24  ;;  %v7150_v21 = vld [vmem:[%s7695_s14 + $0xa8] sm:$0xff]  }
 0x138   : > { %3847 = vmatmul.mubr.bf16.gmra.mrb[84].mxu0 %v7913_v34  ;;  %v2359_v42 = vsel %vm648_vm0, %v2354_v37, %v2358_v32  ;;  %v7140_v32 = vld [vmem:[#allocation8 + $0x28] sm:$0xff]  }
 0x139   : > { %4008 = vmatmul.mubr.bf16.gmra.mrb[84].mxu1 %v7099_v17  ;;  %3854 = vmatprep.mubr.bf16.mxu0 %v1871_v35  ;;  %v2347_v17 = vsel %vm648_vm0, %v2342_v10, %v2346_v6  ;;  %v7122_v35 = vld [vmem:[%s7695_s14 + $0x78] sm:$0xff]   ;;  %v1565_v10 = vor.u32 %v1564_v4, %v1560_v61  ;;  %v7144_v61 = vld [vmem:[%s7695_s14 + $0xa4] ss:$0 sps:$4 sm:$0x11]  }
 0x13a   : > { %4015 = vmatprep.mubr.bf16.mxu1 %v2335_v49  ;;  %v1878_v49 = vrot.slane %v7125_v45, 1  ;;  %6765 = vmatprep.subr.bf16.mxu1 %v7140_v32  ;;  %v2392_v4 = vshll.u32 %v7144_v61, 16 }
 0x13b   : > { %6766 = vmatpush3.bf16.msra.mxu1 %v7140_v32 }
 0x13c   : > { %v1880_v55 = vsel %vm1049_vm1, %v1878_v49, %v1879_v51  ;;  %v2394_v11 = vrot.slane %v2392_v4, 1 }
 0x140   : > { %3855 = vmatmul.mubr.bf16.gmra.mrb[88].mxu0 %v7925_v56 }
 0x141   : > { %4016 = vmatmul.mubr.bf16.gmra.mrb[88].mxu1 %v7106_v41  ;;  %3862 = vmatprep.mubr.bf16.mxu0 %v1874_v0  ;;  %v7127_v41 = vld [vmem:[%s7695_s14 + $0x84] sm:$0xff]   ;;  %v7134_v0 = vld [vmem:[%s7695_s14 + $0x90] sm:$0xff]  }
 0x142   : > { %4023 = vmatprep.mubr.bf16.mxu1 %v2347_v17  ;;  %v2361_v47 = vshrl.u32 %v7127_v41, 16  ;;  %v2363_v50 = vshll.u32 %v7127_v41, 16  ;;  %v2373_v6 = vshrl.u32 %v7134_v0, 16  ;;  %v2375_v12 = vshll.u32 %v7134_v0, 16 }
 0x144   : > { %v2365_v53 = vrot.slane %v2363_v50, 1  ;;  %v2377_v17 = vrot.slane %v2375_v12, 1  ;;  %v1591_v12 = vshll.u32 %v7146_v5, 16  ;;  %v7159_v5 = vld [vmem:[%s7695_s14 + $0xb4] sm:$0xff]  }
 0x146   : > { %v2366_v60 = vor.u32 %v2365_v53, %v2361_v47  ;;  %v2378_v22 = vor.u32 %v2377_v17, %v2373_v6  ;;  %v7141_v47 = vld [vmem:[%s7695_s14 + $0x90] sm:$0xfe]   ;;  %v1584_v6 = vshrl.u32 %v7145_v59, 16  ;;  %v1593_v24 = vrot.slane %v1591_v12, 1 }
 0x147   : > { %v1884_v58 = vrot.slane %v7141_v47, 1 }
 0x148   : > { %3863 = vmatmul.mubr.bf16.gmra.mrb[92].mxu0 %v7939_v23  ;;  %v2371_v7 = vsel %vm648_vm0, %v2366_v60, %v2370_v1  ;;  %v2383_v33 = vsel %vm648_vm0, %v2378_v22, %v2382_v28  ;;  %v1885_v60 = vrot.slane %v7142_v52, 1  ;;  %v7152_v28 = vld [vmem:[%s7695_s14 + $0x9c] sm:$0xff]  }
 0x149   : > { %4024 = vmatmul.mubr.bf16.gmra.mrb[92].mxu1 %v7115_v8  ;;  %3870 = vmatprep.mubr.bf16.mxu0 %v1877_v26  ;;  %v1569_v8 = vrot.slane %v1567_v2, 1  ;;  %v7138_v26 = vld [vmem:[%s7695_s14 + $0x90] sm:$0xff]  }
 0x14a   : > { %4031 = vmatprep.mubr.bf16.mxu1 %v2359_v42  ;;  %v1886_v1 = vsel %vm1049_vm1, %v1884_v58, %v1885_v60  ;;  %v7155_v60 = vld [vmem:[#allocation6 + $0x230] sm:$0xff]  }
 0x14b   : > { %v7964_v16 = vsel %vm648_vm0, %v1565_v10, %v1569_v8  ;;  %v1586_v8 = vshll.u32 %v7145_v59, 16  ;;  %v7154_v59 = vld [vmem:[%s7695_s14 + $0xa8] sm:$0xff]   ;;  %6719 = vmatprep.subr.bf16.mxu0 %v7155_v60 }
 0x14c   : > { %6720 = vmatpush3.bf16.msra.mxu0 %v7155_v60 }
 0x14d   : > { %v1588_v17 = vrot.slane %v1586_v8, 1 }
 0x150   : > { %3871 = vmatmul.mubr.bf16.gmra.mrb[96].mxu0 %v7950_v48 }
 0x151   : > { %4032 = vmatmul.mubr.bf16.gmra.mrb[96].mxu1 %v7122_v35  ;;  %3878 = vmatprep.mubr.bf16.mxu0 %v1880_v55  ;;  %v1581_v35 = vrot.slane %v1579_v30, 1  ;;  %v1589_v30 = vor.u32 %v1588_v17, %v1584_v6 }
 0x152   : > { %4039 = vmatprep.mubr.bf16.mxu1 %v2371_v7  ;;  %v7147_v7 = vld [vmem:[%s7695_s14 + $0x9c] sm:$0xff]  }
 0x153   : > { %v7975_v49 = vsel %vm648_vm0, %v1577_v39, %v1581_v35  ;;  %v7149_v35 = vld [vmem:[%s7695_s14 + $0xa4] ss:$0 sps:$4 sm:$0x11]  }
 0x158   : > { %3879 = vmatmul.mubr.bf16.gmra.mrb[100].mxu0 %v7964_v16 }
 0x159   : > { %4040 = vmatmul.mubr.bf16.gmra.mrb[100].mxu1 %v7131_v63  ;;  %3886 = vmatprep.mubr.bf16.mxu0 %v1883_v19  ;;  %v2387_v63 = vshll.u32 %v7143_v38, 16  ;;  %v7996_v38 = vsel %vm648_vm0, %v1589_v30, %v1593_v24  ;;  %v7160_v30 = vld [vmem:[%s7695_s14 + $0xbc] ss:$0 sps:$4 sm:$0x11]  }
 0x15a   : > { %4047 = vmatprep.mubr.bf16.mxu1 %v2383_v33  ;;  %v7148_v33 = vld [vmem:[%s7695_s14 + $0x9c] sm:$0xfe]  }
 0x15b   : > { %v2389_v2 = vrot.slane %v2387_v63, 1  ;;  %v1887_v39 = vrot.slane %v7148_v33, 1  ;;  %v7156_v63 = vld [vmem:[#allocation8 + $0x30] sm:$0xff]  }
 0x15c   : > { %6767 = vmatprep.subr.bf16.mxu1 %v7156_v63 }
 0x15d   : > { %v2390_v10 = vor.u32 %v2389_v2, %v2385_v62  ;;  %6768 = vmatpush3.bf16.msra.mxu1 %v7156_v63 }
 0x15f   : > { %v2395_v22 = vsel %vm648_vm0, %v2390_v10, %v2394_v11 }
 0x160   : > { %3887 = vmatmul.mubr.bf16.gmra.mrb[104].mxu0 %v7975_v49 }
 0x161   : > { %4048 = vmatmul.mubr.bf16.gmra.mrb[104].mxu1 %v7138_v26  ;;  %3894 = vmatprep.mubr.bf16.mxu0 %v1886_v1 }
 0x162   : > { %4055 = vmatprep.mubr.bf16.mxu1 %v2395_v22 }
 0x163   : > { %v6227_v36 = vpop.f32.mrb[0].mxu0 }
 0x164   : > { %v6339_v37 = vpop.f32.mrb[0].mxu1  ;;  %v6228_v40 = vpop.f32.mrb[1].mxu0 }
 0x165   : > { %v6340_v41 = vpop.f32.mrb[1].mxu1  ;;  %v6229_v42 = vadd.f32 %v6228_v40, %v6227_v36  ;;  %v6230_v45 = vpop.f32.mrb[2].mxu0  ;;  %v1888_v40 = vrot.slane %v7149_v35, 1 }
 0x166   : > { %v6341_v43 = vadd.f32 %v6340_v41, %v6339_v37  ;;  %v6342_v46 = vpop.f32.mrb[2].mxu1  ;;  %v6231_v50 = vpop.f32.mrb[3].mxu0  ;;  %v7151_v41 = vld [vmem:[%s7695_s14 + $0xb0] ss:$0 sps:$4 sm:$0x11]  }
 0x167   : > { %v6343_v51 = vpop.f32.mrb[3].mxu1  ;;  %v6232_v54 = vadd.f32 %v6231_v50, %v6230_v45  ;;  %v2399_v45 = vshll.u32 %v7150_v21, 16  ;;  %v1889_v47 = vsel %vm1049_vm1, %v1887_v39, %v1888_v40  ;;  %v2404_v50 = vshll.u32 %v7151_v41, 16  ;;  %v7162_v39 = vld [vmem:[%s7695_s14 + $0xb0] ss:$0 sps:$4 sm:$0x11]  }
 0x168   : > { %v7979_v53 = vadd.f32 %v6341_v43, %v6229_v42  ;;  %v6344_v55 = vadd.f32 %v6343_v51, %v6342_v46  ;;  %v2397_v42 = vshrl.u32 %v7150_v21, 16  ;;  %3895 = vmatmul.mubr.bf16.gmra.mrb[108].mxu0 %v7996_v38  ;;  %v1596_v46 = vshrl.u32 %v7152_v28, 16  ;;  %v7153_v51 = vld [vmem:[%s7695_s14 + $0xa4] ss:$0 sps:$4 sm:$0x11]  }
 0x169   : > { %4056 = vmatmul.mubr.bf16.gmra.mrb[108].mxu1 %v7147_v7  ;;  %3902 = vmatprep.mubr.bf16.mxu0 %v1889_v47  ;;  %v2401_v52 = vrot.slane %v2399_v45, 1  ;;  %v1603_v58 = vshll.u32 %v7153_v51, 16  ;;  %v2409_v21 = vshrl.u32 %v7159_v5, 16  ;;  %v1615_v45 = vshll.u32 %v7162_v39, 16  ;;  %v7166_v51 = vld [vmem:[%s7695_s14 + $0xc0] sm:$0xff]  }
 0x16a   : > { %v7983_v0 = vadd.f32 %v6344_v55, %v6232_v54  ;;  %v1598_v54 = vshll.u32 %v7152_v28, 16  ;;  %v2406_v55 = vrot.slane %v2404_v50, 1 }
 0x16b   : > { %v6233_v9 = vpop.f32.mrb[4].mxu0  ;;  %v2402_v61 = vor.u32 %v2401_v52, %v2397_v42  ;;  %v1605_v1 = vrot.slane %v1603_v58, 1  ;;  %v1617_v60 = vrot.slane %v1615_v45, 1 }
 0x16c   : > { %v6345_v13 = vpop.f32.mrb[4].mxu1  ;;  %v6234_v14 = vpop.f32.mrb[5].mxu0  ;;  %v1600_v62 = vrot.slane %v1598_v54, 1 }
 0x16d   : > { %v6235_v18 = vadd.f32 %v6234_v14, %v6233_v9  ;;  %v6346_v19 = vpop.f32.mrb[5].mxu1  ;;  %v6236_v20 = vpop.f32.mrb[6].mxu0  ;;  %v2407_v6 = vsel %vm648_vm0, %v2402_v61, %v2406_v55  ;;  %v7157_v14 = vld [vmem:[%s7695_s14 + $0xa8] sm:$0xfe]  }
 0x16e   : > { %v6347_v25 = vadd.f32 %v6346_v19, %v6345_v13  ;;  %v6348_v26 = vpop.f32.mrb[6].mxu1  ;;  %v6237_v27 = vpop.f32.mrb[7].mxu0  ;;  %v1601_v7 = vor.u32 %v1600_v62, %v1596_v46  ;;  %4063 = vmatprep.mubr.bf16.mxu1 %v2407_v6  ;;  %v7163_v46 = vld [vmem:[%s7695_s14 + $0xb4] sm:$0xff]  }
 0x16f   : > { %v6238_v31 = vadd.f32 %v6237_v27, %v6236_v20  ;;  %v6349_v32 = vpop.f32.mrb[7].mxu1  ;;  %v7158_v20 = vld [vmem:[%s7695_s14 + $0xb0] ss:$0 sps:$4 sm:$0x11]   ;;  %v7161_v27 = vld [vmem:[%s7695_s14 + $0xa8] sm:$0xff]  }
 0x170   : > { %v7993_v36 = vadd.f32 %v6347_v25, %v6235_v18  ;;  %v6350_v37 = vadd.f32 %v6349_v32, %v6348_v26  ;;  %v8009_v17 = vsel %vm648_vm0, %v1601_v7, %v1605_v1  ;;  %v1890_v26 = vrot.slane %v7157_v14, 1 }
 0x171   : > { %4064 = vmatmul.mubr.bf16.gmra.mrb[112].mxu1 %v7154_v59  ;;  %3903 = vmatmul.mubr.bf16.gmra.mrb[112].mxu0 %v8009_v17  ;;  %v1891_v28 = vrot.slane %v7158_v20, 1  ;;  %v2411_v32 = vshll.u32 %v7159_v5, 16  ;;  %v1608_v33 = vshrl.u32 %v7161_v27, 16  ;;  %v1610_v41 = vshll.u32 %v7161_v27, 16  ;;  %v7168_v59 = vld [vmem:[%s7695_s14 + $0xb4] sm:$0xff]  }
 0x172   : > { %v8000_v43 = vadd.f32 %v6350_v37, %v6238_v31  ;;  %v2416_v37 = vshll.u32 %v7160_v30, 16 }
 0x173   : > { %v6239_v2 = vpop.f32.mrb[8].mxu0  ;;  %v1892_v35 = vsel %vm1049_vm1, %v1890_v26, %v1891_v28  ;;  %v2413_v40 = vrot.slane %v2411_v32, 1  ;;  %v1612_v54 = vrot.slane %v1610_v41, 1  ;;  %v1622_v26 = vshll.u32 %v7168_v59, 16  ;;  %v7171_v41 = vld [vmem:[#allocation6 + $0x238] sm:$0xff]  }
 0x174   : > { %v6351_v4 = vpop.f32.mrb[8].mxu1  ;;  %v6240_v8 = vpop.f32.mrb[9].mxu0  ;;  %3910 = vmatprep.mubr.bf16.mxu0 %v1892_v35  ;;  %v2418_v42 = vrot.slane %v2416_v37, 1  ;;  %v7169_v32 = vld [vmem:[%s7695_s14 + $0xbc] ss:$0 sps:$4 sm:$0x11]   ;;  %6721 = vmatprep.subr.bf16.mxu0 %v7171_v41 }
 0x175   : > { %v6352_v9 = vpop.f32.mrb[9].mxu1  ;;  %v6241_v10 = vadd.f32 %v6240_v8, %v6239_v2  ;;  %v6242_v12 = vpop.f32.mrb[10].mxu0  ;;  %v2414_v52 = vor.u32 %v2413_v40, %v2409_v21  ;;  %v2421_v2 = vshrl.u32 %v7166_v51, 16  ;;  %v1613_v5 = vor.u32 %v1612_v54, %v1608_v33  ;;  %v7164_v8 = vld [vmem:[%s7695_s14 + $0xb4] sm:$0xfe]   ;;  %v7170_v35 = vld [vmem:[%s7695_s14 + $0xc0] sm:$0xff]   ;;  %6722 = vmatpush3.bf16.msra.mxu0 %v7171_v41 }
 0x176   : > { %v6353_v11 = vadd.f32 %v6352_v9, %v6351_v4  ;;  %v6354_v13 = vpop.f32.mrb[10].mxu1  ;;  %v6243_v18 = vpop.f32.mrb[11].mxu0  ;;  %v1624_v33 = vrot.slane %v1622_v26, 1  ;;  %v1627_v40 = vshll.u32 %v7169_v32, 16  ;;  %v7175_v54 = vld [vmem:[%s7695_s14 + $0xcc] sm:$0xff]  }
 0x177   : > { %v6355_v19 = vpop.f32.mrb[11].mxu1  ;;  %v6244_v24 = vadd.f32 %v6243_v18, %v6242_v12  ;;  %v2419_v4 = vsel %vm648_vm0, %v2414_v52, %v2418_v42  ;;  %v7165_v12 = vld [vmem:[%s7695_s14 + $0xbc] ss:$0 sps:$4 sm:$0x11]   ;;  %v8030_v14 = vsel %vm648_vm0, %v1613_v5, %v1617_v60  ;;  %v1893_v18 = vrot.slane %v7164_v8, 1  ;;  %v7172_v42 = vld [vmem:[#allocation8 + $0x38] sm:$0xff]  }
 0x178   : > { %v8013_v22 = vadd.f32 %v6353_v11, %v6241_v10  ;;  %v6356_v25 = vadd.f32 %v6355_v19, %v6354_v13  ;;  %4071 = vmatprep.mubr.bf16.mxu1 %v2419_v4  ;;  %v2423_v13 = vshll.u32 %v7166_v51, 16  ;;  %v1620_v19 = vshrl.u32 %v7168_v59, 16  ;;  %6769 = vmatprep.subr.bf16.mxu1 %v7172_v42 }
 0x179   : > { %4072 = vmatmul.mubr.bf16.gmra.mrb[116].mxu1 %v7163_v46  ;;  %3911 = vmatmul.mubr.bf16.gmra.mrb[116].mxu0 %v8030_v14  ;;  %v1894_v21 = vrot.slane %v7165_v12, 1 }
 0x17a   : > { %v8017_v31 = vadd.f32 %v6356_v25, %v6244_v24  ;;  %v7167_v24 = vld [vmem:[%s7695_s14 + $0xc8] ss:$0 sps:$4 sm:$0x11]   ;;  %v2425_v25 = vrot.slane %v2423_v13, 1  ;;  %v1625_v39 = vor.u32 %v1624_v33, %v1620_v19  ;;  %6770 = vmatpush3.bf16.msra.mxu1 %v7172_v42  ;;  %v2435_v13 = vshll.u32 %v7175_v54, 16  ;;  %v7177_v19 = vld [vmem:[%s7695_s14 + $0xc0] sm:$0xff]  }
 0x17b   : > { %v6245_v47 = vpop.f32.mrb[12].mxu0  ;;  %v1895_v27 = vsel %vm1049_vm1, %v1893_v18, %v1894_v21  ;;  %v2428_v30 = vshll.u32 %v7167_v24, 16 }
 0x17c   : > { %v6357_v50 = vpop.f32.mrb[12].mxu1  ;;  %v6246_v55 = vpop.f32.mrb[13].mxu0  ;;  %v2426_v28 = vor.u32 %v2425_v25, %v2421_v2  ;;  %3918 = vmatprep.mubr.bf16.mxu0 %v1895_v27  ;;  %v2437_v24 = vrot.slane %v2435_v13, 1  ;;  %v7178_v25 = vld [vmem:[%s7695_s14 + $0xc8] ss:$0 sps:$4 sm:$0x11]  }
 0x17d   : > { %v6358_v58 = vpop.f32.mrb[13].mxu1  ;;  %v6247_v61 = vadd.f32 %v6246_v55, %v6245_v47  ;;  %v6248_v63 = vpop.f32.mrb[14].mxu0  ;;  %v2430_v37 = vrot.slane %v2428_v30, 1  ;;  %v1632_v27 = vshrl.u32 %v7177_v19, 16 }
 0x17e   : > { %v6359_v62 = vadd.f32 %v6358_v58, %v6357_v50  ;;  %v6360_v1 = vpop.f32.mrb[14].mxu1  ;;  %v6249_v6 = vpop.f32.mrb[15].mxu0  ;;  %v1629_v50 = vrot.slane %v1627_v40, 1  ;;  %v7183_v13 = vld [vmem:[%s7695_s14 + $0x2c] ss:$0 sps:$4 sm:$0x11]  }
 0x17f   : > { %v6361_v7 = vpop.f32.mrb[15].mxu1  ;;  %v6250_v10 = vadd.f32 %v6249_v6, %v6248_v63  ;;  %v2431_v47 = vsel %vm648_vm0, %v2426_v28, %v2430_v37  ;;  %v7174_v6 = vld [vmem:[%s7695_s14 + $0xc8] ss:$0 sps:$4 sm:$0x11]   ;;  %v1634_v28 = vshll.u32 %v7177_v19, 16  ;;  %v7179_v37 = vld [vmem:[%s7695_s14 + $0xcc] sm:$0xff]  }
 0x180   : > { %v8026_v9 = vadd.f32 %v6359_v62, %v6247_v61  ;;  %v6362_v11 = vadd.f32 %v6361_v7, %v6360_v1  ;;  %4079 = vmatprep.mubr.bf16.mxu1 %v2431_v47  ;;  %v8042_v61 = vsel %vm648_vm0, %v1625_v39, %v1629_v50  ;;  %v7173_v1 = vld [vmem:[%s7695_s14 + $0xc0] sm:$0xfe]   ;;  %v2433_v7 = vshrl.u32 %v7175_v54, 16 }
 0x181   : > { %4080 = vmatmul.mubr.bf16.gmra.mrb[120].mxu1 %v7170_v35  ;;  %3919 = vmatmul.mubr.bf16.gmra.mrb[120].mxu0 %v8042_v61  ;;  %v1896_v8 = vrot.slane %v7173_v1, 1  ;;  %v1897_v12 = vrot.slane %v7174_v6, 1  ;;  %v1639_v35 = vshll.u32 %v7178_v25, 16  ;;  %v1636_v41 = vrot.slane %v1634_v28, 1 }
 0x182   : > { %v8033_v20 = vadd.f32 %v6362_v11, %v6250_v10  ;;  %v7176_v10 = vld [vmem:[%s7695_s14 + $0xd4] ss:$0 sps:$4 sm:$0x11]   ;;  %v2438_v33 = vor.u32 %v2437_v24, %v2433_v7 }
 0x183   : > { %v6251_v45 = vpop.f32.mrb[16].mxu0  ;;  %v2440_v18 = vshll.u32 %v7176_v10, 16  ;;  %v1898_v21 = vsel %vm1049_vm1, %v1896_v8, %v1897_v12  ;;  %v7182_v8 = vld [vmem:[%s7695_s14 + $0x24] sm:$0xfe]  }
 0x184   : > { %v6363_v46 = vpop.f32.mrb[16].mxu1  ;;  %v6252_v51 = vpop.f32.mrb[17].mxu0  ;;  %3926 = vmatprep.mubr.bf16.mxu0 %v1898_v21  ;;  %v2655_v25 = vrot.slane %v7182_v8, 1 }
 0x185   : > { %v6364_v52 = vpop.f32.mrb[17].mxu1  ;;  %v6253_v55 = vadd.f32 %v6252_v51, %v6251_v45  ;;  %v6254_v59 = vpop.f32.mrb[18].mxu0  ;;  %v2442_v26 = vrot.slane %v2440_v18, 1  ;;  %v1641_v51 = vrot.slane %v1639_v35, 1 }
 0x186   : > { %v6365_v58 = vadd.f32 %v6364_v52, %v6363_v46  ;;  %v6366_v60 = vpop.f32.mrb[18].mxu1  ;;  %v6255_v62 = vpop.f32.mrb[19].mxu0 }
 0x187   : > { %v6367_v63 = vpop.f32.mrb[19].mxu1  ;;  %v6256_v4 = vadd.f32 %v6255_v62, %v6254_v59  ;;  %v2443_v50 = vsel %vm648_vm0, %v2438_v33, %v2442_v26  ;;  %v7180_v62 = vld [vmem:[%s7695_s14 + $0x18] sm:$0xfe]  }
 0x188   : > { %v8046_v2 = vadd.f32 %v6365_v58, %v6253_v55  ;;  %v6368_v5 = vadd.f32 %v6367_v63, %v6366_v60  ;;  %4087 = vmatprep.mubr.bf16.mxu1 %v2443_v50  ;;  %v1637_v55 = vor.u32 %v1636_v41, %v1632_v27  ;;  %v7181_v63 = vld [vmem:[%s7695_s14 + $0x20] ss:$0 sps:$4 sm:$0x11]   ;;  %v2652_v6 = vrot.slane %v7180_v62, 1 }
 0x189   : > { %4088 = vmatmul.mubr.bf16.gmra.mrb[124].mxu1 %v7179_v37  ;;  %v2653_v7 = vrot.slane %v7181_v63, 1  ;;  %v7184_v37 = vld [vmem:[%s7695_s14 + $0x30] sm:$0xfe]  }
 0x18a   : > { %v8050_v11 = vadd.f32 %v6368_v5, %v6256_v4  ;;  %v8062_v4 = vsel %vm648_vm0, %v1637_v55, %v1641_v51  ;;  %6771 = vmatprep.mubr.bf16.mxu1 %v7847_v29  ;;  %v2656_v29 = vrot.slane %v7183_v13, 1  ;;  %v7188_v13 = vld [vmem:[%s7695_s14 + $0x48] sm:$0xfe]  }
 0x18b   : > { %v6257_v30 = vpop.f32.mrb[20].mxu0  ;;  %3927 = vmatmul.mubr.bf16.gmra.mrb[124].mxu0 %v8062_v4  ;;  %v2654_v24 = vsel %vm1049_vm1, %v2652_v6, %v2653_v7 }
 0x18c   : > { %v6369_v32 = vpop.f32.mrb[20].mxu1  ;;  %v6258_v39 = vpop.f32.mrb[21].mxu0  ;;  %6723 = vmatprep.mubr.bf16.mxu0 %v2654_v24  ;;  %v2657_v41 = vsel %vm1049_vm1, %v2655_v25, %v2656_v29 }
 0x18d   : > { %v6370_v40 = vpop.f32.mrb[21].mxu1  ;;  %v6259_v42 = vadd.f32 %v6258_v39, %v6257_v30  ;;  %v6260_v46 = vpop.f32.mrb[22].mxu0  ;;  %v7185_v39 = vld [vmem:[%s7695_s14 + $0x38] ss:$0 sps:$4 sm:$0x11]  }
 0x18e   : > { %v6371_v45 = vadd.f32 %v6370_v40, %v6369_v32  ;;  %v6372_v47 = vpop.f32.mrb[22].mxu1  ;;  %v6261_v52 = vpop.f32.mrb[23].mxu0 }
 0x18f   : > { %v6373_v54 = vpop.f32.mrb[23].mxu1  ;;  %v6262_v59 = vadd.f32 %v6261_v52, %v6260_v46  ;;  %v2659_v46 = vrot.slane %v7185_v39, 1  ;;  %v7187_v52 = vld [vmem:[%s7695_s14 + $0x44] ss:$0 sps:$4 sm:$0x11]  }
 0x190   : > { %v8057_v58 = vadd.f32 %v6371_v45, %v6259_v42  ;;  %v6374_v60 = vadd.f32 %v6373_v54, %v6372_v47  ;;  %v2658_v45 = vrot.slane %v7184_v37, 1  ;;  %v7186_v47 = vld [vmem:[%s7695_s14 + $0x3c] sm:$0xfe]   ;;  %v2662_v7 = vrot.slane %v7187_v52, 1 }
 0x191   : > { %6772 = vmatmul.mubr.bf16.vlgmr.msra.gmra.mrb[128].mxu1 %v7861_v57  ;;  %v2661_v62 = vrot.slane %v7186_v47, 1  ;;  %v7193_v52 = vld [vmem:[%s7695_s14 + $0x68] ss:$0 sps:$4 sm:$0x11]  }
 0x192   : > { %v8064_v5 = vadd.f32 %v6374_v60, %v6262_v59  ;;  %v2660_v60 = vsel %vm1049_vm1, %v2658_v45, %v2659_v46  ;;  %6775 = vmatprep.mubr.bf16.mxu1 %v7872_v15  ;;  %v2664_v15 = vrot.slane %v7188_v13, 1 }
 0x193   : > { %v6263_v1 = vpop.f32.mrb[24].mxu0  ;;  %6724 = vmatmul.mubr.bf16.vlgmr.msra.gmra.mrb[128].mxu0 %v2657_v41 }
 0x194   : > { %v6375_v10 = vpop.f32.mrb[24].mxu1  ;;  %v6264_v12 = vpop.f32.mrb[25].mxu0  ;;  %6727 = vmatprep.mubr.bf16.mxu0 %v2660_v60 }
 0x195   : > { %v6265_v18 = vadd.f32 %v6264_v12, %v6263_v1  ;;  %v6376_v19 = vpop.f32.mrb[25].mxu1  ;;  %v6266_v21 = vpop.f32.mrb[26].mxu0 }
 0x196   : > { %v6377_v26 = vadd.f32 %v6376_v19, %v6375_v10  ;;  %v6378_v27 = vpop.f32.mrb[26].mxu1  ;;  %v6267_v28 = vpop.f32.mrb[27].mxu0 }
 0x197   : > { %v6268_v30 = vadd.f32 %v6267_v28, %v6266_v21  ;;  %v6379_v32 = vpop.f32.mrb[27].mxu1 }
 0x198   : > { %v8071_v33 = vadd.f32 %v6377_v26, %v6265_v18  ;;  %v6380_v35 = vadd.f32 %v6379_v32, %v6378_v27  ;;  %v7189_v18 = vld [vmem:[%s7695_s14 + $0x50] ss:$0 sps:$4 sm:$0x11]   ;;  %v7191_v27 = vld [vmem:[%s7695_s14 + $0x5c] ss:$0 sps:$4 sm:$0x11]   ;;  %v2663_v32 = vsel %vm1049_vm1, %v2661_v62, %v2662_v7 }
 0x199   : > { %v2665_v24 = vrot.slane %v7189_v18, 1  ;;  %6776 = vmatmul.mubr.bf16.gmra.mrb[132].mxu1 %v7886_v44 }
 0x19a   : > { %v8076_v42 = vadd.f32 %v6380_v35, %v6268_v30  ;;  %v7190_v35 = vld [vmem:[%s7695_s14 + $0x54] sm:$0xfe]   ;;  %6779 = vmatprep.mubr.bf16.mxu1 %v7898_v3  ;;  %v2671_v3 = vrot.slane %v7193_v52, 1 }
 0x19b   : > { %v6269_v40 = vpop.f32.mrb[28].mxu0  ;;  %v2666_v41 = vsel %vm1049_vm1, %v2664_v15, %v2665_v24  ;;  %6728 = vmatmul.mubr.bf16.gmra.mrb[132].mxu0 %v2663_v32 }
 0x19c   : > { %v6381_v50 = vpop.f32.mrb[28].mxu1  ;;  %v6270_v51 = vpop.f32.mrb[29].mxu0  ;;  %6731 = vmatprep.mubr.bf16.mxu0 %v2666_v41 }
 0x19d   : > { %v6271_v54 = vadd.f32 %v6270_v51, %v6269_v40  ;;  %v6382_v55 = vpop.f32.mrb[29].mxu1  ;;  %v6272_v59 = vpop.f32.mrb[30].mxu0  ;;  %v7192_v51 = vld [vmem:[%s7695_s14 + $0x60] sm:$0xfe]  }
 0x19e   : > { %v6383_v63 = vadd.f32 %v6382_v55, %v6381_v50  ;;  %v6384_v1 = vpop.f32.mrb[30].mxu1  ;;  %v6273_v6 = vpop.f32.mrb[31].mxu0  ;;  %v2667_v55 = vrot.slane %v7190_v35, 1 }
 0x19f   : > { %v6274_v8 = vadd.f32 %v6273_v6, %v6272_v59  ;;  %v6385_v10 = vpop.f32.mrb[31].mxu1  ;;  %v2668_v59 = vrot.slane %v7191_v27, 1  ;;  %v7196_v27 = vld [vmem:[%s7695_s14 + $0x78] sm:$0xfe]  }
 0x1a0   : > { %v8083_v57 = vadd.f32 %v6383_v63, %v6271_v54  ;;  %v6386_v12 = vadd.f32 %v6385_v10, %v6384_v1  ;;  %v2670_v63 = vrot.slane %v7192_v51, 1  ;;  %v7195_v10 = vld [vmem:[%s7695_s14 + $0x74] ss:$0 sps:$4 sm:$0x11]  }
 0x1a1   : > { %v2669_v24 = vsel %vm1049_vm1, %v2667_v55, %v2668_v59  ;;  %6780 = vmatmul.mubr.bf16.gmra.mrb[136].mxu1 %v7913_v34  ;;  %v7198_v59 = vld [vmem:[%s7695_s14 + $0x84] sm:$0xfe]  }
 0x1a2   : > { %v8087_v21 = vadd.f32 %v6386_v12, %v6274_v8  ;;  %v7194_v8 = vld [vmem:[%s7695_s14 + $0x6c] sm:$0xfe]   ;;  %6783 = vmatprep.mubr.bf16.mxu1 %v7925_v56 }
 0x1a3   : > { %v6275_v19 = vpop.f32.mrb[32].mxu0  ;;  %6732 = vmatmul.mubr.bf16.gmra.mrb[136].mxu0 %v2669_v24 }
 0x1a4   : > { %v6387_v25 = vpop.f32.mrb[32].mxu1  ;;  %v6276_v26 = vpop.f32.mrb[33].mxu0 }
 0x1a5   : > { %v6277_v28 = vadd.f32 %v6276_v26, %v6275_v19  ;;  %v6388_v29 = vpop.f32.mrb[33].mxu1  ;;  %v6278_v30 = vpop.f32.mrb[34].mxu0 }
 0x1a6   : > { %v6389_v37 = vadd.f32 %v6388_v29, %v6387_v25  ;;  %v6390_v39 = vpop.f32.mrb[34].mxu1  ;;  %v6279_v40 = vpop.f32.mrb[35].mxu0 }
 0x1a7   : > { %v6280_v45 = vadd.f32 %v6279_v40, %v6278_v30  ;;  %v6391_v46 = vpop.f32.mrb[35].mxu1  ;;  %v2672_v30 = vsel %vm1049_vm1, %v2670_v63, %v2671_v3 }
 0x1a8   : > { %v8095_v47 = vadd.f32 %v6389_v37, %v6277_v28  ;;  %v6392_v50 = vadd.f32 %v6391_v46, %v6390_v39  ;;  %v7197_v28 = vld [vmem:[%s7695_s14 + $0x80] ss:$0 sps:$4 sm:$0x11]   ;;  %v2673_v39 = vrot.slane %v7194_v8, 1  ;;  %6735 = vmatprep.mubr.bf16.mxu0 %v2672_v30  ;;  %v2674_v46 = vrot.slane %v7195_v10, 1 }
 0x1a9   : > { %v2677_v56 = vrot.slane %v7197_v28, 1  ;;  %6784 = vmatmul.mubr.bf16.gmra.mrb[140].mxu1 %v7939_v23 }
 0x1aa   : > { %v8099_v60 = vadd.f32 %v6392_v50, %v6280_v45  ;;  %v2676_v50 = vrot.slane %v7196_v27, 1  ;;  %v2675_v3 = vsel %vm1049_vm1, %v2673_v39, %v2674_v46  ;;  %6787 = vmatprep.mubr.bf16.mxu1 %v7950_v48  ;;  %v2679_v27 = vrot.slane %v7198_v59, 1  ;;  %v7205_v46 = vld [vmem:[%s7695_s14 + $0xb0] ss:$0 sps:$4 sm:$0x11]  }
 0x1ab   : > { %v6281_v54 = vpop.f32.mrb[36].mxu0  ;;  %6736 = vmatmul.mubr.bf16.gmra.mrb[140].mxu0 %v2675_v3 }
 0x1ac   : > { %v6393_v44 = vpop.f32.mrb[36].mxu1  ;;  %v6282_v62 = vpop.f32.mrb[37].mxu0  ;;  %v2678_v10 = vsel %vm1049_vm1, %v2676_v50, %v2677_v56  ;;  %v7204_v56 = vld [vmem:[%s7695_s14 + $0xa8] sm:$0xfe]  }
 0x1ad   : > { %v6283_v1 = vadd.f32 %v6282_v62, %v6281_v54  ;;  %v6394_v6 = vpop.f32.mrb[37].mxu1  ;;  %v6284_v7 = vpop.f32.mrb[38].mxu0  ;;  %6739 = vmatprep.mubr.bf16.mxu0 %v2678_v10 }
 0x1ae   : > { %v6395_v12 = vadd.f32 %v6394_v6, %v6393_v44  ;;  %v6396_v13 = vpop.f32.mrb[38].mxu1  ;;  %v6285_v18 = vpop.f32.mrb[39].mxu0  ;;  %v7199_v44 = vld [vmem:[%s7695_s14 + $0x8c] ss:$0 sps:$4 sm:$0x11]  }
 0x1af   : > { %v6286_v19 = vadd.f32 %v6285_v18, %v6284_v7  ;;  %v6397_v15 = vpop.f32.mrb[39].mxu1  ;;  %v7200_v6 = vld [vmem:[%s7695_s14 + $0x90] sm:$0xfe]   ;;  %v2680_v23 = vrot.slane %v7199_v44, 1 }
 0x1b0   : > { %v8104_v25 = vadd.f32 %v6395_v12, %v6283_v1  ;;  %v6398_v26 = vadd.f32 %v6397_v15, %v6396_v13  ;;  %v7201_v12 = vld [vmem:[%s7695_s14 + $0x98] ss:$0 sps:$4 sm:$0x11]   ;;  %v2682_v39 = vrot.slane %v7200_v6, 1 }
 0x1b1   : > { %v2683_v48 = vrot.slane %v7201_v12, 1  ;;  %v2681_v50 = vsel %vm1049_vm1, %v2679_v27, %v2680_v23  ;;  %6788 = vmatmul.mubr.bf16.gmra.mrb[144].mxu1 %v7964_v16  ;;  %v7208_v27 = vld [vmem:[%s7695_s14 + $0xc0] sm:$0xfe]  }
 0x1b2   : > { %v8111_v32 = vadd.f32 %v6398_v26, %v6286_v19  ;;  %6791 = vmatprep.mubr.bf16.mxu1 %v7975_v49  ;;  %v2689_v49 = vrot.slane %v7205_v46, 1 }
 0x1b3   : > { %v6287_v29 = vpop.f32.mrb[40].mxu0  ;;  %6740 = vmatmul.mubr.bf16.gmra.mrb[144].mxu0 %v2681_v50 }
 0x1b4   : > { %v6399_v35 = vpop.f32.mrb[40].mxu1  ;;  %v6288_v37 = vpop.f32.mrb[41].mxu0 }
 0x1b5   : > { %v6289_v40 = vadd.f32 %v6288_v37, %v6287_v29  ;;  %v6400_v41 = vpop.f32.mrb[41].mxu1  ;;  %v6290_v45 = vpop.f32.mrb[42].mxu0 }
 0x1b6   : > { %v6401_v34 = vadd.f32 %v6400_v41, %v6399_v35  ;;  %v6402_v51 = vpop.f32.mrb[42].mxu1  ;;  %v6291_v52 = vpop.f32.mrb[43].mxu0  ;;  %v7203_v41 = vld [vmem:[%s7695_s14 + $0xa4] ss:$0 sps:$4 sm:$0x11]  }
 0x1b7   : > { %v6292_v54 = vadd.f32 %v6291_v52, %v6290_v45  ;;  %v6403_v55 = vpop.f32.mrb[43].mxu1  ;;  %v2684_v52 = vsel %vm1049_vm1, %v2682_v39, %v2683_v48  ;;  %v2686_v16 = vrot.slane %v7203_v41, 1 }
 0x1b8   : > { %v8115_v62 = vadd.f32 %v6401_v34, %v6289_v40  ;;  %v6404_v63 = vadd.f32 %v6403_v55, %v6402_v51  ;;  %v7202_v40 = vld [vmem:[%s7695_s14 + $0x9c] sm:$0xfe]   ;;  %6743 = vmatprep.mubr.bf16.mxu0 %v2684_v52 }
 0x1b9   : > { %v2685_v6 = vrot.slane %v7202_v40, 1  ;;  %6792 = vmatmul.mubr.bf16.gmra.mrb[148].mxu1 %v7996_v38 }
 0x1ba   : > { %v8118_v1 = vadd.f32 %v6404_v63, %v6292_v54  ;;  %6795 = vmatprep.mubr.bf16.mxu1 %v8009_v17  ;;  %v7210_v17 = vld [vmem:[%s7695_s14 + $0xcc] sm:$0xfe]  }
 0x1bb   : > { %v6293_v7 = vpop.f32.mrb[44].mxu0 }
 0x1bc   : > { %v6405_v8 = vpop.f32.mrb[44].mxu1  ;;  %v6294_v13 = vpop.f32.mrb[45].mxu0 }
 0x1bd   : > { %v6406_v18 = vpop.f32.mrb[45].mxu1  ;;  %v6295_v19 = vadd.f32 %v6294_v13, %v6293_v7  ;;  %v6296_v24 = vpop.f32.mrb[46].mxu0 }
 0x1be   : > { %v6407_v15 = vadd.f32 %v6406_v18, %v6405_v8  ;;  %v6408_v26 = vpop.f32.mrb[46].mxu1  ;;  %v6297_v28 = vpop.f32.mrb[47].mxu0  ;;  %v2688_v18 = vrot.slane %v7204_v56, 1 }
 0x1bf   : > { %v6409_v29 = vpop.f32.mrb[47].mxu1  ;;  %v6298_v35 = vadd.f32 %v6297_v28, %v6296_v24  ;;  %v7207_v24 = vld [vmem:[%s7695_s14 + $0xbc] ss:$0 sps:$4 sm:$0x11]  }
 0x1c0   : > { %v8125_v30 = vadd.f32 %v6407_v15, %v6295_v19  ;;  %v6410_v37 = vadd.f32 %v6409_v29, %v6408_v26  ;;  %v7206_v15 = vld [vmem:[%s7695_s14 + $0xb4] sm:$0xfe]   ;;  %v2687_v26 = vsel %vm1049_vm1, %v2685_v6, %v2686_v16  ;;  %v2690_v23 = vsel %vm1049_vm1, %v2688_v18, %v2689_v49 }
 0x1c1   : > { %6744 = vmatmul.mubr.bf16.gmra.mrb[148].mxu0 %v2687_v26  ;;  %v2691_v50 = vrot.slane %v7206_v15, 1  ;;  %v2692_v52 = vrot.slane %v7207_v24, 1  ;;  %6796 = vmatmul.mubr.bf16.gmra.mrb[152].mxu1 %v8030_v14  ;;  %v2697_v24 = vrot.slane %v7210_v17, 1 }
 0x1c2   : > { %v8129_v45 = vadd.f32 %v6410_v37, %v6298_v35  ;;  %v7209_v35 = vld [vmem:[%s7695_s14 + $0xc8] ss:$0 sps:$4 sm:$0x11]   ;;  %6747 = vmatprep.mubr.bf16.mxu0 %v2690_v23  ;;  %6799 = vmatprep.mubr.bf16.mxu1 %v8042_v61 }
 0x1c3   : > { %v6299_v34 = vpop.f32.mrb[48].mxu0 }
 0x1c4   : > { %v6411_v51 = vpop.f32.mrb[48].mxu1  ;;  %v6300_v54 = vpop.f32.mrb[49].mxu0 }
 0x1c5   : > { %v6412_v55 = vpop.f32.mrb[49].mxu1  ;;  %v6301_v59 = vadd.f32 %v6300_v54, %v6299_v34  ;;  %v6302_v63 = vpop.f32.mrb[50].mxu0 }
 0x1c6   : > { %v6413_v44 = vadd.f32 %v6412_v55, %v6411_v51  ;;  %v6414_v3 = vpop.f32.mrb[50].mxu1  ;;  %v6303_v7 = vpop.f32.mrb[51].mxu0  ;;  %v2694_v55 = vrot.slane %v7208_v27, 1 }
 0x1c7   : > { %v6415_v8 = vpop.f32.mrb[51].mxu1  ;;  %v6304_v12 = vadd.f32 %v6303_v7, %v6302_v63  ;;  %v2693_v63 = vsel %vm1049_vm1, %v2691_v50, %v2692_v52 }
 0x1c8   : > { %v8137_v10 = vadd.f32 %v6413_v44, %v6301_v59  ;;  %v6416_v13 = vadd.f32 %v6415_v8, %v6414_v3  ;;  %v2695_v59 = vrot.slane %v7209_v35, 1  ;;  %v7211_v3 = vld [vmem:[%s7695_s14 + $0xd4] ss:$0 sps:$4 sm:$0x11]   ;;  %s5035_s14 = scalar_lea.sflag [#allocation5], %s7691_s10 }
 0x1c9   : > { %6748 = vmatmul.mubr.bf16.gmra.mrb[152].mxu0 %v2693_v63  ;;  %6800 = vmatmul.mubr.bf16.gmra.mrb[156].mxu1 %v8062_v4 }
 0x1ca   : > { %v8139_v19 = vadd.f32 %v6416_v13, %v6304_v12  ;;  %v2696_v8 = vsel %vm1049_vm1, %v2694_v55, %v2695_v59 }
 0x1cb   : > { %v6305_v28 = vpop.f32.mrb[52].mxu0  ;;  %6751 = vmatprep.mubr.bf16.mxu0 %v2696_v8 }
 0x1cc   : > { %v6417_v29 = vpop.f32.mrb[52].mxu1  ;;  %v6306_v37 = vpop.f32.mrb[53].mxu0 }
 0x1cd   : > { %v6418_v39 = vpop.f32.mrb[53].mxu1  ;;  %v6307_v48 = vadd.f32 %v6306_v37, %v6305_v28  ;;  %v6308_v41 = vpop.f32.mrb[54].mxu0  ;;  %v2698_v28 = vrot.slane %v7211_v3, 1 }
 0x1ce   : > { %v6419_v40 = vadd.f32 %v6418_v39, %v6417_v29  ;;  %v6420_v46 = vpop.f32.mrb[54].mxu1  ;;  %v6309_v34 = vpop.f32.mrb[55].mxu0 }
 0x1cf   : > { %v6421_v51 = vpop.f32.mrb[55].mxu1  ;;  %v6310_v56 = vadd.f32 %v6309_v34, %v6308_v41  ;;  %v2699_v37 = vsel %vm1049_vm1, %v2697_v24, %v2698_v28 }
 0x1d0   : > { %v8149_v38 = vadd.f32 %v6419_v40, %v6307_v48  ;;  %v6422_v54 = vadd.f32 %v6421_v51, %v6420_v46 }
 0x1d1   : > { %6752 = vmatmul.mubr.bf16.gmra.mrb[156].mxu0 %v2699_v37 }
 0x1d2   : > { %v8151_v44 = vadd.f32 %v6422_v54, %v6310_v56 }
 0x1d3   : > { %v6311_v6 = vpop.f32.mrb[56].mxu0 }
 0x1d4   : > { %v6423_v7 = vpop.f32.mrb[56].mxu1  ;;  %v6312_v16 = vpop.f32.mrb[57].mxu0 }
 0x1d5   : > { %v6424_v12 = vpop.f32.mrb[57].mxu1  ;;  %v6313_v13 = vadd.f32 %v6312_v16, %v6311_v6  ;;  %v6314_v49 = vpop.f32.mrb[58].mxu0 }
 0x1d6   : > { %v6425_v18 = vadd.f32 %v6424_v12, %v6423_v7  ;;  %v6426_v15 = vpop.f32.mrb[58].mxu1  ;;  %v6315_v26 = vpop.f32.mrb[59].mxu0 }
 0x1d7   : > { %v6427_v27 = vpop.f32.mrb[59].mxu1  ;;  %v6316_v23 = vadd.f32 %v6315_v26, %v6314_v49 }
 0x1d8   : > { %v8159_v29 = vadd.f32 %v6425_v18, %v6313_v13  ;;  %v6428_v14 = vadd.f32 %v6427_v27, %v6426_v15 }
 0x1da   : > { %v8161_v35 = vadd.f32 %v6428_v14, %v6316_v23 }
 0x1db   : > { %v6317_v39 = vpop.f32.mrb[60].mxu0 }
 0x1dc   : > { %v6429_v61 = vpop.f32.mrb[60].mxu1  ;;  %v6318_v48 = vpop.f32.mrb[61].mxu0 }
 0x1dd   : > { %v6430_v40 = vpop.f32.mrb[61].mxu1  ;;  %v6319_v41 = vadd.f32 %v6318_v48, %v6317_v39  ;;  %v6320_v50 = vpop.f32.mrb[62].mxu0 }
 0x1de   : > { %v6431_v46 = vadd.f32 %v6430_v40, %v6429_v61  ;;  %v6432_v34 = vpop.f32.mrb[62].mxu1  ;;  %v6321_v51 = vpop.f32.mrb[63].mxu0 }
 0x1df   : > { %v6433_v52 = vpop.f32.mrb[63].mxu1  ;;  %v6322_v54 = vadd.f32 %v6321_v51, %v6320_v50 }
 0x1e0   : > { %v8165_v56 = vadd.f32 %v6431_v46, %v6319_v41  ;;  %v6434_v55 = vadd.f32 %v6433_v52, %v6432_v34 }
 0x1e2   : > { %v8167_v59 = vadd.f32 %v6434_v55, %v6322_v54 }
 0x1e3   : > { %v6451_v3 = vpop.f32.mrb[64].mxu0 }
 0x1e4   : > { %v6563_v17 = vpop.f32.mrb[64].mxu1  ;;  %v6452_v7 = vpop.f32.mrb[65].mxu0 }
 0x1e5   : > { %v6564_v63 = vpop.f32.mrb[65].mxu1  ;;  %v6453_v16 = vadd.f32 %v6452_v7, %v6451_v3  ;;  %v6454_v12 = vpop.f32.mrb[66].mxu0 }
 0x1e6   : > { %v6565_v6 = vadd.f32 %v6564_v63, %v6563_v17  ;;  %v6566_v4 = vpop.f32.mrb[66].mxu1  ;;  %v6455_v18 = vpop.f32.mrb[67].mxu0 }
 0x1e7   : > { %v6567_v8 = vpop.f32.mrb[67].mxu1  ;;  %v3809_v49 = vadd.f32 %v6453_v16, %v7979_v53  ;;  %v6456_v15 = vadd.f32 %v6455_v18, %v6454_v12 }
 0x1e8   : > { %v6568_v13 = vadd.f32 %v6567_v8, %v6566_v4 }
 0x1e9   : > { %v3812_v24 = vadd.f32 %v6456_v15, %v7983_v0  ;;  %v8171_v26 = vadd.f32 %v6565_v6, %v3809_v49 }
 0x1eb   : > { %v8173_v28 = vadd.f32 %v6568_v13, %v3812_v24  ;;  %v6457_v23 = vpop.f32.mrb[68].mxu0 }
 0x1ec   : > { %v6569_v27 = vpop.f32.mrb[68].mxu1  ;;  %v6458_v37 = vpop.f32.mrb[69].mxu0 }
 0x1ed   : > { %v6570_v14 = vpop.f32.mrb[69].mxu1  ;;  %v6459_v48 = vadd.f32 %v6458_v37, %v6457_v23  ;;  %v6460_v40 = vpop.f32.mrb[70].mxu0 }
 0x1ee   : > { %v6571_v39 = vadd.f32 %v6570_v14, %v6569_v27  ;;  %v6572_v61 = vpop.f32.mrb[70].mxu1  ;;  %v6461_v46 = vpop.f32.mrb[71].mxu0 }
 0x1ef   : > { %v6573_v41 = vpop.f32.mrb[71].mxu1  ;;  %v3817_v53 = vadd.f32 %v6459_v48, %v7993_v36  ;;  %v6462_v34 = vadd.f32 %v6461_v46, %v6460_v40 }
 0x1f0   : > { %v6574_v50 = vadd.f32 %v6573_v41, %v6572_v61 }
 0x1f1   : > { %v3820_v0 = vadd.f32 %v6462_v34, %v8000_v43  ;;  %v8177_v51 = vadd.f32 %v6571_v39, %v3817_v53 }
 0x1f3   : > { %v6463_v54 = vpop.f32.mrb[72].mxu0  ;;  %v8179_v17 = vadd.f32 %v6574_v50, %v3820_v0 }
 0x1f4   : > { %v6575_v52 = vpop.f32.mrb[72].mxu1  ;;  %v6464_v63 = vpop.f32.mrb[73].mxu0 }
 0x1f5   : > { %v6576_v55 = vpop.f32.mrb[73].mxu1  ;;  %v6465_v4 = vadd.f32 %v6464_v63, %v6463_v54  ;;  %v6466_v7 = vpop.f32.mrb[74].mxu0 }
 0x1f6   : > { %v6577_v3 = vadd.f32 %v6576_v55, %v6575_v52  ;;  %v6578_v6 = vpop.f32.mrb[74].mxu1  ;;  %v6467_v16 = vpop.f32.mrb[75].mxu0 }
 0x1f7   : > { %v6579_v8 = vpop.f32.mrb[75].mxu1  ;;  %v3825_v36 = vadd.f32 %v6465_v4, %v8013_v22  ;;  %v6468_v13 = vadd.f32 %v6467_v16, %v6466_v7 }
 0x1f8   : > { %v6580_v12 = vadd.f32 %v6579_v8, %v6578_v6 }
 0x1f9   : > { %v3828_v43 = vadd.f32 %v6468_v13, %v8017_v31  ;;  %v8183_v18 = vadd.f32 %v6577_v3, %v3825_v36 }
 0x1fb   : > { %v8185_v15 = vadd.f32 %v6580_v12, %v3828_v43  ;;  %v6469_v27 = vpop.f32.mrb[76].mxu0 }
 0x1fc   : > { %v6581_v49 = vpop.f32.mrb[76].mxu1  ;;  %v6470_v37 = vpop.f32.mrb[77].mxu0 }
 0x1fd   : > { %v6582_v24 = vpop.f32.mrb[77].mxu1  ;;  %v6471_v61 = vadd.f32 %v6470_v37, %v6469_v27  ;;  %v6472_v48 = vpop.f32.mrb[78].mxu0 }
 0x1fe   : > { %v6583_v23 = vadd.f32 %v6582_v24, %v6581_v49  ;;  %v6584_v14 = vpop.f32.mrb[78].mxu1  ;;  %v6473_v41 = vpop.f32.mrb[79].mxu0 }
 0x1ff   : > { %v6585_v39 = vpop.f32.mrb[79].mxu1  ;;  %v3833_v22 = vadd.f32 %v6471_v61, %v8026_v9  ;;  %v6474_v46 = vadd.f32 %v6473_v41, %v6472_v48 }
 0x200   : > { %v6586_v40 = vadd.f32 %v6585_v39, %v6584_v14 }
 0x201   : > { %v3836_v31 = vadd.f32 %v6474_v46, %v8033_v20  ;;  %v8189_v53 = vadd.f32 %v6583_v23, %v3833_v22 }
 0x203   : > { %v6475_v0 = vpop.f32.mrb[80].mxu0  ;;  %v8191_v55 = vadd.f32 %v6586_v40, %v3836_v31 }
 0x204   : > { %v6587_v50 = vpop.f32.mrb[80].mxu1  ;;  %v6476_v63 = vpop.f32.mrb[81].mxu0 }
 0x205   : > { %v6588_v34 = vpop.f32.mrb[81].mxu1  ;;  %v6477_v6 = vadd.f32 %v6476_v63, %v6475_v0  ;;  %v6478_v4 = vpop.f32.mrb[82].mxu0 }
 0x206   : > { %v6589_v52 = vadd.f32 %v6588_v34, %v6587_v50  ;;  %v6590_v54 = vpop.f32.mrb[82].mxu1  ;;  %v6479_v8 = vpop.f32.mrb[83].mxu0 }
 0x207   : > { %v6591_v3 = vpop.f32.mrb[83].mxu1  ;;  %v3841_v9 = vadd.f32 %v6477_v6, %v8046_v2  ;;  %v6480_v16 = vadd.f32 %v6479_v8, %v6478_v4 }
 0x208   : > { %v6592_v7 = vadd.f32 %v6591_v3, %v6590_v54 }
 0x209   : > { %v3844_v20 = vadd.f32 %v6480_v16, %v8050_v11  ;;  %v8195_v12 = vadd.f32 %v6589_v52, %v3841_v9 }
 0x20b   : > { %v8197_v13 = vadd.f32 %v6592_v7, %v3844_v20  ;;  %v6481_v49 = vpop.f32.mrb[84].mxu0 }
 0x20c   : > { %v6593_v36 = vpop.f32.mrb[84].mxu1  ;;  %v6482_v23 = vpop.f32.mrb[85].mxu0 }
 0x20d   : > { %v6594_v43 = vpop.f32.mrb[85].mxu1  ;;  %v6483_v37 = vadd.f32 %v6482_v23, %v6481_v49  ;;  %v6484_v39 = vpop.f32.mrb[86].mxu0 }
 0x20e   : > { %v6595_v24 = vadd.f32 %v6594_v43, %v6593_v36  ;;  %v6596_v27 = vpop.f32.mrb[86].mxu1  ;;  %v6485_v48 = vpop.f32.mrb[87].mxu0 }
 0x20f   : > { %v6597_v14 = vpop.f32.mrb[87].mxu1  ;;  %v3849_v2 = vadd.f32 %v6483_v37, %v8057_v58  ;;  %v6486_v40 = vadd.f32 %v6485_v48, %v6484_v39 }
 0x210   : > { %v6598_v61 = vadd.f32 %v6597_v14, %v6596_v27 }
 0x211   : > { %v3852_v11 = vadd.f32 %v6486_v40, %v8064_v5  ;;  %v8201_v22 = vadd.f32 %v6595_v24, %v3849_v2 }
 0x213   : > { %v6487_v31 = vpop.f32.mrb[88].mxu0  ;;  %v8203_v0 = vadd.f32 %v6598_v61, %v3852_v11 }
 0x214   : > { %v6599_v41 = vpop.f32.mrb[88].mxu1  ;;  %v6488_v52 = vpop.f32.mrb[89].mxu0 }
 0x215   : > { %v6600_v46 = vpop.f32.mrb[89].mxu1  ;;  %v6489_v63 = vadd.f32 %v6488_v52, %v6487_v31  ;;  %v6490_v3 = vpop.f32.mrb[90].mxu0 }
 0x216   : > { %v6601_v50 = vadd.f32 %v6600_v46, %v6599_v41  ;;  %v6602_v34 = vpop.f32.mrb[90].mxu1  ;;  %v6491_v4 = vpop.f32.mrb[91].mxu0 }
 0x217   : > { %v6603_v54 = vpop.f32.mrb[91].mxu1  ;;  %v3857_v58 = vadd.f32 %v6489_v63, %v8071_v33  ;;  %v6492_v7 = vadd.f32 %v6491_v4, %v6490_v3 }
 0x218   : > { %v6604_v6 = vadd.f32 %v6603_v54, %v6602_v34 }
 0x219   : > { %v3860_v5 = vadd.f32 %v6492_v7, %v8076_v42  ;;  %v8207_v8 = vadd.f32 %v6601_v50, %v3857_v58 }
 0x21b   : > { %v8209_v16 = vadd.f32 %v6604_v6, %v3860_v5  ;;  %v6493_v20 = vpop.f32.mrb[92].mxu0 }
 0x21c   : > { %v6605_v9 = vpop.f32.mrb[92].mxu1  ;;  %v6494_v43 = vpop.f32.mrb[93].mxu0 }
 0x21d   : > { %v6606_v36 = vpop.f32.mrb[93].mxu1  ;;  %v6495_v27 = vadd.f32 %v6494_v43, %v6493_v20  ;;  %v6496_v23 = vpop.f32.mrb[94].mxu0 }
 0x21e   : > { %v6607_v49 = vadd.f32 %v6606_v36, %v6605_v9  ;;  %v6608_v24 = vpop.f32.mrb[94].mxu1  ;;  %v6497_v37 = vpop.f32.mrb[95].mxu0 }
 0x21f   : > { %v6609_v14 = vpop.f32.mrb[95].mxu1  ;;  %v3865_v33 = vadd.f32 %v6495_v27, %v8083_v57  ;;  %v6498_v61 = vadd.f32 %v6497_v37, %v6496_v23 }
 0x220   : > { %v6610_v39 = vadd.f32 %v6609_v14, %v6608_v24 }
 0x221   : > { %v3868_v42 = vadd.f32 %v6498_v61, %v8087_v21  ;;  %v8213_v48 = vadd.f32 %v6607_v49, %v3865_v33 }
 0x223   : > { %v6499_v40 = vpop.f32.mrb[96].mxu0  ;;  %v8215_v41 = vadd.f32 %v6610_v39, %v3868_v42 }
 0x224   : > { %v6611_v2 = vpop.f32.mrb[96].mxu1  ;;  %v6500_v46 = vpop.f32.mrb[97].mxu0 }
 0x225   : > { %v6612_v11 = vpop.f32.mrb[97].mxu1  ;;  %v6501_v34 = vadd.f32 %v6500_v46, %v6499_v40  ;;  %v6502_v52 = vpop.f32.mrb[98].mxu0 }
 0x226   : > { %v6613_v31 = vadd.f32 %v6612_v11, %v6611_v2  ;;  %v6614_v50 = vpop.f32.mrb[98].mxu1  ;;  %v6503_v63 = vpop.f32.mrb[99].mxu0 }
 0x227   : > { %v6615_v54 = vpop.f32.mrb[99].mxu1  ;;  %v3873_v57 = vadd.f32 %v6501_v34, %v8095_v47  ;;  %v6504_v6 = vadd.f32 %v6503_v63, %v6502_v52 }
 0x228   : > { %v6616_v3 = vadd.f32 %v6615_v54, %v6614_v50 }
 0x229   : > { %v3876_v21 = vadd.f32 %v6504_v6, %v8099_v60  ;;  %v8219_v4 = vadd.f32 %v6613_v31, %v3873_v57 }
 0x22b   : > { %v8221_v7 = vadd.f32 %v6616_v3, %v3876_v21  ;;  %v6505_v9 = vpop.f32.mrb[100].mxu0 }
 0x22c   : > { %v6617_v58 = vpop.f32.mrb[100].mxu1  ;;  %v6506_v43 = vpop.f32.mrb[101].mxu0 }
 0x22d   : > { %v6618_v5 = vpop.f32.mrb[101].mxu1  ;;  %v6507_v24 = vadd.f32 %v6506_v43, %v6505_v9  ;;  %v6508_v27 = vpop.f32.mrb[102].mxu0 }
 0x22e   : > { %v6619_v20 = vadd.f32 %v6618_v5, %v6617_v58  ;;  %v6620_v36 = vpop.f32.mrb[102].mxu1  ;;  %v6509_v14 = vpop.f32.mrb[103].mxu0 }
 0x22f   : > { %v6621_v49 = vpop.f32.mrb[103].mxu1  ;;  %v3881_v47 = vadd.f32 %v6507_v24, %v8104_v25  ;;  %v6510_v37 = vadd.f32 %v6509_v14, %v6508_v27 }
 0x230   : > { %v6622_v23 = vadd.f32 %v6621_v49, %v6620_v36 }
 0x231   : > { %v3884_v60 = vadd.f32 %v6510_v37, %v8111_v32  ;;  %v8225_v33 = vadd.f32 %v6619_v20, %v3881_v47 }
 0x233   : > { %v6511_v42 = vpop.f32.mrb[104].mxu0  ;;  %v8227_v11 = vadd.f32 %v6622_v23, %v3884_v60 }
 0x234   : > { %v6623_v39 = vpop.f32.mrb[104].mxu1  ;;  %v6512_v46 = vpop.f32.mrb[105].mxu0 }
 0x235   : > { %v6624_v61 = vpop.f32.mrb[105].mxu1  ;;  %v6513_v50 = vadd.f32 %v6512_v46, %v6511_v42  ;;  %v6514_v34 = vpop.f32.mrb[106].mxu0 }
 0x236   : > { %v6625_v2 = vadd.f32 %v6624_v61, %v6623_v39  ;;  %v6626_v40 = vpop.f32.mrb[106].mxu1  ;;  %v6515_v54 = vpop.f32.mrb[107].mxu0 }
 0x237   : > { %v6627_v31 = vpop.f32.mrb[107].mxu1  ;;  %v3889_v25 = vadd.f32 %v6513_v50, %v8115_v62  ;;  %v6516_v63 = vadd.f32 %v6515_v54, %v6514_v34 }
 0x238   : > { %v6628_v52 = vadd.f32 %v6627_v31, %v6626_v40 }
 0x239   : > { %v3892_v32 = vadd.f32 %v6516_v63, %v8118_v1  ;;  %v8231_v3 = vadd.f32 %v6625_v2, %v3889_v25 }
 0x23b   : > { %v8233_v57 = vadd.f32 %v6628_v52, %v3892_v32  ;;  %v6517_v58 = vpop.f32.mrb[108].mxu0 }
 0x23c   : > { %v6629_v6 = vpop.f32.mrb[108].mxu1  ;;  %v6518_v20 = vpop.f32.mrb[109].mxu0 }
 0x23d   : > { %v6630_v21 = vpop.f32.mrb[109].mxu1  ;;  %v6519_v43 = vadd.f32 %v6518_v20, %v6517_v58  ;;  %v6520_v49 = vpop.f32.mrb[110].mxu0 }
 0x23e   : > { %v6631_v5 = vadd.f32 %v6630_v21, %v6629_v6  ;;  %v6632_v9 = vpop.f32.mrb[110].mxu1  ;;  %v6521_v27 = vpop.f32.mrb[111].mxu0 }
 0x23f   : > { %v6633_v36 = vpop.f32.mrb[111].mxu1  ;;  %v3897_v62 = vadd.f32 %v6519_v43, %v8125_v30  ;;  %v6522_v23 = vadd.f32 %v6521_v27, %v6520_v49 }
 0x240   : > { %v6634_v24 = vadd.f32 %v6633_v36, %v6632_v9 }
 0x241   : > { %v3900_v1 = vadd.f32 %v6522_v23, %v8129_v45  ;;  %v8237_v14 = vadd.f32 %v6631_v5, %v3897_v62 }
 0x243   : > { %v8239_v37 = vadd.f32 %v6634_v24, %v3900_v1 }
 0x244   : > { %v6635_v47 = vpop.f32.mrb[112].mxu1  ;;  %v6523_v60 = vpop.f32.mrb[112].mxu0 }
 0x245   : > { %v6636_v39 = vpop.f32.mrb[113].mxu1  ;;  %v6524_v61 = vpop.f32.mrb[113].mxu0 }
 0x246   : > { %v6637_v42 = vadd.f32 %v6636_v39, %v6635_v47  ;;  %v6638_v2 = vpop.f32.mrb[114].mxu1  ;;  %v6525_v40 = vadd.f32 %v6524_v61, %v6523_v60  ;;  %v6526_v46 = vpop.f32.mrb[114].mxu0 }
 0x247   : > { %v6639_v31 = vpop.f32.mrb[115].mxu1  ;;  %v6527_v50 = vpop.f32.mrb[115].mxu0 }
 0x248   : > { %v6640_v34 = vadd.f32 %v6639_v31, %v6638_v2  ;;  %v3905_v30 = vadd.f32 %v6525_v40, %v8137_v10  ;;  %v6528_v52 = vadd.f32 %v6527_v50, %v6526_v46 }
 0x24a   : > { %v3908_v45 = vadd.f32 %v6528_v52, %v8139_v19  ;;  %v8243_v54 = vadd.f32 %v6637_v42, %v3905_v30 }
 0x24c   : > { %v8245_v25 = vadd.f32 %v6640_v34, %v3908_v45  ;;  %v6641_v63 = vpop.f32.mrb[116].mxu1  ;;  %v6529_v32 = vpop.f32.mrb[116].mxu0 }
 0x24d   : > { %v6642_v6 = vpop.f32.mrb[117].mxu1  ;;  %v6530_v21 = vpop.f32.mrb[117].mxu0 }
 0x24e   : > { %v6643_v58 = vadd.f32 %v6642_v6, %v6641_v63  ;;  %v6644_v5 = vpop.f32.mrb[118].mxu1  ;;  %v6531_v9 = vadd.f32 %v6530_v21, %v6529_v32  ;;  %v6532_v20 = vpop.f32.mrb[118].mxu0 }
 0x24f   : > { %v6645_v36 = vpop.f32.mrb[119].mxu1  ;;  %v6533_v43 = vpop.f32.mrb[119].mxu0 }
 0x250   : > { %v6646_v49 = vadd.f32 %v6645_v36, %v6644_v5  ;;  %v3913_v10 = vadd.f32 %v6531_v9, %v8149_v38  ;;  %v6534_v24 = vadd.f32 %v6533_v43, %v6532_v20 }
 0x252   : > { %v3916_v19 = vadd.f32 %v6534_v24, %v8151_v44  ;;  %v8249_v27 = vadd.f32 %v6643_v58, %v3913_v10 }
 0x254   : > { %v6647_v62 = vpop.f32.mrb[120].mxu1  ;;  %v8251_v23 = vadd.f32 %v6646_v49, %v3916_v19  ;;  %v6535_v1 = vpop.f32.mrb[120].mxu0 }
 0x255   : > { %v6648_v47 = vpop.f32.mrb[121].mxu1  ;;  %v6536_v60 = vpop.f32.mrb[121].mxu0 }
 0x256   : > { %v6649_v39 = vadd.f32 %v6648_v47, %v6647_v62  ;;  %v6650_v61 = vpop.f32.mrb[122].mxu1  ;;  %v6537_v42 = vadd.f32 %v6536_v60, %v6535_v1  ;;  %v6538_v2 = vpop.f32.mrb[122].mxu0 }
 0x257   : > { %v6651_v40 = vpop.f32.mrb[123].mxu1  ;;  %v6539_v46 = vpop.f32.mrb[123].mxu0 }
 0x258   : > { %v6652_v31 = vadd.f32 %v6651_v40, %v6650_v61  ;;  %v3921_v38 = vadd.f32 %v6537_v42, %v8159_v29  ;;  %v6540_v50 = vadd.f32 %v6539_v46, %v6538_v2 }
 0x25a   : > { %v3924_v44 = vadd.f32 %v6540_v50, %v8161_v35  ;;  %v8255_v34 = vadd.f32 %v6649_v39, %v3921_v38 }
 0x25c   : > { %v8257_v30 = vadd.f32 %v6652_v31, %v3924_v44  ;;  %v6653_v52 = vpop.f32.mrb[124].mxu1 }
 0x25d   : > { %v6654_v45 = vpop.f32.mrb[125].mxu1 }
 0x25e   : > { %v6541_v63 = vpop.f32.mrb[124].mxu0  ;;  %v6655_v32 = vadd.f32 %v6654_v45, %v6653_v52  ;;  %v6656_v6 = vpop.f32.mrb[126].mxu1 }
 0x25f   : > { %v6542_v21 = vpop.f32.mrb[125].mxu0  ;;  %v6657_v58 = vpop.f32.mrb[127].mxu1 }
 0x260   : > { %v6543_v5 = vadd.f32 %v6542_v21, %v6541_v63  ;;  %v6544_v9 = vpop.f32.mrb[126].mxu0  ;;  %v6658_v20 = vadd.f32 %v6657_v58, %v6656_v6 }
 0x261   : > { %v6545_v36 = vpop.f32.mrb[127].mxu0 }
 0x262   : > { %v3929_v29 = vadd.f32 %v6543_v5, %v8165_v56  ;;  %v6546_v43 = vadd.f32 %v6545_v36, %v6544_v9 }
 0x264   : > { %v3932_v35 = vadd.f32 %v6546_v43, %v8167_v59  ;;  %v6773_v49 = vpop.f32.mrb[128].mxu1  ;;  %v8262_v10 = vadd.f32 %v6655_v32, %v3929_v29 }
 0x265   : > { %v4639_v24 = vpop.f32.mrb[129].mxu1 }
 0x266   : > { %v6725_v19 = vpop.f32.mrb[128].mxu0  ;;  %v4964_v62 = vmul.f32 %v4639_v24, %v4639_v24  ;;  %v6774_v1 = vpop.f32.mrb[130].mxu1  ;;  %v8264_v47 = vadd.f32 %v6658_v20, %v3932_v35 }
 0x267   : > { %v4139_v60 = vadd.f32 %v6725_v19, %v8177_v51  ;;  %v4130_v39 = vpop.f32.mrb[129].mxu0  ;;  %v6109_v61 = vpack.c.bf16 %v6774_v1, %v6773_v49  ;;  %v4642_v42 = vpop.f32.mrb[131].mxu1  ;;  %v4966_v51 = vmul.f32 %v6773_v49, %v6773_v49  ;;  %v4967_v63 = vmul.f32 %v6774_v1, %v6774_v1 }
 0x268   : > { %v4131_v56 = vadd.f32 %v4130_v39, %v8171_v26  ;;  %v6726_v2 = vpop.f32.mrb[130].mxu0  ;;  %v6104_v40 = vpack.c.bf16 %v4642_v42, %v4639_v24  ;;  %v4926_v59 = vadd.f32 %v4642_v42, %v4639_v24  ;;  %v4965_v46 = vmul.f32 %v4642_v42, %v4642_v42 }
 0x269   : > { %v4142_v31 = vadd.f32 %v6726_v2, %v8179_v17  ;;  %6196 = vst [vmem:[%s8271_s29 + $0x8] sm:$0xff] %v6109_v61   ;;  %v4133_v38 = vpop.f32.mrb[131].mxu0  ;;  %v4457_v5 = vmul.f32 %v4139_v60, %v4139_v60 }
 0x26a   : > { %v4134_v50 = vadd.f32 %v4133_v38, %v8173_v28  ;;  %6105 = vst [vmem:[%s8271_s29] sm:$0xff] %v6104_v40   ;;  %v4927_v44 = vadd.f32 %v6773_v49, %v4926_v59  ;;  %v4996_v26 = vadd.f32 %v4965_v46, %v4964_v62  ;;  %v4455_v52 = vmul.f32 %v4131_v56, %v4131_v56 }
 0x26b   : > { %v6029_v45 = vpack.c.bf16 %v4142_v31, %v4139_v60  ;;  %v4458_v24 = vmul.f32 %v4142_v31, %v4142_v31 }
 0x26c   : > { %v6024_v32 = vpack.c.bf16 %v4134_v50, %v4131_v56  ;;  %v4417_v6 = vadd.f32 %v4134_v50, %v4131_v56  ;;  %v4456_v17 = vmul.f32 %v4134_v50, %v4134_v50  ;;  %v4997_v21 = vadd.f32 %v4996_v26, %v4966_v51  ;;  %v6777_v58 = vpop.f32.mrb[132].mxu1 }
 0x26d   : > { %6181 = vst [vmem:[%s8278_s16 + $0x8] sm:$0xff] %v6029_v45   ;;  %v4655_v9 = vpop.f32.mrb[133].mxu1  ;;  %v4928_v28 = vadd.f32 %v6774_v1, %v4927_v44 }
 0x26e   : > { %6025 = vst [vmem:[%s8278_s16] sm:$0xff] %v6024_v32   ;;  %v4418_v20 = vadd.f32 %v4417_v6, %v4139_v60  ;;  %v4487_v36 = vadd.f32 %v4456_v17, %v4455_v52  ;;  %v6729_v29 = vpop.f32.mrb[132].mxu0  ;;  %v4968_v43 = vmul.f32 %v4655_v9, %v4655_v9  ;;  %v4998_v35 = vadd.f32 %v4997_v21, %v4967_v63  ;;  %v6778_v49 = vpop.f32.mrb[134].mxu1 }
 0x26f   : > { %v4155_v19 = vadd.f32 %v6729_v29, %v8189_v53  ;;  %v4146_v62 = vpop.f32.mrb[133].mxu0  ;;  %v4929_v39 = vadd.f32 %v4928_v28, %v4655_v9  ;;  %v6119_v61 = vpack.c.bf16 %v6778_v49, %v6777_v58  ;;  %v4658_v42 = vpop.f32.mrb[135].mxu1  ;;  %v4970_v17 = vmul.f32 %v6777_v58, %v6777_v58 }
 0x270   : > { %v4488_v56 = vadd.f32 %v4487_v36, %v4457_v5  ;;  %v4147_v2 = vadd.f32 %v4146_v62, %v8183_v18  ;;  %v4419_v1 = vadd.f32 %v4418_v20, %v4142_v31  ;;  %v4999_v40 = vadd.f32 %v4998_v35, %v4968_v43  ;;  %v6730_v60 = vpop.f32.mrb[134].mxu0 }
 0x271   : > { %v4158_v59 = vadd.f32 %v6730_v60, %v8191_v55  ;;  %6198 = vst [vmem:[%s8271_s29 + $0x18] sm:$0xff] %v6119_v61   ;;  %v4149_v46 = vpop.f32.mrb[135].mxu0  ;;  %v6114_v38 = vpack.c.bf16 %v4658_v42, %v4655_v9  ;;  %v4930_v51 = vadd.f32 %v4929_v39, %v4658_v42  ;;  %v4969_v18 = vmul.f32 %v4658_v42, %v4658_v42 }
 0x272   : > { %v4420_v50 = vadd.f32 %v4419_v1, %v4147_v2  ;;  %v4459_v53 = vmul.f32 %v4147_v2, %v4147_v2  ;;  %v4489_v44 = vadd.f32 %v4488_v56, %v4458_v24  ;;  %v4150_v26 = vadd.f32 %v4149_v46, %v8185_v15 }
 0x273   : > { %v6039_v52 = vpack.c.bf16 %v4158_v59, %v4155_v19  ;;  %6197 = vst [vmem:[%s8271_s29 + $0x10] sm:$0xff] %v6114_v38   ;;  %v4931_v45 = vadd.f32 %v6777_v58, %v4930_v51  ;;  %v4971_v21 = vmul.f32 %v6778_v49, %v6778_v49  ;;  %v5000_v5 = vadd.f32 %v4999_v40, %v4969_v18 }
 0x274   : > { %v4490_v31 = vadd.f32 %v4489_v44, %v4459_v53  ;;  %v6034_v63 = vpack.c.bf16 %v4150_v26, %v4147_v2  ;;  %v4421_v32 = vadd.f32 %v4420_v50, %v4150_v26  ;;  %v4460_v6 = vmul.f32 %v4150_v26, %v4150_v26  ;;  %v6781_v55 = vpop.f32.mrb[136].mxu1 }
 0x275   : > { %6183 = vst [vmem:[%s8278_s16 + $0x18] sm:$0xff] %v6039_v52   ;;  %v4671_v9 = vpop.f32.mrb[137].mxu1  ;;  %v4932_v28 = vadd.f32 %v6778_v49, %v4931_v45  ;;  %v4461_v20 = vmul.f32 %v4155_v19, %v4155_v19  ;;  %v5001_v24 = vadd.f32 %v5000_v5, %v4970_v17  ;;  %v4462_v56 = vmul.f32 %v4158_v59, %v4158_v59 }
 0x276   : > { %6182 = vst [vmem:[%s8278_s16 + $0x10] sm:$0xff] %v6034_v63   ;;  %v4422_v36 = vadd.f32 %v4421_v32, %v4155_v19  ;;  %v4491_v15 = vadd.f32 %v4490_v31, %v4460_v6  ;;  %v6733_v29 = vpop.f32.mrb[136].mxu0  ;;  %v4972_v43 = vmul.f32 %v4671_v9, %v4671_v9  ;;  %v6782_v35 = vpop.f32.mrb[138].mxu1 }
 0x277   : > { %v4171_v62 = vadd.f32 %v6733_v29, %v8201_v22  ;;  %v4162_v39 = vpop.f32.mrb[137].mxu0  ;;  %v4933_v61 = vadd.f32 %v4932_v28, %v4671_v9  ;;  %v6129_v42 = vpack.c.bf16 %v6782_v35, %v6781_v55  ;;  %v4674_v58 = vpop.f32.mrb[139].mxu1  ;;  %v5002_v19 = vadd.f32 %v5001_v24, %v4971_v21 }
 0x278   : > { %v4492_v2 = vadd.f32 %v4491_v15, %v4461_v20  ;;  %v4163_v49 = vadd.f32 %v4162_v39, %v8195_v12  ;;  %v4423_v1 = vadd.f32 %v4422_v36, %v4158_v59  ;;  %v6734_v40 = vpop.f32.mrb[138].mxu0  ;;  %v6124_v38 = vpack.c.bf16 %v4674_v58, %v4671_v9 }
 0x279   : > { %v4174_v60 = vadd.f32 %v6734_v40, %v8203_v0  ;;  %6200 = vst [vmem:[%s8271_s29 + $0x28] sm:$0xff] %v6129_v42   ;;  %v4165_v46 = vpop.f32.mrb[139].mxu0  ;;  %v5003_v44 = vadd.f32 %v5002_v19, %v4972_v43  ;;  %v4934_v52 = vadd.f32 %v4933_v61, %v4674_v58  ;;  %v4974_v0 = vmul.f32 %v6781_v55, %v6781_v55 }
 0x27a   : > { %v4424_v51 = vadd.f32 %v4423_v1, %v4163_v49  ;;  %v4463_v22 = vmul.f32 %v4163_v49, %v4163_v49  ;;  %v4493_v50 = vadd.f32 %v4492_v2, %v4462_v56  ;;  %v4166_v53 = vadd.f32 %v4165_v46, %v8197_v13  ;;  %6199 = vst [vmem:[%s8271_s29 + $0x20] sm:$0xff] %v6124_v38  }
 0x27b   : > { %v6049_v26 = vpack.c.bf16 %v4174_v60, %v4171_v62  ;;  %v4935_v63 = vadd.f32 %v6781_v55, %v4934_v52  ;;  %v4973_v32 = vmul.f32 %v4674_v58, %v4674_v58  ;;  %v4465_v17 = vmul.f32 %v4171_v62, %v4171_v62 }
 0x27c   : > { %v4494_v12 = vadd.f32 %v4493_v50, %v4463_v22  ;;  %v6044_v59 = vpack.c.bf16 %v4166_v53, %v4163_v49  ;;  %v4425_v45 = vadd.f32 %v4424_v51, %v4166_v53  ;;  %v4464_v18 = vmul.f32 %v4166_v53, %v4166_v53  ;;  %v6785_v31 = vpop.f32.mrb[140].mxu1 }
 0x27d   : > { %6185 = vst [vmem:[%s8278_s16 + $0x28] sm:$0xff] %v6049_v26   ;;  %v4687_v6 = vpop.f32.mrb[141].mxu1  ;;  %v4975_v21 = vmul.f32 %v6782_v35, %v6782_v35  ;;  %v5004_v20 = vadd.f32 %v5003_v44, %v4973_v32  ;;  %v4936_v29 = vadd.f32 %v6782_v35, %v4935_v63  ;;  %v4466_v39 = vmul.f32 %v4174_v60, %v4174_v60 }
 0x27e   : > { %6184 = vst [vmem:[%s8278_s16 + $0x20] sm:$0xff] %v6044_v59   ;;  %v4426_v5 = vadd.f32 %v4425_v45, %v4171_v62  ;;  %v4495_v13 = vadd.f32 %v4494_v12, %v4464_v18  ;;  %v6737_v9 = vpop.f32.mrb[140].mxu0  ;;  %v6786_v28 = vpop.f32.mrb[142].mxu1  ;;  %v4976_v62 = vmul.f32 %v4687_v6, %v4687_v6  ;;  %v4978_v44 = vmul.f32 %v6785_v31, %v6785_v31 }
 0x27f   : > { %v4187_v36 = vadd.f32 %v6737_v9, %v8213_v48  ;;  %v4178_v15 = vpop.f32.mrb[141].mxu0  ;;  %v6139_v43 = vpack.c.bf16 %v6786_v28, %v6785_v31  ;;  %v4690_v24 = vpop.f32.mrb[143].mxu1  ;;  %v5005_v56 = vadd.f32 %v5004_v20, %v4974_v0  ;;  %v4937_v2 = vadd.f32 %v4936_v29, %v4687_v6 }
 0x280   : > { %v4496_v61 = vadd.f32 %v4495_v13, %v4465_v17  ;;  %v4179_v55 = vadd.f32 %v4178_v15, %v8207_v8  ;;  %v4427_v42 = vadd.f32 %v4426_v5, %v4174_v60  ;;  %v6738_v58 = vpop.f32.mrb[142].mxu0  ;;  %v6134_v8 = vpack.c.bf16 %v4690_v24, %v4687_v6 }
 0x281   : > { %v4190_v49 = vadd.f32 %v6738_v58, %v8215_v41  ;;  %6202 = vst [vmem:[%s8271_s29 + $0x38] sm:$0xff] %v6139_v43   ;;  %v4181_v1 = vpop.f32.mrb[143].mxu0  ;;  %v5006_v46 = vadd.f32 %v5005_v56, %v4975_v21  ;;  %v4938_v26 = vadd.f32 %v4937_v2, %v4690_v24  ;;  %v4977_v52 = vmul.f32 %v4690_v24, %v4690_v24 }
 0x282   : > { %v4428_v48 = vadd.f32 %v4427_v42, %v4179_v55  ;;  %v4467_v40 = vmul.f32 %v4179_v55, %v4179_v55  ;;  %v4497_v35 = vadd.f32 %v4496_v61, %v4466_v39  ;;  %v4182_v19 = vadd.f32 %v4181_v1, %v8209_v16  ;;  %6201 = vst [vmem:[%s8271_s29 + $0x30] sm:$0xff] %v6134_v8  }
 0x283   : > { %v6059_v38 = vpack.c.bf16 %v4190_v49, %v4187_v36  ;;  %v5007_v41 = vadd.f32 %v5006_v46, %v4976_v62  ;;  %v4469_v59 = vmul.f32 %v4187_v36, %v4187_v36  ;;  %v4979_v45 = vmul.f32 %v6786_v28, %v6786_v28 }
 0x284   : > { %v4498_v60 = vadd.f32 %v4497_v35, %v4467_v40  ;;  %v6054_v51 = vpack.c.bf16 %v4182_v19, %v4179_v55  ;;  %v4429_v22 = vadd.f32 %v4428_v48, %v4182_v19  ;;  %v4468_v50 = vmul.f32 %v4182_v19, %v4182_v19  ;;  %v6789_v53 = vpop.f32.mrb[144].mxu1 }
 0x285   : > { %6187 = vst [vmem:[%s8278_s16 + $0x38] sm:$0xff] %v6059_v38   ;;  %v4703_v12 = vpop.f32.mrb[145].mxu1  ;;  %v4939_v32 = vadd.f32 %v6785_v31, %v4938_v26  ;;  %v5008_v6 = vadd.f32 %v5007_v41, %v4977_v52  ;;  %v4470_v9 = vmul.f32 %v4190_v49, %v4190_v49  ;;  %v4982_v56 = vmul.f32 %v6789_v53, %v6789_v53 }
 0x286   : > { %6186 = vst [vmem:[%s8278_s16 + $0x30] sm:$0xff] %v6054_v51   ;;  %v4430_v16 = vadd.f32 %v4429_v22, %v4187_v36  ;;  %v4499_v18 = vadd.f32 %v4498_v60, %v4468_v50  ;;  %v6741_v0 = vpop.f32.mrb[144].mxu0  ;;  %v6790_v63 = vpop.f32.mrb[146].mxu1  ;;  %v4980_v36 = vmul.f32 %v4703_v12, %v4703_v12 }
 0x287   : > { %v4203_v17 = vadd.f32 %v6741_v0, %v8225_v33  ;;  %v4194_v21 = vpop.f32.mrb[145].mxu0  ;;  %v6149_v5 = vpack.c.bf16 %v6790_v63, %v6789_v53  ;;  %v4706_v13 = vpop.f32.mrb[147].mxu1  ;;  %v5009_v24 = vadd.f32 %v5008_v6, %v4978_v44  ;;  %v4940_v39 = vadd.f32 %v6786_v28, %v4939_v32 }
 0x288   : > { %v4500_v20 = vadd.f32 %v4499_v18, %v4469_v59  ;;  %v4195_v15 = vadd.f32 %v4194_v21, %v8219_v4  ;;  %v4431_v29 = vadd.f32 %v4430_v16, %v4190_v49  ;;  %v6742_v43 = vpop.f32.mrb[146].mxu0  ;;  %v6144_v35 = vpack.c.bf16 %v4706_v13, %v4703_v12 }
 0x289   : > { %v4206_v61 = vadd.f32 %v6742_v43, %v8227_v11  ;;  %6204 = vst [vmem:[%s8271_s29 + $0x48] sm:$0xff] %v6149_v5   ;;  %v4197_v31 = vpop.f32.mrb[147].mxu0  ;;  %v4941_v2 = vadd.f32 %v4940_v39, %v4703_v12  ;;  %v5010_v62 = vadd.f32 %v5009_v24, %v4979_v45  ;;  %v4981_v46 = vmul.f32 %v4706_v13, %v4706_v13 }
 0x28a   : > { %v4432_v55 = vadd.f32 %v4431_v29, %v4195_v15  ;;  %v4471_v42 = vmul.f32 %v4195_v15, %v4195_v15  ;;  %v4501_v33 = vadd.f32 %v4500_v20, %v4470_v9  ;;  %v4198_v58 = vadd.f32 %v4197_v31, %v8221_v7  ;;  %6203 = vst [vmem:[%s8271_s29 + $0x40] sm:$0xff] %v6144_v35  }
 0x28b   : > { %v6069_v4 = vpack.c.bf16 %v4206_v61, %v4203_v17  ;;  %v5011_v11 = vadd.f32 %v5010_v62, %v4980_v36  ;;  %v4942_v19 = vadd.f32 %v4941_v2, %v4706_v13  ;;  %v4473_v8 = vmul.f32 %v4203_v17, %v4203_v17 }
 0x28c   : > { %v4502_v49 = vadd.f32 %v4501_v33, %v4471_v42  ;;  %v6064_v1 = vpack.c.bf16 %v4198_v58, %v4195_v15  ;;  %v4433_v48 = vadd.f32 %v4432_v55, %v4198_v58  ;;  %v4472_v28 = vmul.f32 %v4198_v58, %v4198_v58  ;;  %v6793_v40 = vpop.f32.mrb[148].mxu1 }
 0x28d   : > { %6189 = vst [vmem:[%s8278_s16 + $0x48] sm:$0xff] %v6069_v4   ;;  %v4719_v38 = vpop.f32.mrb[149].mxu1  ;;  %v4983_v60 = vmul.f32 %v6790_v63, %v6790_v63  ;;  %v4943_v44 = vadd.f32 %v6789_v53, %v4942_v19  ;;  %v5012_v41 = vadd.f32 %v5011_v11, %v4981_v46  ;;  %v4474_v12 = vmul.f32 %v4206_v61, %v4206_v61 }
 0x28e   : > { %6188 = vst [vmem:[%s8278_s16 + $0x40] sm:$0xff] %v6064_v1   ;;  %v4434_v7 = vadd.f32 %v4433_v48, %v4203_v17  ;;  %v4503_v51 = vadd.f32 %v4502_v49, %v4472_v28  ;;  %v6794_v50 = vpop.f32.mrb[150].mxu1  ;;  %v4984_v21 = vmul.f32 %v4719_v38, %v4719_v38  ;;  %v4986_v15 = vmul.f32 %v6793_v40, %v6793_v40 }
 0x28f   : > { %v6159_v59 = vpack.c.bf16 %v6794_v50, %v6793_v40  ;;  %v4722_v45 = vpop.f32.mrb[151].mxu1  ;;  %v5013_v6 = vadd.f32 %v5012_v41, %v4982_v56  ;;  %v4944_v17 = vadd.f32 %v6790_v63, %v4943_v44  ;;  %v4987_v56 = vmul.f32 %v6794_v50, %v6794_v50 }
 0x290   : > { %v4504_v16 = vadd.f32 %v4503_v51, %v4473_v8  ;;  %v4435_v0 = vadd.f32 %v4434_v7, %v4206_v61  ;;  %v6154_v31 = vpack.c.bf16 %v4722_v45, %v4719_v38  ;;  %v4985_v42 = vmul.f32 %v4722_v45, %v4722_v45 }
 0x291   : > { %6206 = vst [vmem:[%s8271_s29 + $0x58] sm:$0xff] %v6159_v59   ;;  %v4945_v29 = vadd.f32 %v4944_v17, %v4719_v38  ;;  %v5014_v43 = vadd.f32 %v5013_v6, %v4983_v60 }
 0x292   : > { %6205 = vst [vmem:[%s8271_s29 + $0x50] sm:$0xff] %v6154_v31  }
 0x293   : > { %v4946_v55 = vadd.f32 %v4945_v29, %v4722_v45 }
 0x294   : > { %v6745_v22 = vpop.f32.mrb[148].mxu0  ;;  %v6797_v61 = vpop.f32.mrb[152].mxu1 }
 0x295   : > { %v4219_v26 = vadd.f32 %v6745_v22, %v8237_v14  ;;  %v4210_v52 = vpop.f32.mrb[149].mxu0  ;;  %v4505_v14 = vadd.f32 %v4504_v16, %v4474_v12  ;;  %v4735_v33 = vpop.f32.mrb[153].mxu1  ;;  %v4947_v49 = vadd.f32 %v6793_v40, %v4946_v55  ;;  %v4990_v59 = vmul.f32 %v6797_v61, %v6797_v61 }
 0x296   : > { %v4211_v18 = vadd.f32 %v4210_v52, %v8231_v3  ;;  %v6746_v32 = vpop.f32.mrb[150].mxu0  ;;  %v6798_v4 = vpop.f32.mrb[154].mxu1  ;;  %v4988_v22 = vmul.f32 %v4735_v33, %v4735_v33 }
 0x297   : > { %v4222_v5 = vadd.f32 %v6746_v32, %v8239_v37  ;;  %v4213_v53 = vpop.f32.mrb[151].mxu0  ;;  %v5015_v37 = vadd.f32 %v5014_v43, %v4984_v21  ;;  %v4477_v58 = vmul.f32 %v4219_v26, %v4219_v26  ;;  %v6169_v11 = vpack.c.bf16 %v6798_v4, %v6797_v61  ;;  %v4738_v35 = vpop.f32.mrb[155].mxu1 }
 0x298   : > { %v4436_v13 = vadd.f32 %v4435_v0, %v4211_v18  ;;  %v4475_v9 = vmul.f32 %v4211_v18, %v4211_v18  ;;  %v4214_v20 = vadd.f32 %v4213_v53, %v8233_v57  ;;  %v4948_v51 = vadd.f32 %v6794_v50, %v4947_v49 }
 0x299   : > { %v6079_v3 = vpack.c.bf16 %v4222_v5, %v4219_v26  ;;  %v5016_v1 = vadd.f32 %v5015_v37, %v4985_v42  ;;  %v4478_v19 = vmul.f32 %v4222_v5, %v4222_v5  ;;  %6208 = vst [vmem:[%s8271_s29 + $0x68] sm:$0xff] %v6169_v11   ;;  %v6164_v6 = vpack.c.bf16 %v4738_v35, %v4735_v33 }
 0x29a   : > { %v4506_v24 = vadd.f32 %v4505_v14, %v4475_v9  ;;  %v6074_v39 = vpack.c.bf16 %v4214_v20, %v4211_v18  ;;  %v4437_v36 = vadd.f32 %v4436_v13, %v4214_v20  ;;  %v4476_v63 = vmul.f32 %v4214_v20, %v4214_v20 }
 0x29b   : > { %6191 = vst [vmem:[%s8278_s16 + $0x58] sm:$0xff] %v6079_v3   ;;  %v5017_v7 = vadd.f32 %v5016_v1, %v4986_v15  ;;  %v4949_v45 = vadd.f32 %v4948_v51, %v4735_v33  ;;  %v4989_v21 = vmul.f32 %v4738_v35, %v4738_v35  ;;  %6207 = vst [vmem:[%s8271_s29 + $0x60] sm:$0xff] %v6164_v6  }
 0x29c   : > { %6190 = vst [vmem:[%s8278_s16 + $0x50] sm:$0xff] %v6074_v39   ;;  %v4438_v57 = vadd.f32 %v4437_v36, %v4219_v26  ;;  %v4507_v2 = vadd.f32 %v4506_v24, %v4476_v63  ;;  %v6749_v62 = vpop.f32.mrb[152].mxu0 }
 0x29d   : > { %v4235_v48 = vadd.f32 %v6749_v62, %v8249_v27  ;;  %v4226_v28 = vpop.f32.mrb[153].mxu0  ;;  %v5018_v12 = vadd.f32 %v5017_v7, %v4987_v56  ;;  %v4950_v17 = vadd.f32 %v4949_v45, %v4738_v35 }
 0x29e   : > { %v4508_v46 = vadd.f32 %v4507_v2, %v4477_v58  ;;  %v4227_v38 = vadd.f32 %v4226_v28, %v8243_v54  ;;  %v4439_v8 = vadd.f32 %v4438_v57, %v4222_v5  ;;  %v6750_v60 = vpop.f32.mrb[154].mxu0 }
 0x29f   : > { %v4238_v44 = vadd.f32 %v6750_v60, %v8251_v23  ;;  %v4229_v40 = vpop.f32.mrb[155].mxu0  ;;  %v6801_v23 = vpop.f32.mrb[156].mxu1  ;;  %v5019_v32 = vadd.f32 %v5018_v12, %v4988_v22  ;;  %v4481_v53 = vmul.f32 %v4235_v48, %v4235_v48  ;;  %v4951_v15 = vadd.f32 %v6797_v61, %v4950_v17 }
 0x2a0   : > { %v4440_v41 = vadd.f32 %v4439_v8, %v4227_v38  ;;  %v4479_v26 = vmul.f32 %v4227_v38, %v4227_v38  ;;  %v4509_v27 = vadd.f32 %v4508_v46, %v4478_v19  ;;  %v4230_v52 = vadd.f32 %v4229_v40, %v8245_v25  ;;  %v4751_v5 = vpop.f32.mrb[157].mxu1 }
 0x2a1   : > { %v6089_v54 = vpack.c.bf16 %v4238_v44, %v4235_v48  ;;  %v4991_v25 = vmul.f32 %v6798_v4, %v6798_v4  ;;  %v8329_v20 = vpop.f32.mrb[158].mxu1  ;;  %v5020_v29 = vadd.f32 %v5019_v32, %v4989_v21  ;;  %v4482_v36 = vmul.f32 %v4238_v44, %v4238_v44 }
 0x2a2   : > { %v4510_v16 = vadd.f32 %v4509_v27, %v4479_v26  ;;  %v6084_v18 = vpack.c.bf16 %v4230_v52, %v4227_v38  ;;  %v4441_v0 = vadd.f32 %v4440_v41, %v4230_v52  ;;  %v4480_v50 = vmul.f32 %v4230_v52, %v4230_v52  ;;  %v4754_v39 = vpop.f32.mrb[159].mxu1 }
 0x2a3   : > { %6193 = vst [vmem:[%s8278_s16 + $0x68] sm:$0xff] %v6089_v54   ;;  %v6179_v24 = vpack.c.bf16 %v8329_v20, %v6801_v23  ;;  %v5021_v42 = vadd.f32 %v5020_v29, %v4990_v59  ;;  %v4952_v33 = vadd.f32 %v6798_v4, %v4951_v15  ;;  %v4992_v61 = vmul.f32 %v4751_v5, %v4751_v5 }
 0x2a4   : > { %6192 = vst [vmem:[%s8278_s16 + $0x60] sm:$0xff] %v6084_v18   ;;  %v4442_v13 = vadd.f32 %v4441_v0, %v4235_v48  ;;  %v4511_v9 = vadd.f32 %v4510_v16, %v4480_v50  ;;  %v6753_v14 = vpop.f32.mrb[156].mxu0  ;;  %v6174_v11 = vpack.c.bf16 %v4754_v39, %v4751_v5  ;;  %v4993_v19 = vmul.f32 %v4754_v39, %v4754_v39 }
 0x2a5   : > { %v4251_v43 = vadd.f32 %v6753_v14, %v8262_v10  ;;  %v4242_v3 = vpop.f32.mrb[157].mxu0  ;;  %6210 = vst [vmem:[%s8271_s29 + $0x78] sm:$0xff] %v6179_v24   ;;  %v5022_v49 = vadd.f32 %v5021_v42, %v4991_v25  ;;  %v8361_v60 = vmul.f32 %v6801_v23, %v6801_v23 }
 0x2a6   : > { %v4512_v63 = vadd.f32 %v4511_v9, %v4481_v53  ;;  %v4243_v37 = vadd.f32 %v4242_v3, %v8255_v34  ;;  %v4443_v31 = vadd.f32 %v4442_v13, %v4238_v44  ;;  %v6754_v55 = vpop.f32.mrb[158].mxu0  ;;  %v4953_v34 = vadd.f32 %v4952_v33, %v4751_v5  ;;  %6209 = vst [vmem:[%s8271_s29 + $0x70] sm:$0xff] %v6174_v11  }
 0x2a7   : > { %v8338_v58 = vadd.f32 %v6754_v55, %v8264_v47  ;;  %v4245_v10 = vpop.f32.mrb[159].mxu0  ;;  %v4485_v46 = vmul.f32 %v4251_v43, %v4251_v43 }
 0x2a8   : > { %v4444_v56 = vadd.f32 %v4443_v31, %v4243_v37  ;;  %v4483_v57 = vmul.f32 %v4243_v37, %v4243_v37  ;;  %v4513_v2 = vadd.f32 %v4512_v63, %v4482_v36  ;;  %v4246_v62 = vadd.f32 %v4245_v10, %v8257_v30 }
 0x2a9   : > { %v6099_v1 = vpack.c.bf16 %v8338_v58, %v4251_v43  ;;  %v5023_v30 = vadd.f32 %v5022_v49, %v4992_v61  ;;  %v4954_v35 = vadd.f32 %v4953_v34, %v4754_v39 }
 0x2aa   : > { %v4514_v4 = vadd.f32 %v4513_v2, %v4483_v57  ;;  %v6094_v48 = vpack.c.bf16 %v4246_v62, %v4243_v37  ;;  %v4445_v28 = vadd.f32 %v4444_v56, %v4246_v62  ;;  %v4484_v47 = vmul.f32 %v4246_v62, %v4246_v62 }
 0x2ab   : > { %6195 = vst [vmem:[%s8278_s16 + $0x78] sm:$0xff] %v6099_v1   ;;  %v4955_v7 = vadd.f32 %v6801_v23, %v4954_v35  ;;  %v5024_v51 = vadd.f32 %v5023_v30, %v4993_v19 }
 0x2ac   : > { %6194 = vst [vmem:[%s8278_s16 + $0x70] sm:$0xff] %v6094_v48   ;;  %v4446_v38 = vadd.f32 %v4445_v28, %v4251_v43  ;;  %v4515_v8 = vadd.f32 %v4514_v4, %v4484_v47 }
 0x2ad   : > { %7311 = shalt.err (!%p7308_p1)
}
 0x2ae   : > { %s7312_s29 = scalar_lea.hbm %s8348_s26, 2048  ;;  %s7316_s17 = scalar_lea.hbm %s8515_s3, 4096 }
 0x2af   : > { %p7313_p13 = scmp.ne.s32.totalorder %s8348_s26, %s7312_s29  ;;  %p7317_p4 = scmp.lt.u32.totalorder %s8348_s26, %s8515_s3 }
 0x2b0   : > { %p7318_p5 = scmp.lt.u32.totalorder %s7316_s17, %s7312_s29  ;;  %p7320_p11 = scmp.lt.u32.totalorder %s7312_s29, %s8348_s26 }
 0x2b1   : > { %p7314_p6 = pnand %p7313_p13, %p8537_p0 }
 0x2b2   : > { %p7319_p8 = por %p7318_p5, %p7317_p4 }
 0x2b3   : > { %p7315_p10 = pneg %p7314_p6 }
 0x2b4   : > { %p7321_p2 = por %p7320_p11, %p7319_p8 }
 0x2b6   : > { %p7322_p3 = pnand %p7321_p2, %p7315_p10 }
 0x2b8   : > { %7325 = shalt.err (!%p7322_p3)
}
 0x2b9   : > { %s7468_s27 = smov 64   ;;  %s7469_s19 = smov 4   ;;  %v4486_v22 = vmul.f32 %v8338_v58, %v8338_v58  ;;  %v4447_v44 = vadd.f32 %v4446_v38, %v8338_v58  ;;  %v4516_v40 = vadd.f32 %v4515_v8, %v4485_v46 }
 0x2ba   : > { %6816 = dma.vmem_to_hbm [thread:$0]  (%p8537_p0), %s8350_s11, 2048, %s8348_s26, %s5035_s14, %s7468_s27, %s7468_s27, %s7469_s19  }
 0x2bb   : > { %s8396_s29 = scalar_lea.sflag [#allocation11], %s5039_s18  ;;  %s7326_s16 = scalar_lea.vmem %s8358_s15, 2048 }
 0x2bc   : > { %p7327_p7 = scmp.ne.s32.totalorder %s8358_s15, %s7326_s16  ;;  %s7470_s20 = smov [#allocation10]  }
 0x2bd   : > { %s7330_s17 = sshll.u32 %s7470_s20, 4  ;;  %s7331_s17 = int_to_ptr.vmem [resolvable:$false] %s7330_s17 }
 0x2be   : > { %p7328_p9 = pnand %p7327_p7, %p8537_p0  ;;  %s7332_s9 = scalar_lea.vmem %s7331_s17, 4096 }
 0x2bf   : > { %p7333_p1 = scmp.lt.s32.totalorder %s8358_s15, %s7331_s17  ;;  %p7334_p13 = scmp.lt.s32.totalorder %s7332_s9, %s7326_s16 }
 0x2c0   : > { %p7329_p12 = pneg %p7328_p9 }
 0x2c1   : > { %p7335_p6 = por %p7334_p13, %p7333_p1 }
 0x2c3   : > { %p7336_p10 = pnand %p7335_p6, %p7329_p12 }
 0x2c5   : > { %7339 = shalt.err (!%p7336_p10)
}
 0x2c6   : > { %s7340_s18 = scalar_lea.hbm %s8356_s7, 2048  ;;  %s7344_s14 = scalar_lea.hbm %s8516_s4, 4096 }
 0x2c7   : > { %p7341_p4 = scmp.ne.s32.totalorder %s8356_s7, %s7340_s18  ;;  %p7345_p11 = scmp.lt.u32.totalorder %s8356_s7, %s8516_s4 }
 0x2c8   : > { %p7346_p2 = scmp.lt.u32.totalorder %s7344_s14, %s7340_s18  ;;  %p7348_p7 = scmp.lt.u32.totalorder %s7340_s18, %s8356_s7 }
 0x2c9   : > { %p7342_p5 = pnand %p7341_p4, %p8537_p0 }
 0x2ca   : > { %p7347_p3 = por %p7346_p2, %p7345_p11 }
 0x2cb   : > { %p7343_p8 = pneg %p7342_p5 }
 0x2cc   : > { %p7349_p9 = por %p7348_p7, %p7347_p3 }
 0x2ce   : > { %p7350_p12 = pnand %p7349_p9, %p7343_p8 }
 0x2d0   : > { %7353 = shalt.err (!%p7350_p12)
}
 0x2d1   : > { %6817 = dma.vmem_to_hbm [thread:$0]  (%p8537_p0), %s8358_s15, 2048, %s8356_s7, %s8396_s29, %s7468_s27, %s7468_s27, %s7469_s19   ;;  %v4995_v41 = vmul.f32 %v8329_v20, %v8329_v20  ;;  %v4956_v26 = vadd.f32 %v8329_v20, %v4955_v7  ;;  %v5025_v27 = vadd.f32 %v5024_v51, %v8361_v60  ;;  %v4448_v52 = vrot.slane %v4447_v44, 4 }
 0x2d2   : > { %v4517_v59 = vadd.f32 %v4516_v40, %v4486_v22  ;;  %s5301_s15 = sshll.u32 %s7691_s10, 1  ;;  %s5951_s7 = sshll.u32 %s7529_s25, 5 }
 0x2d3   : > { %v4957_v45 = vrot.slane %v4956_v26, 4  ;;  %v5026_v12 = vadd.f32 %v5025_v27, %v4995_v41  ;;  %v4449_v54 = vadd.f32 %v4448_v52, %v4447_v44  ;;  %s319_s27 = scalar_lea.vmem [#allocation12], %s5301_s15  ;;  %s8429_s16 = scalar_lea.vmem [#allocation13], %s5301_s15 }
 0x2d4   : > { %v4518_v16 = vrot.slane %v4517_v59, 4  ;;  %s5095_s19 = sshll.u32 %s319_s27, 4  ;;  %s5108_s17 = sshll.u32 %s8429_s16, 4  ;;  %s8437_s19 = int_to_ptr.vmem [resolvable:$true] %s5095_s19  ;;  %s8445_s17 = int_to_ptr.vmem [resolvable:$true] %s5108_s17 }
 0x2d5   : > { %v4958_v18 = vadd.f32 %v4957_v45, %v4956_v26  ;;  %v5027_v0 = vrot.slane %v5026_v12, 4  ;;  %v4450_v50 = vrot.slane %v4449_v54, 2  ;;  %s8435_s11 = scalar_lea.hbm %s8517_s5, %s5951_s7  ;;  %s8443_s14 = scalar_lea.hbm %s8518_s6, %s5951_s7 }
 0x2d6   : > { %v4519_v23 = vadd.f32 %v4518_v16, %v4517_v59  ;;  %s7354_s30 = scalar_lea.vmem %s8437_s19, 32  ;;  %s7471_s20 = smov [#allocation12]  }
 0x2d7   : > { %v4959_v32 = vrot.slane %v4958_v18, 2  ;;  %v5028_v6 = vadd.f32 %v5027_v0, %v5026_v12  ;;  %v4451_v17 = vadd.f32 %v4450_v50, %v4449_v54  ;;  %p7355_p1 = scmp.ne.s32.totalorder %s8437_s19, %s7354_s30  ;;  %s7358_s15 = sshll.u32 %s7471_s20, 4  ;;  %s7359_s15 = int_to_ptr.vmem [resolvable:$false] %s7358_s15 }
 0x2d8   : > { %v4520_v21 = vrot.slane %v4519_v23, 2  ;;  %s7360_s9 = scalar_lea.vmem %s7359_s15, 64  ;;  %p7361_p10 = scmp.lt.s32.totalorder %s8437_s19, %s7359_s15 }
 0x2d9   : > { %v4960_v5 = vadd.f32 %v4959_v32, %v4958_v18  ;;  %v5029_v53 = vrot.slane %v5028_v6, 2  ;;  %v4452_v25 = vrot.slane %v4451_v17, 1  ;;  %p7356_p13 = pnand %p7355_p1, %p8537_p0  ;;  %p7362_p4 = scmp.lt.s32.totalorder %s7360_s9, %s7354_s30 }
 0x2da   : > { %v4521_v13 = vadd.f32 %v4520_v21, %v4519_v23 }
 0x2db   : > { %v4961_v9 = vrot.slane %v4960_v5, 1  ;;  %v5030_v14 = vadd.f32 %v5029_v53, %v5028_v6  ;;  %v4453_v20 = vadd.f32 %v4452_v25, %v4451_v17  ;;  %p7357_p6 = pneg %p7356_p13  ;;  %p7363_p5 = por %p7362_p4, %p7361_p10 }
 0x2dc   : > { %v4522_v15 = vrot.slane %v4521_v13, 1 }
 0x2dd   : > { %v4962_v29 = vadd.f32 %v4961_v9, %v4960_v5  ;;  %v5031_v43 = vrot.slane %v5030_v14, 1  ;;  %4454 = vst [vmem:[%s319_s27] sm:$0x1] %v4453_v20  ;;  %p7364_p8 = pnand %p7363_p5, %p7357_p6 }
 0x2de   : > { %v4523_v3 = vadd.f32 %v4522_v15, %v4521_v13 }
 0x2df   : > { %4963 = vst [vmem:[%s8429_s16] sm:$0x1] %v4962_v29  ;;  %v5032_v24 = vadd.f32 %v5031_v43, %v5030_v14 }
 0x2e0   : > { %4524 = vst [vmem:[%s319_s27 + $0x1] sm:$0x1] %v4523_v3 }
 0x2e1   : > { %7367 = shalt.err (!%p7364_p8)
}
 0x2e2   : > { %s7368_s7 = scalar_lea.hbm %s8435_s11, 32  ;;  %s7372_s25 = scalar_lea.hbm %s8517_s5, 64 }
 0x2e3   : > { %p7369_p11 = scmp.ne.s32.totalorder %s8435_s11, %s7368_s7  ;;  %p7373_p7 = scmp.lt.u32.totalorder %s8435_s11, %s8517_s5 }
 0x2e4   : > { %p7374_p9 = scmp.lt.u32.totalorder %s7372_s25, %s7368_s7  ;;  %p7376_p1 = scmp.lt.u32.totalorder %s7368_s7, %s8435_s11 }
 0x2e5   : > { %p7370_p2 = pnand %p7369_p11, %p8537_p0 }
 0x2e6   : > { %p7375_p12 = por %p7374_p9, %p7373_p7 }
 0x2e7   : > { %p7371_p3 = pneg %p7370_p2 }
 0x2e8   : > { %p7377_p13 = por %p7376_p1, %p7375_p12 }
 0x2ea   : > { %p7378_p6 = pnand %p7377_p13, %p7371_p3 }
 0x2ec   : > { %7381 = shalt.err (!%p7378_p6)
}
 0x2ed   : > { %6818 = dma.vmem_to_hbm [thread:$0]  (%p8537_p0), %s8437_s19, 32, %s8435_s11, %s8396_s29   ;;  %5033 = vst [vmem:[%s8429_s16 + $0x1] sm:$0x1] %v5032_v24 }
 0x2ee   : > { %s5050_s30 = scalar_lea.sflag [#allocation14], %s7691_s10  ;;  %s7382_s15 = scalar_lea.vmem %s8445_s17, 32 }
 0x2ef   : > { %p7383_p10 = scmp.ne.s32.totalorder %s8445_s17, %s7382_s15  ;;  %s7472_s9 = smov [#allocation13]  }
 0x2f0   : > { %s7386_s7 = sshll.u32 %s7472_s9, 4  ;;  %s7387_s7 = int_to_ptr.vmem [resolvable:$false] %s7386_s7 }
 0x2f1   : > { %p7384_p4 = pnand %p7383_p10, %p8537_p0  ;;  %s7388_s27 = scalar_lea.vmem %s7387_s7, 64 }
 0x2f2   : > { %p7389_p8 = scmp.lt.s32.totalorder %s8445_s17, %s7387_s7  ;;  %p7390_p11 = scmp.lt.s32.totalorder %s7388_s27, %s7382_s15 }
 0x2f3   : > { %p7385_p5 = pneg %p7384_p4 }
 0x2f4   : > { %p7391_p2 = por %p7390_p11, %p7389_p8 }
 0x2f6   : > { %p7392_p3 = pnand %p7391_p2, %p7385_p5 }
 0x2f8   : > { %7395 = shalt.err (!%p7392_p3)
}
 0x2f9   : > { %s7396_s10 = scalar_lea.hbm %s8443_s14, 32  ;;  %s7400_s16 = scalar_lea.hbm %s8518_s6, 64 }
 0x2fa   : > { %p7397_p7 = scmp.ne.s32.totalorder %s8443_s14, %s7396_s10  ;;  %p7401_p1 = scmp.lt.u32.totalorder %s8443_s14, %s8518_s6 }
 0x2fb   : > { %p7402_p13 = scmp.lt.u32.totalorder %s7400_s16, %s7396_s10  ;;  %p7404_p10 = scmp.lt.u32.totalorder %s7396_s10, %s8443_s14 }
 0x2fc   : > { %p7398_p9 = pnand %p7397_p7, %p8537_p0 }
 0x2fd   : > { %p7403_p6 = por %p7402_p13, %p7401_p1 }
 0x2fe   : > { %p7399_p12 = pneg %p7398_p9 }
 0x2ff   : > { %p7405_p4 = por %p7404_p10, %p7403_p6 }
 0x301   : > { %p7406_p5 = pnand %p7405_p4, %p7399_p12 }
 0x303   : > { %7409 = shalt.err (!%p7406_p5)
}
 0x304   : > { %6819 = dma.vmem_to_hbm [thread:$0]  (%p8537_p0), %s8445_s17, 32, %s8443_s14, %s5050_s30  }
 0x305 PF: > { %s5120_s25 = sand.u32 1, %s7448_s21   ;;  %p8538_p8 = scmp.ne.s32.totalorder %s8526_s28, 0 }
 0x306   : > { %p8539_p11 = scmp.ge.s32.totalorder %s7460_s24, 2  ;;  %s5121_s26 = scalar_lea.sflag [#allocation5], %s5120_s25 }
 0x308   : > { %p6836_p2 = pnand %p8539_p11, %p8538_p8 }
 0x30a   : > { %7435 = dma.done.wait (!%p6836_p2), %s5121_s26, 2048  }
 0x30b   : > { %7437 = vsyncadd (!%p6836_p2), %s5121_s26, 4294965248  ;;  %s8540_s20 = sadd.s32 4294967294, %s7460_s24  }
 0x30c   : > { %s5129_s15 = sand.u32 1, %s8540_s20  }
 0x30d   : > { %s5130_s9 = scalar_lea.sflag [#allocation11], %s5129_s15 }
 0x30e   : > { %7439 = dma.done.wait (!%p6836_p2), %s5130_s9, 2080  }
 0x30f   : > { %7441 = vsyncadd (!%p6836_p2), %s5130_s9, 4294965216  ;;  %s5148_s12 = scalar_lea.sflag [#allocation14], %s5120_s25 }
 0x310   : > { %7443 = dma.done.wait (!%p6836_p2), %s5148_s12, 32  }
 0x311   : > { %7445 = vsyncadd (!%p6836_p2), %s5148_s12, 4294967264  ;;  %p27_p0 = scmp.ge.s32.totalorder %s7626_s8, 4   ;;  %s8541_s21 = smov %s7452_s22 }
 0x312   : > { %s8542_s22 = smov %s7456_s23  ;;  %s8543_s23 = smov %s7642_s13 }
 0x313   : > { %s8544_s24 = smov %s7626_s8  ;;  %29 = sbr.rel (!%p27_p0) target bundleno = 10 (0xa), region = 136 }
 0x31a   :  { %5153 = vsyncpa [#allocation4], 1 }
 0x31b   :  { %5155 = vsyncpa [#allocation4 + $0x1], 1 }
 0x31c   :  { %5156 = vsyncpa [#allocation7], 1 }
 0x31d   :  { %5157 = vsyncpa [#allocation5], 1 }
 0x31e   :  { %5159 = vsyncpa [#allocation5 + $0x1], 1 }
 0x31f   :  { %5160 = vsyncpa [#allocation11], 1 }
 0x320   :  { %5162 = vsyncpa [#allocation11 + $0x1], 1 }
 0x321   :  { %5163 = vsyncpa [#allocation14], 1 }
 0x322   :  { %5165 = vsyncpa [#allocation14 + $0x1], 1 }

</bundles_post_ra>
